<compile_context>
chip_gen: v6e
topology: v6e:2x2x1
jax: 0.10.0
libtpu: 0.0.40
codegen_flags: <defaults>
</compile_context>

<pallas_src>
import functools

import jax
import jax.numpy as jnp
from jax.experimental import pallas as pl
from jax.experimental.pallas import tpu as pltpu

INPUT_DIM = 8
IN_PAD = 128          # x / w1 zero-padded to a full vreg lane width
NUM_ACTIONS = 9
H1, H2, H3, H4 = 512, 512, 256, 128
HEAD_PAD = 128        # fused policy+value head, padded to one full lane width
LN_EPS = 1e-5


def _round_up(x, m):
    return ((x + m - 1) // m) * m


# ---------------------------------------------------------------------------
# Kernel
# ---------------------------------------------------------------------------
def actor_critic_kernel(
    x_ref,
    w1_ref, b1_ref, g1_ref, be1_ref,
    w2_ref, b2_ref, g2_ref, be2_ref,
    w3_ref, b3_ref, g3_ref, be3_ref,
    w4_ref, b4_ref,
    wh_ref, bh_ref,
    out_ref,
):
    def linear(h_bf16, w_ref, b_ref):
        # bf16 MXU matmul, f32 accumulation, f32 bias add.
        return jnp.dot(h_bf16, w_ref[...],
                       preferred_element_type=jnp.float32) + b_ref[...]

    def ln_relu_bf16(h, g_ref, be_ref):
        # Single-pass LayerNorm stats in f32: var = E[x^2] - mu^2 (clamped so
        # zero-variance padded rows stay finite through rsqrt).
        mu = jnp.mean(h, axis=-1, keepdims=True)
        ms = jnp.mean(h * h, axis=-1, keepdims=True)
        var = jnp.maximum(ms - mu * mu, 0.0)
        y = (h - mu) * jax.lax.rsqrt(var + LN_EPS) * g_ref[...] + be_ref[...]
        # Fused ReLU + bf16 cast: the next matmul consumes bf16 directly.
        return jnp.maximum(y, 0.0).astype(jnp.bfloat16)

    x = x_ref[...].astype(jnp.bfloat16)          # (bb, IN_PAD), lane-dense

    # Block 1: Linear(8->512) [K zero-padded to 128] -> LayerNorm -> ReLU -> Dropout(id)
    h = ln_relu_bf16(linear(x, w1_ref, b1_ref), g1_ref, be1_ref)
    # Block 2: Linear(512->512) -> LayerNorm -> ReLU -> Dropout(id)
    h = ln_relu_bf16(linear(h, w2_ref, b2_ref), g2_ref, be2_ref)
    # Block 3: Linear(512->256) -> LayerNorm -> ReLU -> Dropout(id)
    h = ln_relu_bf16(linear(h, w3_ref, b3_ref), g3_ref, be3_ref)
    # Block 4: Linear(256->128) -> ReLU -> Dropout(id)
    h = jnp.maximum(linear(h, w4_ref, b4_ref), 0.0).astype(jnp.bfloat16)

    # Fused policy+value head: one (bb,128)x(128,128) matmul; lane-dense
    # 128-wide f32 output slab (unmasked vector stores).
    out_ref[...] = linear(h, wh_ref, bh_ref)


# ---------------------------------------------------------------------------
# Wrapper
# ---------------------------------------------------------------------------
@functools.partial(jax.jit, static_argnames=("block_b", "single_buffer_params"))
def _forward(x, kernel_params, *, block_b, single_buffer_params):
    batch, in_dim = x.shape
    assert in_dim == INPUT_DIM

    # Batch tile: multiple of 8, capped at block_b, and at least two grid
    # steps whenever batch > 8 so ("parallel",) can shard across v7x's 2 TCs.
    bb = min(block_b, _round_up(max(batch, 1), 8))
    if batch > 8:
        bb = min(bb, _round_up((batch + 1) // 2, 8))
    padded = _round_up(batch, bb)

    # Zero-pad rows (batch) and lanes (INPUT_DIM -> IN_PAD). The padded w1
    # rows are zero, so padded lanes contribute exactly 0 to layer 1.
    x = jnp.pad(x, ((0, padded - batch), (0, IN_PAD - INPUT_DIM)))
    grid = (padded // bb,)

    x_spec = pl.BlockSpec((bb, IN_PAD), lambda i: (i, 0))
    # Weights / biases / LN params: full-array blocks, VMEM-resident across all
    # grid steps (constant index_map). Single-buffer them to free ~1 MiB VMEM.
    if single_buffer_params:
        pmode = pl.Buffered(1)
        param_specs = [pl.BlockSpec(p.shape, lambda i: (0, 0), pipeline_mode=pmode)
                       for p in kernel_params]
    else:
        param_specs = [pl.BlockSpec(p.shape, lambda i: (0, 0))
                       for p in kernel_params]
    out_spec = pl.BlockSpec((bb, HEAD_PAD), lambda i: (i, 0))

    flops_per_row = 2 * (IN_PAD * H1 + H1 * H2 + H2 * H3 + H3 * H4 + H4 * HEAD_PAD)
    param_bytes = sum(int(p.size) * p.dtype.itemsize for p in kernel_params)
    cost = pl.CostEstimate(
        flops=flops_per_row * padded,
        transcendentals=3 * padded,                       # one rsqrt per LN row
        bytes_accessed=int(x.size * x.dtype.itemsize) + param_bytes
                       + padded * HEAD_PAD * 4,
    )

    # Working-set-sized scoped-VMEM limit (v5e default is only 16 MiB; stays
    # well under v7x's 64 MiB physical VMEM for the default block_b).
    vmem_limit = int(min(64 * 2**20, 16 * 2**20 + bb * 24 * 1024))

    out = pl.pallas_call(
        actor_critic_kernel,
        out_shape=jax.ShapeDtypeStruct((padded, HEAD_PAD), jnp.float32),
        grid=grid,
        in_specs=[x_spec] + param_specs,
        out_specs=out_spec,
        compiler_params=pltpu.CompilerParams(
            dimension_semantics=("parallel",),
            vmem_limit_bytes=vmem_limit,
        ),
        cost_estimate=cost,
    )(x, *kernel_params)

    # Consumers that can accept the packed (padded, 128) slab should take
    # `out` directly to avoid this extra HBM round-trip; kept here so the
    # wrapper matches the PyTorch (logits, value) signature.
    logits = out[:batch, :NUM_ACTIONS]
    value = out[:batch, NUM_ACTIONS:NUM_ACTIONS + 1]
    return logits, value


_SINGLE_BUFFER_OK = None


def actor_critic_forward(x, kernel_params, *, block_b=1024):
    """Forward pass. Probes pl.Buffered(1) param single-buffering once and
    falls back to default (double-buffered) param specs if unsupported."""
    global _SINGLE_BUFFER_OK
    if _SINGLE_BUFFER_OK is None:
        try:
            out = _forward(x, kernel_params, block_b=block_b,
                           single_buffer_params=True)
            jax.block_until_ready(out)
            _SINGLE_BUFFER_OK = True
            return out
        except Exception:
            _SINGLE_BUFFER_OK = False
    return _forward(x, kernel_params, block_b=block_b,
                    single_buffer_params=_SINGLE_BUFFER_OK)


# ---------------------------------------------------------------------------
# Parameter construction
# ---------------------------------------------------------------------------
def init_params(key):
    """f32 params, weights stored [in_features, out_features] (PyTorch default init)."""
    def linear(k, fan_in, fan_out):
        kw, kb = jax.random.split(k)
        bound = 1.0 / jnp.sqrt(fan_in)
        w = jax.random.uniform(kw, (fan_in, fan_out), jnp.float32, -bound, bound)
        b = jax.random.uniform(kb, (1, fan_out), jnp.float32, -bound, bound)
        return w, b

    keys = jax.random.split(key, 6)
    w1, b1 = linear(keys[0], INPUT_DIM, H1)
    g1, be1 = jnp.ones((1, H1), jnp.float32), jnp.zeros((1, H1), jnp.float32)
    w2, b2 = linear(keys[1], H1, H2)
    g2, be2 = jnp.ones((1, H2), jnp.float32), jnp.zeros((1, H2), jnp.float32)
    w3, b3 = linear(keys[2], H1, H3)
    g3, be3 = jnp.ones((1, H3), jnp.float32), jnp.zeros((1, H3), jnp.float32)
    w4, b4 = linear(keys[3], H3, H4)
    wp, bp = linear(keys[4], H4, NUM_ACTIONS)
    wv, bv = linear(keys[5], H4, 1)
    return (w1, b1, g1, be1, w2, b2, g2, be2, w3, b3, g3, be3,
            w4, b4, wp, bp, wv, bv)


def pack_kernel_params(params):
    """bf16 matmul weights, zero-pad w1 rows to IN_PAD, fuse + lane-pad heads."""
    (w1, b1, g1, be1, w2, b2, g2, be2, w3, b3, g3, be3,
     w4, b4, wp, bp, wv, bv) = params

    w1p = jnp.zeros((IN_PAD, H1), jnp.float32).at[:INPUT_DIM].set(w1)

    wh = jnp.zeros((H4, HEAD_PAD), jnp.float32)
    wh = wh.at[:, :NUM_ACTIONS].set(wp)
    wh = wh.at[:, NUM_ACTIONS:NUM_ACTIONS + 1].set(wv)
    bh = jnp.zeros((1, HEAD_PAD), jnp.float32)
    bh = bh.at[:, :NUM_ACTIONS].set(bp)
    bh = bh.at[:, NUM_ACTIONS:NUM_ACTIONS + 1].set(bv)

    bf = lambda w: w.astype(jnp.bfloat16)
    return (bf(w1p), b1, g1, be1,
            bf(w2), b2, g2, be2,
            bf(w3), b3, g3, be3,
            bf(w4), b4,
            bf(wh), bh)


# ---------------------------------------------------------------------------
# References
# ---------------------------------------------------------------------------
def reference_forward_bf16(x, params):
    """Pure-JAX reference mirroring the kernel's bf16/f32 recipe exactly."""
    (w1, b1, g1, be1, w2, b2, g2, be2, w3, b3, g3, be3,
     w4, b4, wp, bp, wv, bv) = params

    def lin(h_bf16, w, b):
        return jnp.dot(h_bf16, w.astype(jnp.bfloat16),
                       preferred_element_type=jnp.float32) + b

    def ln_relu(h, g, be):
        mu = jnp.mean(h, axis=-1, keepdims=True)
        ms = jnp.mean(h * h, axis=-1, keepdims=True)
        var = jnp.maximum(ms - mu * mu, 0.0)
        y = (h - mu) * jax.lax.rsqrt(var + LN_EPS) * g + be
        return jnp.maximum(y, 0.0).astype(jnp.bfloat16)

    h = ln_relu(lin(x.astype(jnp.bfloat16), w1, b1), g1, be1)
    h = ln_relu(lin(h, w2, b2), g2, be2)
    h = ln_relu(lin(h, w3, b3), g3, be3)
    h = jnp.maximum(lin(h, w4, b4), 0.0).astype(jnp.bfloat16)
    return lin(h, wp, bp), lin(h, wv, bv)


def reference_forward_f32(x, params):
    """Pure f32 reference (PyTorch semantics)."""
    (w1, b1, g1, be1, w2, b2, g2, be2, w3, b3, g3, be3,
     w4, b4, wp, bp, wv, bv) = params

    def ln(h, g, be):
        mu = jnp.mean(h, axis=-1, keepdims=True)
        var = jnp.mean((h - mu) ** 2, axis=-1, keepdims=True)
        return (h - mu) / jnp.sqrt(var + LN_EPS) * g + be

    h = jnp.maximum(ln(x @ w1 + b1, g1, be1), 0.0)
    h = jnp.maximum(ln(h @ w2 + b2, g2, be2), 0.0)
    h = jnp.maximum(ln(h @ w3 + b3, g3, be3), 0.0)
    h = jnp.maximum(h @ w4 + b4, 0.0)
    return h @ wp + bp, h @ wv + bv


if __name__ == "__main__":
    key = jax.random.PRNGKey(0)
    k_x, k_p, k_x2, k_x3 = jax.random.split(key, 4)

    params = init_params(k_p)
    kparams = pack_kernel_params(params)

    # --- small batch (single 8-row grid step) ------------------------------
    batch = 8
    x = jax.random.normal(k_x, (batch, INPUT_DIM), jnp.float32)
    logits, value = actor_critic_forward(x, kparams)
    jax.block_until_ready((logits, value))
    assert logits.shape == (batch, NUM_ACTIONS)
    assert value.shape == (batch, 1)

    ref_logits, ref_value = reference_forward_bf16(x, params)
    assert jnp.allclose(logits, ref_logits, atol=2e-3, rtol=2e-3)
    assert jnp.allclose(value, ref_value, atol=2e-3, rtol=2e-3)

    # bf16 matmuls vs full-f32 PyTorch semantics: loose tolerance.
    f32_logits, f32_value = reference_forward_f32(x, params)
    assert jnp.allclose(logits, f32_logits, atol=1e-1, rtol=1e-1)
    assert jnp.allclose(value, f32_value, atol=1e-1, rtol=1e-1)

    # --- ragged batch, explicit small block (multi-step grid, padded rows) --
    batch2 = 300
    x2 = jax.random.normal(k_x2, (batch2, INPUT_DIM), jnp.float32)
    logits2, value2 = actor_critic_forward(x2, kparams, block_b=128)
    jax.block_until_ready((logits2, value2))
    ref_logits2, ref_value2 = reference_forward_bf16(x2, params)
    assert logits2.shape == (batch2, NUM_ACTIONS)
    assert value2.shape == (batch2, 1)
    assert jnp.allclose(logits2, ref_logits2, atol=2e-3, rtol=2e-3)
    assert jnp.allclose(value2, ref_value2, atol=2e-3, rtol=2e-3)

    # --- larger batch, default block_b (auto-split into 2 parallel steps) ---
    batch3 = 1024
    x3 = jax.random.normal(k_x3, (batch3, INPUT_DIM), jnp.float32)
    logits3, value3 = actor_critic_forward(x3, kparams)
    jax.block_until_ready((logits3, value3))
    ref_logits3, ref_value3 = reference_forward_bf16(x3, params)
    assert jnp.allclose(logits3, ref_logits3, atol=2e-3, rtol=2e-3)
    assert jnp.allclose(value3, ref_value3, atol=2e-3, rtol=2e-3)

    print("KERNEL_OK")
</pallas_src>

<mosaic_0001>
module attributes {stable_mosaic.version = 11 : i64} {
  func.func @actor_critic_kernel(%arg0: i32, %arg1: memref<8x128xf32, #tpu.memory_space<vmem>>, %arg2: memref<128x512xbf16, #tpu.memory_space<vmem>>, %arg3: memref<1x512xf32, #tpu.memory_space<vmem>>, %arg4: memref<1x512xf32, #tpu.memory_space<vmem>>, %arg5: memref<1x512xf32, #tpu.memory_space<vmem>>, %arg6: memref<512x512xbf16, #tpu.memory_space<vmem>>, %arg7: memref<1x512xf32, #tpu.memory_space<vmem>>, %arg8: memref<1x512xf32, #tpu.memory_space<vmem>>, %arg9: memref<1x512xf32, #tpu.memory_space<vmem>>, %arg10: memref<512x256xbf16, #tpu.memory_space<vmem>>, %arg11: memref<1x256xf32, #tpu.memory_space<vmem>>, %arg12: memref<1x256xf32, #tpu.memory_space<vmem>>, %arg13: memref<1x256xf32, #tpu.memory_space<vmem>>, %arg14: memref<256x128xbf16, #tpu.memory_space<vmem>>, %arg15: memref<1x128xf32, #tpu.memory_space<vmem>>, %arg16: memref<128x128xbf16, #tpu.memory_space<vmem>>, %arg17: memref<1x128xf32, #tpu.memory_space<vmem>>, %arg18: memref<8x128xf32, #tpu.memory_space<vmem>>) attributes {dimension_semantics = [#tpu.dimension_semantics<parallel>], iteration_bounds = array<i64: 1>, scalar_prefetch = 0 : i64, scratch_operands = 0 : i64, tpu.core_type = #tpu.core_type<tc>, window_params = [{transform_indices = @transform_0, window_bounds = array<i64: 8, 128>}, {pipeline_mode = #tpu.pipeline_mode<synchronous>, transform_indices = @transform_1, window_bounds = array<i64: 128, 512>}, {pipeline_mode = #tpu.pipeline_mode<synchronous>, transform_indices = @transform_2, window_bounds = array<i64: 1, 512>}, {pipeline_mode = #tpu.pipeline_mode<synchronous>, transform_indices = @transform_3, window_bounds = array<i64: 1, 512>}, {pipeline_mode = #tpu.pipeline_mode<synchronous>, transform_indices = @transform_4, window_bounds = array<i64: 1, 512>}, {pipeline_mode = #tpu.pipeline_mode<synchronous>, transform_indices = @transform_5, window_bounds = array<i64: 512, 512>}, {pipeline_mode = #tpu.pipeline_mode<synchronous>, transform_indices = @transform_6, window_bounds = array<i64: 1, 512>}, {pipeline_mode = #tpu.pipeline_mode<synchronous>, transform_indices = @transform_7, window_bounds = array<i64: 1, 512>}, {pipeline_mode = #tpu.pipeline_mode<synchronous>, transform_indices = @transform_8, window_bounds = array<i64: 1, 512>}, {pipeline_mode = #tpu.pipeline_mode<synchronous>, transform_indices = @transform_9, window_bounds = array<i64: 512, 256>}, {pipeline_mode = #tpu.pipeline_mode<synchronous>, transform_indices = @transform_10, window_bounds = array<i64: 1, 256>}, {pipeline_mode = #tpu.pipeline_mode<synchronous>, transform_indices = @transform_11, window_bounds = array<i64: 1, 256>}, {pipeline_mode = #tpu.pipeline_mode<synchronous>, transform_indices = @transform_12, window_bounds = array<i64: 1, 256>}, {pipeline_mode = #tpu.pipeline_mode<synchronous>, transform_indices = @transform_13, window_bounds = array<i64: 256, 128>}, {pipeline_mode = #tpu.pipeline_mode<synchronous>, transform_indices = @transform_14, window_bounds = array<i64: 1, 128>}, {pipeline_mode = #tpu.pipeline_mode<synchronous>, transform_indices = @transform_15, window_bounds = array<i64: 128, 128>}, {pipeline_mode = #tpu.pipeline_mode<synchronous>, transform_indices = @transform_16, window_bounds = array<i64: 1, 128>}, {transform_indices = @transform_17, window_bounds = array<i64: 8, 128>}]} {
    %c0 = arith.constant 0 : index
    %c0_0 = arith.constant 0 : index
    %0 = vector.load %arg1[%c0, %c0_0] : memref<8x128xf32, #tpu.memory_space<vmem>>, vector<8x128xf32>
    %1 = arith.truncf %0 : vector<8x128xf32> to vector<8x128xbf16>
    %c0_1 = arith.constant 0 : index
    %c0_2 = arith.constant 0 : index
    %2 = vector.load %arg2[%c0_1, %c0_2] : memref<128x512xbf16, #tpu.memory_space<vmem>>, vector<128x512xbf16>
    %cst = arith.constant dense<0.000000e+00> : vector<8x512xf32>
    %3 = tpu.matmul %1, %2, %cst {dimension_numbers = #tpu.dot_dimension_numbers<[1], [0], [0], [1], [0, 0, 1, 1], [], []>} : vector<8x128xbf16>, vector<128x512xbf16>, vector<8x512xf32> -> vector<8x512xf32>
    %c0_3 = arith.constant 0 : index
    %c0_4 = arith.constant 0 : index
    %4 = vector.load %arg3[%c0_3, %c0_4] : memref<1x512xf32, #tpu.memory_space<vmem>>, vector<1x512xf32>
    %5 = vector.broadcast %4 : vector<1x512xf32> to vector<8x512xf32>
    %6 = arith.addf %3, %5 : vector<8x512xf32>
    %cst_5 = arith.constant dense<0.000000e+00> : vector<8xf32>
    %7 = vector.multi_reduction <add>, %6, %cst_5 [1] : vector<8x512xf32> to vector<8xf32>
    %8 = vector.shape_cast %7 : vector<8xf32> to vector<8x1xf32>
    %cst_6 = arith.constant 5.120000e+02 : f32
    %9 = vector.broadcast %cst_6 : f32 to vector<8x1xf32>
    %10 = arith.divf %8, %9 : vector<8x1xf32>
    %11 = arith.mulf %6, %6 : vector<8x512xf32>
    %cst_7 = arith.constant dense<0.000000e+00> : vector<8xf32>
    %12 = vector.multi_reduction <add>, %11, %cst_7 [1] : vector<8x512xf32> to vector<8xf32>
    %13 = vector.shape_cast %12 : vector<8xf32> to vector<8x1xf32>
    %cst_8 = arith.constant 5.120000e+02 : f32
    %14 = vector.broadcast %cst_8 : f32 to vector<8x1xf32>
    %15 = arith.divf %13, %14 : vector<8x1xf32>
    %16 = arith.mulf %10, %10 : vector<8x1xf32>
    %17 = arith.subf %15, %16 : vector<8x1xf32>
    %cst_9 = arith.constant 0.000000e+00 : f32
    %18 = vector.broadcast %cst_9 : f32 to vector<8x1xf32>
    %19 = arith.maximumf %17, %18 : vector<8x1xf32>
    %20 = vector.broadcast %10 : vector<8x1xf32> to vector<8x512xf32>
    %21 = arith.subf %6, %20 : vector<8x512xf32>
    %cst_10 = arith.constant 9.99999974E-6 : f32
    %22 = vector.broadcast %cst_10 : f32 to vector<8x1xf32>
    %23 = arith.addf %19, %22 : vector<8x1xf32>
    %24 = math.rsqrt %23 : vector<8x1xf32>
    %25 = vector.broadcast %24 : vector<8x1xf32> to vector<8x512xf32>
    %26 = arith.mulf %21, %25 : vector<8x512xf32>
    %c0_11 = arith.constant 0 : index
    %c0_12 = arith.constant 0 : index
    %27 = vector.load %arg4[%c0_11, %c0_12] : memref<1x512xf32, #tpu.memory_space<vmem>>, vector<1x512xf32>
    %28 = vector.broadcast %27 : vector<1x512xf32> to vector<8x512xf32>
    %29 = arith.mulf %26, %28 : vector<8x512xf32>
    %c0_13 = arith.constant 0 : index
    %c0_14 = arith.constant 0 : index
    %30 = vector.load %arg5[%c0_13, %c0_14] : memref<1x512xf32, #tpu.memory_space<vmem>>, vector<1x512xf32>
    %31 = vector.broadcast %30 : vector<1x512xf32> to vector<8x512xf32>
    %32 = arith.addf %29, %31 : vector<8x512xf32>
    %cst_15 = arith.constant 0.000000e+00 : f32
    %33 = vector.broadcast %cst_15 : f32 to vector<8x512xf32>
    %34 = arith.maximumf %32, %33 : vector<8x512xf32>
    %35 = arith.truncf %34 : vector<8x512xf32> to vector<8x512xbf16>
    %c0_16 = arith.constant 0 : index
    %c0_17 = arith.constant 0 : index
    %36 = vector.load %arg6[%c0_16, %c0_17] : memref<512x512xbf16, #tpu.memory_space<vmem>>, vector<512x512xbf16>
    %cst_18 = arith.constant dense<0.000000e+00> : vector<8x512xf32>
    %37 = tpu.matmul %35, %36, %cst_18 {dimension_numbers = #tpu.dot_dimension_numbers<[1], [0], [0], [1], [0, 0, 1, 1], [], []>} : vector<8x512xbf16>, vector<512x512xbf16>, vector<8x512xf32> -> vector<8x512xf32>
    %c0_19 = arith.constant 0 : index
    %c0_20 = arith.constant 0 : index
    %38 = vector.load %arg7[%c0_19, %c0_20] : memref<1x512xf32, #tpu.memory_space<vmem>>, vector<1x512xf32>
    %39 = vector.broadcast %38 : vector<1x512xf32> to vector<8x512xf32>
    %40 = arith.addf %37, %39 : vector<8x512xf32>
    %cst_21 = arith.constant dense<0.000000e+00> : vector<8xf32>
    %41 = vector.multi_reduction <add>, %40, %cst_21 [1] : vector<8x512xf32> to vector<8xf32>
    %42 = vector.shape_cast %41 : vector<8xf32> to vector<8x1xf32>
    %cst_22 = arith.constant 5.120000e+02 : f32
    %43 = vector.broadcast %cst_22 : f32 to vector<8x1xf32>
    %44 = arith.divf %42, %43 : vector<8x1xf32>
    %45 = arith.mulf %40, %40 : vector<8x512xf32>
    %cst_23 = arith.constant dense<0.000000e+00> : vector<8xf32>
    %46 = vector.multi_reduction <add>, %45, %cst_23 [1] : vector<8x512xf32> to vector<8xf32>
    %47 = vector.shape_cast %46 : vector<8xf32> to vector<8x1xf32>
    %cst_24 = arith.constant 5.120000e+02 : f32
    %48 = vector.broadcast %cst_24 : f32 to vector<8x1xf32>
    %49 = arith.divf %47, %48 : vector<8x1xf32>
    %50 = arith.mulf %44, %44 : vector<8x1xf32>
    %51 = arith.subf %49, %50 : vector<8x1xf32>
    %cst_25 = arith.constant 0.000000e+00 : f32
    %52 = vector.broadcast %cst_25 : f32 to vector<8x1xf32>
    %53 = arith.maximumf %51, %52 : vector<8x1xf32>
    %54 = vector.broadcast %44 : vector<8x1xf32> to vector<8x512xf32>
    %55 = arith.subf %40, %54 : vector<8x512xf32>
    %cst_26 = arith.constant 9.99999974E-6 : f32
    %56 = vector.broadcast %cst_26 : f32 to vector<8x1xf32>
    %57 = arith.addf %53, %56 : vector<8x1xf32>
    %58 = math.rsqrt %57 : vector<8x1xf32>
    %59 = vector.broadcast %58 : vector<8x1xf32> to vector<8x512xf32>
    %60 = arith.mulf %55, %59 : vector<8x512xf32>
    %c0_27 = arith.constant 0 : index
    %c0_28 = arith.constant 0 : index
    %61 = vector.load %arg8[%c0_27, %c0_28] : memref<1x512xf32, #tpu.memory_space<vmem>>, vector<1x512xf32>
    %62 = vector.broadcast %61 : vector<1x512xf32> to vector<8x512xf32>
    %63 = arith.mulf %60, %62 : vector<8x512xf32>
    %c0_29 = arith.constant 0 : index
    %c0_30 = arith.constant 0 : index
    %64 = vector.load %arg9[%c0_29, %c0_30] : memref<1x512xf32, #tpu.memory_space<vmem>>, vector<1x512xf32>
    %65 = vector.broadcast %64 : vector<1x512xf32> to vector<8x512xf32>
    %66 = arith.addf %63, %65 : vector<8x512xf32>
    %cst_31 = arith.constant 0.000000e+00 : f32
    %67 = vector.broadcast %cst_31 : f32 to vector<8x512xf32>
    %68 = arith.maximumf %66, %67 : vector<8x512xf32>
    %69 = arith.truncf %68 : vector<8x512xf32> to vector<8x512xbf16>
    %c0_32 = arith.constant 0 : index
    %c0_33 = arith.constant 0 : index
    %70 = vector.load %arg10[%c0_32, %c0_33] : memref<512x256xbf16, #tpu.memory_space<vmem>>, vector<512x256xbf16>
    %cst_34 = arith.constant dense<0.000000e+00> : vector<8x256xf32>
    %71 = tpu.matmul %69, %70, %cst_34 {dimension_numbers = #tpu.dot_dimension_numbers<[1], [0], [0], [1], [0, 0, 1, 1], [], []>} : vector<8x512xbf16>, vector<512x256xbf16>, vector<8x256xf32> -> vector<8x256xf32>
    %c0_35 = arith.constant 0 : index
    %c0_36 = arith.constant 0 : index
    %72 = vector.load %arg11[%c0_35, %c0_36] : memref<1x256xf32, #tpu.memory_space<vmem>>, vector<1x256xf32>
    %73 = vector.broadcast %72 : vector<1x256xf32> to vector<8x256xf32>
    %74 = arith.addf %71, %73 : vector<8x256xf32>
    %cst_37 = arith.constant dense<0.000000e+00> : vector<8xf32>
    %75 = vector.multi_reduction <add>, %74, %cst_37 [1] : vector<8x256xf32> to vector<8xf32>
    %76 = vector.shape_cast %75 : vector<8xf32> to vector<8x1xf32>
    %cst_38 = arith.constant 2.560000e+02 : f32
    %77 = vector.broadcast %cst_38 : f32 to vector<8x1xf32>
    %78 = arith.divf %76, %77 : vector<8x1xf32>
    %79 = arith.mulf %74, %74 : vector<8x256xf32>
    %cst_39 = arith.constant dense<0.000000e+00> : vector<8xf32>
    %80 = vector.multi_reduction <add>, %79, %cst_39 [1] : vector<8x256xf32> to vector<8xf32>
    %81 = vector.shape_cast %80 : vector<8xf32> to vector<8x1xf32>
    %cst_40 = arith.constant 2.560000e+02 : f32
    %82 = vector.broadcast %cst_40 : f32 to vector<8x1xf32>
    %83 = arith.divf %81, %82 : vector<8x1xf32>
    %84 = arith.mulf %78, %78 : vector<8x1xf32>
    %85 = arith.subf %83, %84 : vector<8x1xf32>
    %cst_41 = arith.constant 0.000000e+00 : f32
    %86 = vector.broadcast %cst_41 : f32 to vector<8x1xf32>
    %87 = arith.maximumf %85, %86 : vector<8x1xf32>
    %88 = vector.broadcast %78 : vector<8x1xf32> to vector<8x256xf32>
    %89 = arith.subf %74, %88 : vector<8x256xf32>
    %cst_42 = arith.constant 9.99999974E-6 : f32
    %90 = vector.broadcast %cst_42 : f32 to vector<8x1xf32>
    %91 = arith.addf %87, %90 : vector<8x1xf32>
    %92 = math.rsqrt %91 : vector<8x1xf32>
    %93 = vector.broadcast %92 : vector<8x1xf32> to vector<8x256xf32>
    %94 = arith.mulf %89, %93 : vector<8x256xf32>
    %c0_43 = arith.constant 0 : index
    %c0_44 = arith.constant 0 : index
    %95 = vector.load %arg12[%c0_43, %c0_44] : memref<1x256xf32, #tpu.memory_space<vmem>>, vector<1x256xf32>
    %96 = vector.broadcast %95 : vector<1x256xf32> to vector<8x256xf32>
    %97 = arith.mulf %94, %96 : vector<8x256xf32>
    %c0_45 = arith.constant 0 : index
    %c0_46 = arith.constant 0 : index
    %98 = vector.load %arg13[%c0_45, %c0_46] : memref<1x256xf32, #tpu.memory_space<vmem>>, vector<1x256xf32>
    %99 = vector.broadcast %98 : vector<1x256xf32> to vector<8x256xf32>
    %100 = arith.addf %97, %99 : vector<8x256xf32>
    %cst_47 = arith.constant 0.000000e+00 : f32
    %101 = vector.broadcast %cst_47 : f32 to vector<8x256xf32>
    %102 = arith.maximumf %100, %101 : vector<8x256xf32>
    %103 = arith.truncf %102 : vector<8x256xf32> to vector<8x256xbf16>
    %c0_48 = arith.constant 0 : index
    %c0_49 = arith.constant 0 : index
    %104 = vector.load %arg14[%c0_48, %c0_49] : memref<256x128xbf16, #tpu.memory_space<vmem>>, vector<256x128xbf16>
    %cst_50 = arith.constant dense<0.000000e+00> : vector<8x128xf32>
    %105 = tpu.matmul %103, %104, %cst_50 {dimension_numbers = #tpu.dot_dimension_numbers<[1], [0], [0], [1], [0, 0, 1, 1], [], []>} : vector<8x256xbf16>, vector<256x128xbf16>, vector<8x128xf32> -> vector<8x128xf32>
    %c0_51 = arith.constant 0 : index
    %c0_52 = arith.constant 0 : index
    %106 = vector.load %arg15[%c0_51, %c0_52] : memref<1x128xf32, #tpu.memory_space<vmem>>, vector<1x128xf32>
    %107 = vector.broadcast %106 : vector<1x128xf32> to vector<8x128xf32>
    %108 = arith.addf %105, %107 : vector<8x128xf32>
    %cst_53 = arith.constant 0.000000e+00 : f32
    %109 = vector.broadcast %cst_53 : f32 to vector<8x128xf32>
    %110 = arith.maximumf %108, %109 : vector<8x128xf32>
    %111 = arith.truncf %110 : vector<8x128xf32> to vector<8x128xbf16>
    %c0_54 = arith.constant 0 : index
    %c0_55 = arith.constant 0 : index
    %112 = vector.load %arg16[%c0_54, %c0_55] : memref<128x128xbf16, #tpu.memory_space<vmem>>, vector<128x128xbf16>
    %cst_56 = arith.constant dense<0.000000e+00> : vector<8x128xf32>
    %113 = tpu.matmul %111, %112, %cst_56 {dimension_numbers = #tpu.dot_dimension_numbers<[1], [0], [0], [1], [0, 0, 1, 1], [], []>} : vector<8x128xbf16>, vector<128x128xbf16>, vector<8x128xf32> -> vector<8x128xf32>
    %c0_57 = arith.constant 0 : index
    %c0_58 = arith.constant 0 : index
    %114 = vector.load %arg17[%c0_57, %c0_58] : memref<1x128xf32, #tpu.memory_space<vmem>>, vector<1x128xf32>
    %115 = vector.broadcast %114 : vector<1x128xf32> to vector<8x128xf32>
    %116 = arith.addf %113, %115 : vector<8x128xf32>
    %c0_59 = arith.constant 0 : index
    %c0_60 = arith.constant 0 : index
    %117 = vector.load %arg18[%c0_59, %c0_60] : memref<8x128xf32, #tpu.memory_space<vmem>>, vector<8x128xf32>
    tpu.vector_store %arg18[%c0_59, %c0_60], %116 {strides = array<i32>} : memref<8x128xf32, #tpu.memory_space<vmem>>, vector<8x128xf32>,
    return
  }
  func.func @transform_0(%arg0: i32) -> (i32, i32) {
    %c0_i32 = arith.constant 0 : i32
    %c0_i32_0 = arith.constant 0 : i32
    return %arg0, %c0_i32 : i32, i32
  }
  func.func @transform_1(%arg0: i32) -> (i32, i32) {
    %c0_i32 = arith.constant 0 : i32
    %c0_i32_0 = arith.constant 0 : i32
    %c0_i32_1 = arith.constant 0 : i32
    return %c0_i32, %c0_i32_0 : i32, i32
  }
  func.func @transform_2(%arg0: i32) -> (i32, i32) {
    %c0_i32 = arith.constant 0 : i32
    %c0_i32_0 = arith.constant 0 : i32
    %c0_i32_1 = arith.constant 0 : i32
    return %c0_i32, %c0_i32_0 : i32, i32
  }
  func.func @transform_3(%arg0: i32) -> (i32, i32) {
    %c0_i32 = arith.constant 0 : i32
    %c0_i32_0 = arith.constant 0 : i32
    %c0_i32_1 = arith.constant 0 : i32
    return %c0_i32, %c0_i32_0 : i32, i32
  }
  func.func @transform_4(%arg0: i32) -> (i32, i32) {
    %c0_i32 = arith.constant 0 : i32
    %c0_i32_0 = arith.constant 0 : i32
    %c0_i32_1 = arith.constant 0 : i32
    return %c0_i32, %c0_i32_0 : i32, i32
  }
  func.func @transform_5(%arg0: i32) -> (i32, i32) {
    %c0_i32 = arith.constant 0 : i32
    %c0_i32_0 = arith.constant 0 : i32
    %c0_i32_1 = arith.constant 0 : i32
    return %c0_i32, %c0_i32_0 : i32, i32
  }
  func.func @transform_6(%arg0: i32) -> (i32, i32) {
    %c0_i32 = arith.constant 0 : i32
    %c0_i32_0 = arith.constant 0 : i32
    %c0_i32_1 = arith.constant 0 : i32
    return %c0_i32, %c0_i32_0 : i32, i32
  }
  func.func @transform_7(%arg0: i32) -> (i32, i32) {
    %c0_i32 = arith.constant 0 : i32
    %c0_i32_0 = arith.constant 0 : i32
    %c0_i32_1 = arith.constant 0 : i32
    return %c0_i32, %c0_i32_0 : i32, i32
  }
  func.func @transform_8(%arg0: i32) -> (i32, i32) {
    %c0_i32 = arith.constant 0 : i32
    %c0_i32_0 = arith.constant 0 : i32
    %c0_i32_1 = arith.constant 0 : i32
    return %c0_i32, %c0_i32_0 : i32, i32
  }
  func.func @transform_9(%arg0: i32) -> (i32, i32) {
    %c0_i32 = arith.constant 0 : i32
    %c0_i32_0 = arith.constant 0 : i32
    %c0_i32_1 = arith.constant 0 : i32
    return %c0_i32, %c0_i32_0 : i32, i32
  }
  func.func @transform_10(%arg0: i32) -> (i32, i32) {
    %c0_i32 = arith.constant 0 : i32
    %c0_i32_0 = arith.constant 0 : i32
    %c0_i32_1 = arith.constant 0 : i32
    return %c0_i32, %c0_i32_0 : i32, i32
  }
  func.func @transform_11(%arg0: i32) -> (i32, i32) {
    %c0_i32 = arith.constant 0 : i32
    %c0_i32_0 = arith.constant 0 : i32
    %c0_i32_1 = arith.constant 0 : i32
    return %c0_i32, %c0_i32_0 : i32, i32
  }
  func.func @transform_12(%arg0: i32) -> (i32, i32) {
    %c0_i32 = arith.constant 0 : i32
    %c0_i32_0 = arith.constant 0 : i32
    %c0_i32_1 = arith.constant 0 : i32
    return %c0_i32, %c0_i32_0 : i32, i32
  }
  func.func @transform_13(%arg0: i32) -> (i32, i32) {
    %c0_i32 = arith.constant 0 : i32
    %c0_i32_0 = arith.constant 0 : i32
    %c0_i32_1 = arith.constant 0 : i32
    return %c0_i32, %c0_i32_0 : i32, i32
  }
  func.func @transform_14(%arg0: i32) -> (i32, i32) {
    %c0_i32 = arith.constant 0 : i32
    %c0_i32_0 = arith.constant 0 : i32
    %c0_i32_1 = arith.constant 0 : i32
    return %c0_i32, %c0_i32_0 : i32, i32
  }
  func.func @transform_15(%arg0: i32) -> (i32, i32) {
    %c0_i32 = arith.constant 0 : i32
    %c0_i32_0 = arith.constant 0 : i32
    %c0_i32_1 = arith.constant 0 : i32
    return %c0_i32, %c0_i32_0 : i32, i32
  }
  func.func @transform_16(%arg0: i32) -> (i32, i32) {
    %c0_i32 = arith.constant 0 : i32
    %c0_i32_0 = arith.constant 0 : i32
    %c0_i32_1 = arith.constant 0 : i32
    return %c0_i32, %c0_i32_0 : i32, i32
  }
  func.func @transform_17(%arg0: i32) -> (i32, i32) {
    %c0_i32 = arith.constant 0 : i32
    %c0_i32_0 = arith.constant 0 : i32
    return %arg0, %c0_i32 : i32, i32
  }
}

module attributes {stable_mosaic.version = 11 : i64} {
  func.func @actor_critic_kernel(%arg0: i32, %arg1: memref<8x128xf32, #tpu.memory_space<vmem>>, %arg2: memref<128x512xbf16, #tpu.memory_space<vmem>>, %arg3: memref<1x512xf32, #tpu.memory_space<vmem>>, %arg4: memref<1x512xf32, #tpu.memory_space<vmem>>, %arg5: memref<1x512xf32, #tpu.memory_space<vmem>>, %arg6: memref<512x512xbf16, #tpu.memory_space<vmem>>, %arg7: memref<1x512xf32, #tpu.memory_space<vmem>>, %arg8: memref<1x512xf32, #tpu.memory_space<vmem>>, %arg9: memref<1x512xf32, #tpu.memory_space<vmem>>, %arg10: memref<512x256xbf16, #tpu.memory_space<vmem>>, %arg11: memref<1x256xf32, #tpu.memory_space<vmem>>, %arg12: memref<1x256xf32, #tpu.memory_space<vmem>>, %arg13: memref<1x256xf32, #tpu.memory_space<vmem>>, %arg14: memref<256x128xbf16, #tpu.memory_space<vmem>>, %arg15: memref<1x128xf32, #tpu.memory_space<vmem>>, %arg16: memref<128x128xbf16, #tpu.memory_space<vmem>>, %arg17: memref<1x128xf32, #tpu.memory_space<vmem>>, %arg18: memref<8x128xf32, #tpu.memory_space<vmem>>) attributes {dimension_semantics = [#tpu.dimension_semantics<parallel>], iteration_bounds = array<i64: 1>, scalar_prefetch = 0 : i64, scratch_operands = 0 : i64, tpu.core_type = #tpu.core_type<tc>, window_params = [{transform_indices = @transform_0, window_bounds = array<i64: 8, 128>}, {pipeline_mode = #tpu.pipeline_mode<synchronous>, transform_indices = @transform_1, window_bounds = array<i64: 128, 512>}, {pipeline_mode = #tpu.pipeline_mode<synchronous>, transform_indices = @transform_2, window_bounds = array<i64: 1, 512>}, {pipeline_mode = #tpu.pipeline_mode<synchronous>, transform_indices = @transform_3, window_bounds = array<i64: 1, 512>}, {pipeline_mode = #tpu.pipeline_mode<synchronous>, transform_indices = @transform_4, window_bounds = array<i64: 1, 512>}, {pipeline_mode = #tpu.pipeline_mode<synchronous>, transform_indices = @transform_5, window_bounds = array<i64: 512, 512>}, {pipeline_mode = #tpu.pipeline_mode<synchronous>, transform_indices = @transform_6, window_bounds = array<i64: 1, 512>}, {pipeline_mode = #tpu.pipeline_mode<synchronous>, transform_indices = @transform_7, window_bounds = array<i64: 1, 512>}, {pipeline_mode = #tpu.pipeline_mode<synchronous>, transform_indices = @transform_8, window_bounds = array<i64: 1, 512>}, {pipeline_mode = #tpu.pipeline_mode<synchronous>, transform_indices = @transform_9, window_bounds = array<i64: 512, 256>}, {pipeline_mode = #tpu.pipeline_mode<synchronous>, transform_indices = @transform_10, window_bounds = array<i64: 1, 256>}, {pipeline_mode = #tpu.pipeline_mode<synchronous>, transform_indices = @transform_11, window_bounds = array<i64: 1, 256>}, {pipeline_mode = #tpu.pipeline_mode<synchronous>, transform_indices = @transform_12, window_bounds = array<i64: 1, 256>}, {pipeline_mode = #tpu.pipeline_mode<synchronous>, transform_indices = @transform_13, window_bounds = array<i64: 256, 128>}, {pipeline_mode = #tpu.pipeline_mode<synchronous>, transform_indices = @transform_14, window_bounds = array<i64: 1, 128>}, {pipeline_mode = #tpu.pipeline_mode<synchronous>, transform_indices = @transform_15, window_bounds = array<i64: 128, 128>}, {pipeline_mode = #tpu.pipeline_mode<synchronous>, transform_indices = @transform_16, window_bounds = array<i64: 1, 128>}, {transform_indices = @transform_17, window_bounds = array<i64: 8, 128>}]} {
    %c0 = arith.constant 0 : index
    %c0_0 = arith.constant 0 : index
    %0 = vector.load %arg1[%c0, %c0_0] : memref<8x128xf32, #tpu.memory_space<vmem>>, vector<8x128xf32>
    %1 = arith.truncf %0 : vector<8x128xf32> to vector<8x128xbf16>
    %c0_1 = arith.constant 0 : index
    %c0_2 = arith.constant 0 : index
    %2 = vector.load %arg2[%c0_1, %c0_2] : memref<128x512xbf16, #tpu.memory_space<vmem>>, vector<128x512xbf16>
    %cst = arith.constant dense<0.000000e+00> : vector<8x512xf32>
    %3 = tpu.matmul %1, %2, %cst {dimension_numbers = #tpu.dot_dimension_numbers<[1], [0], [0], [1], [0, 0, 1, 1], [], []>} : vector<8x128xbf16>, vector<128x512xbf16>, vector<8x512xf32> -> vector<8x512xf32>
    %c0_3 = arith.constant 0 : index
    %c0_4 = arith.constant 0 : index
    %4 = vector.load %arg3[%c0_3, %c0_4] : memref<1x512xf32, #tpu.memory_space<vmem>>, vector<1x512xf32>
    %5 = vector.broadcast %4 : vector<1x512xf32> to vector<8x512xf32>
    %6 = arith.addf %3, %5 : vector<8x512xf32>
    %cst_5 = arith.constant dense<0.000000e+00> : vector<8xf32>
    %7 = vector.multi_reduction <add>, %6, %cst_5 [1] : vector<8x512xf32> to vector<8xf32>
    %8 = vector.shape_cast %7 : vector<8xf32> to vector<8x1xf32>
    %cst_6 = arith.constant 5.120000e+02 : f32
    %9 = vector.broadcast %cst_6 : f32 to vector<8x1xf32>
    %10 = arith.divf %8, %9 : vector<8x1xf32>
    %11 = arith.mulf %6, %6 : vector<8x512xf32>
    %cst_7 = arith.constant dense<0.000000e+00> : vector<8xf32>
    %12 = vector.multi_reduction <add>, %11, %cst_7 [1] : vector<8x512xf32> to vector<8xf32>
    %13 = vector.shape_cast %12 : vector<8xf32> to vector<8x1xf32>
    %cst_8 = arith.constant 5.120000e+02 : f32
    %14 = vector.broadcast %cst_8 : f32 to vector<8x1xf32>
    %15 = arith.divf %13, %14 : vector<8x1xf32>
    %16 = arith.mulf %10, %10 : vector<8x1xf32>
    %17 = arith.subf %15, %16 : vector<8x1xf32>
    %cst_9 = arith.constant 0.000000e+00 : f32
    %18 = vector.broadcast %cst_9 : f32 to vector<8x1xf32>
    %19 = arith.maximumf %17, %18 : vector<8x1xf32>
    %20 = vector.broadcast %10 : vector<8x1xf32> to vector<8x512xf32>
    %21 = arith.subf %6, %20 : vector<8x512xf32>
    %cst_10 = arith.constant 9.99999974E-6 : f32
    %22 = vector.broadcast %cst_10 : f32 to vector<8x1xf32>
    %23 = arith.addf %19, %22 : vector<8x1xf32>
    %24 = math.rsqrt %23 : vector<8x1xf32>
    %25 = vector.broadcast %24 : vector<8x1xf32> to vector<8x512xf32>
    %26 = arith.mulf %21, %25 : vector<8x512xf32>
    %c0_11 = arith.constant 0 : index
    %c0_12 = arith.constant 0 : index
    %27 = vector.load %arg4[%c0_11, %c0_12] : memref<1x512xf32, #tpu.memory_space<vmem>>, vector<1x512xf32>
    %28 = vector.broadcast %27 : vector<1x512xf32> to vector<8x512xf32>
    %29 = arith.mulf %26, %28 : vector<8x512xf32>
    %c0_13 = arith.constant 0 : index
    %c0_14 = arith.constant 0 : index
    %30 = vector.load %arg5[%c0_13, %c0_14] : memref<1x512xf32, #tpu.memory_space<vmem>>, vector<1x512xf32>
    %31 = vector.broadcast %30 : vector<1x512xf32> to vector<8x512xf32>
    %32 = arith.addf %29, %31 : vector<8x512xf32>
    %cst_15 = arith.constant 0.000000e+00 : f32
    %33 = vector.broadcast %cst_15 : f32 to vector<8x512xf32>
    %34 = arith.maximumf %32, %33 : vector<8x512xf32>
    %35 = arith.truncf %34 : vector<8x512xf32> to vector<8x512xbf16>
    %c0_16 = arith.constant 0 : index
    %c0_17 = arith.constant 0 : index
    %36 = vector.load %arg6[%c0_16, %c0_17] : memref<512x512xbf16, #tpu.memory_space<vmem>>, vector<512x512xbf16>
    %cst_18 = arith.constant dense<0.000000e+00> : vector<8x512xf32>
    %37 = tpu.matmul %35, %36, %cst_18 {dimension_numbers = #tpu.dot_dimension_numbers<[1], [0], [0], [1], [0, 0, 1, 1], [], []>} : vector<8x512xbf16>, vector<512x512xbf16>, vector<8x512xf32> -> vector<8x512xf32>
    %c0_19 = arith.constant 0 : index
    %c0_20 = arith.constant 0 : index
    %38 = vector.load %arg7[%c0_19, %c0_20] : memref<1x512xf32, #tpu.memory_space<vmem>>, vector<1x512xf32>
    %39 = vector.broadcast %38 : vector<1x512xf32> to vector<8x512xf32>
    %40 = arith.addf %37, %39 : vector<8x512xf32>
    %cst_21 = arith.constant dense<0.000000e+00> : vector<8xf32>
    %41 = vector.multi_reduction <add>, %40, %cst_21 [1] : vector<8x512xf32> to vector<8xf32>
    %42 = vector.shape_cast %41 : vector<8xf32> to vector<8x1xf32>
    %cst_22 = arith.constant 5.120000e+02 : f32
    %43 = vector.broadcast %cst_22 : f32 to vector<8x1xf32>
    %44 = arith.divf %42, %43 : vector<8x1xf32>
    %45 = arith.mulf %40, %40 : vector<8x512xf32>
    %cst_23 = arith.constant dense<0.000000e+00> : vector<8xf32>
    %46 = vector.multi_reduction <add>, %45, %cst_23 [1] : vector<8x512xf32> to vector<8xf32>
    %47 = vector.shape_cast %46 : vector<8xf32> to vector<8x1xf32>
    %cst_24 = arith.constant 5.120000e+02 : f32
    %48 = vector.broadcast %cst_24 : f32 to vector<8x1xf32>
    %49 = arith.divf %47, %48 : vector<8x1xf32>
    %50 = arith.mulf %44, %44 : vector<8x1xf32>
    %51 = arith.subf %49, %50 : vector<8x1xf32>
    %cst_25 = arith.constant 0.000000e+00 : f32
    %52 = vector.broadcast %cst_25 : f32 to vector<8x1xf32>
    %53 = arith.maximumf %51, %52 : vector<8x1xf32>
    %54 = vector.broadcast %44 : vector<8x1xf32> to vector<8x512xf32>
    %55 = arith.subf %40, %54 : vector<8x512xf32>
    %cst_26 = arith.constant 9.99999974E-6 : f32
    %56 = vector.broadcast %cst_26 : f32 to vector<8x1xf32>
    %57 = arith.addf %53, %56 : vector<8x1xf32>
    %58 = math.rsqrt %57 : vector<8x1xf32>
    %59 = vector.broadcast %58 : vector<8x1xf32> to vector<8x512xf32>
    %60 = arith.mulf %55, %59 : vector<8x512xf32>
    %c0_27 = arith.constant 0 : index
    %c0_28 = arith.constant 0 : index
    %61 = vector.load %arg8[%c0_27, %c0_28] : memref<1x512xf32, #tpu.memory_space<vmem>>, vector<1x512xf32>
    %62 = vector.broadcast %61 : vector<1x512xf32> to vector<8x512xf32>
    %63 = arith.mulf %60, %62 : vector<8x512xf32>
    %c0_29 = arith.constant 0 : index
    %c0_30 = arith.constant 0 : index
    %64 = vector.load %arg9[%c0_29, %c0_30] : memref<1x512xf32, #tpu.memory_space<vmem>>, vector<1x512xf32>
    %65 = vector.broadcast %64 : vector<1x512xf32> to vector<8x512xf32>
    %66 = arith.addf %63, %65 : vector<8x512xf32>
    %cst_31 = arith.constant 0.000000e+00 : f32
    %67 = vector.broadcast %cst_31 : f32 to vector<8x512xf32>
    %68 = arith.maximumf %66, %67 : vector<8x512xf32>
    %69 = arith.truncf %68 : vector<8x512xf32> to vector<8x512xbf16>
    %c0_32 = arith.constant 0 : index
    %c0_33 = arith.constant 0 : index
    %70 = vector.load %arg10[%c0_32, %c0_33] : memref<512x256xbf16, #tpu.memory_space<vmem>>, vector<512x256xbf16>
    %cst_34 = arith.constant dense<0.000000e+00> : vector<8x256xf32>
    %71 = tpu.matmul %69, %70, %cst_34 {dimension_numbers = #tpu.dot_dimension_numbers<[1], [0], [0], [1], [0, 0, 1, 1], [], []>} : vector<8x512xbf16>, vector<512x256xbf16>, vector<8x256xf32> -> vector<8x256xf32>
    %c0_35 = arith.constant 0 : index
    %c0_36 = arith.constant 0 : index
    %72 = vector.load %arg11[%c0_35, %c0_36] : memref<1x256xf32, #tpu.memory_space<vmem>>, vector<1x256xf32>
    %73 = vector.broadcast %72 : vector<1x256xf32> to vector<8x256xf32>
    %74 = arith.addf %71, %73 : vector<8x256xf32>
    %cst_37 = arith.constant dense<0.000000e+00> : vector<8xf32>
    %75 = vector.multi_reduction <add>, %74, %cst_37 [1] : vector<8x256xf32> to vector<8xf32>
    %76 = vector.shape_cast %75 : vector<8xf32> to vector<8x1xf32>
    %cst_38 = arith.constant 2.560000e+02 : f32
    %77 = vector.broadcast %cst_38 : f32 to vector<8x1xf32>
    %78 = arith.divf %76, %77 : vector<8x1xf32>
    %79 = arith.mulf %74, %74 : vector<8x256xf32>
    %cst_39 = arith.constant dense<0.000000e+00> : vector<8xf32>
    %80 = vector.multi_reduction <add>, %79, %cst_39 [1] : vector<8x256xf32> to vector<8xf32>
    %81 = vector.shape_cast %80 : vector<8xf32> to vector<8x1xf32>
    %cst_40 = arith.constant 2.560000e+02 : f32
    %82 = vector.broadcast %cst_40 : f32 to vector<8x1xf32>
    %83 = arith.divf %81, %82 : vector<8x1xf32>
    %84 = arith.mulf %78, %78 : vector<8x1xf32>
    %85 = arith.subf %83, %84 : vector<8x1xf32>
    %cst_41 = arith.constant 0.000000e+00 : f32
    %86 = vector.broadcast %cst_41 : f32 to vector<8x1xf32>
    %87 = arith.maximumf %85, %86 : vector<8x1xf32>
    %88 = vector.broadcast %78 : vector<8x1xf32> to vector<8x256xf32>
    %89 = arith.subf %74, %88 : vector<8x256xf32>
    %cst_42 = arith.constant 9.99999974E-6 : f32
    %90 = vector.broadcast %cst_42 : f32 to vector<8x1xf32>
    %91 = arith.addf %87, %90 : vector<8x1xf32>
    %92 = math.rsqrt %91 : vector<8x1xf32>
    %93 = vector.broadcast %92 : vector<8x1xf32> to vector<8x256xf32>
    %94 = arith.mulf %89, %93 : vector<8x256xf32>
    %c0_43 = arith.constant 0 : index
    %c0_44 = arith.constant 0 : index
    %95 = vector.load %arg12[%c0_43, %c0_44] : memref<1x256xf32, #tpu.memory_space<vmem>>, vector<1x256xf32>
    %96 = vector.broadcast %95 : vector<1x256xf32> to vector<8x256xf32>
    %97 = arith.mulf %94, %96 : vector<8x256xf32>
    %c0_45 = arith.constant 0 : index
    %c0_46 = arith.constant 0 : index
    %98 = vector.load %arg13[%c0_45, %c0_46] : memref<1x256xf32, #tpu.memory_space<vmem>>, vector<1x256xf32>
    %99 = vector.broadcast %98 : vector<1x256xf32> to vector<8x256xf32>
    %100 = arith.addf %97, %99 : vector<8x256xf32>
    %cst_47 = arith.constant 0.000000e+00 : f32
    %101 = vector.broadcast %cst_47 : f32 to vector<8x256xf32>
    %102 = arith.maximumf %100, %101 : vector<8x256xf32>
    %103 = arith.truncf %102 : vector<8x256xf32> to vector<8x256xbf16>
    %c0_48 = arith.constant 0 : index
    %c0_49 = arith.constant 0 : index
    %104 = vector.load %arg14[%c0_48, %c0_49] : memref<256x128xbf16, #tpu.memory_space<vmem>>, vector<256x128xbf16>
    %cst_50 = arith.constant dense<0.000000e+00> : vector<8x128xf32>
    %105 = tpu.matmul %103, %104, %cst_50 {dimension_numbers = #tpu.dot_dimension_numbers<[1], [0], [0], [1], [0, 0, 1, 1], [], []>} : vector<8x256xbf16>, vector<256x128xbf16>, vector<8x128xf32> -> vector<8x128xf32>
    %c0_51 = arith.constant 0 : index
    %c0_52 = arith.constant 0 : index
    %106 = vector.load %arg15[%c0_51, %c0_52] : memref<1x128xf32, #tpu.memory_space<vmem>>, vector<1x128xf32>
    %107 = vector.broadcast %106 : vector<1x128xf32> to vector<8x128xf32>
    %108 = arith.addf %105, %107 : vector<8x128xf32>
    %cst_53 = arith.constant 0.000000e+00 : f32
    %109 = vector.broadcast %cst_53 : f32 to vector<8x128xf32>
    %110 = arith.maximumf %108, %109 : vector<8x128xf32>
    %111 = arith.truncf %110 : vector<8x128xf32> to vector<8x128xbf16>
    %c0_54 = arith.constant 0 : index
    %c0_55 = arith.constant 0 : index
    %112 = vector.load %arg16[%c0_54, %c0_55] : memref<128x128xbf16, #tpu.memory_space<vmem>>, vector<128x128xbf16>
    %cst_56 = arith.constant dense<0.000000e+00> : vector<8x128xf32>
    %113 = tpu.matmul %111, %112, %cst_56 {dimension_numbers = #tpu.dot_dimension_numbers<[1], [0], [0], [1], [0, 0, 1, 1], [], []>} : vector<8x128xbf16>, vector<128x128xbf16>, vector<8x128xf32> -> vector<8x128xf32>
    %c0_57 = arith.constant 0 : index
    %c0_58 = arith.constant 0 : index
    %114 = vector.load %arg17[%c0_57, %c0_58] : memref<1x128xf32, #tpu.memory_space<vmem>>, vector<1x128xf32>
    %115 = vector.broadcast %114 : vector<1x128xf32> to vector<8x128xf32>
    %116 = arith.addf %113, %115 : vector<8x128xf32>
    %c0_59 = arith.constant 0 : index
    %c0_60 = arith.constant 0 : index
    %117 = vector.load %arg18[%c0_59, %c0_60] : memref<8x128xf32, #tpu.memory_space<vmem>>, vector<8x128xf32>
    tpu.vector_store %arg18[%c0_59, %c0_60], %116 {strides = array<i32>} : memref<8x128xf32, #tpu.memory_space<vmem>>, vector<8x128xf32>,
    return
  }
  func.func @transform_0(%arg0: i32) -> (i32, i32) {
    %c0_i32 = arith.constant 0 : i32
    %c0_i32_0 = arith.constant 0 : i32
    return %arg0, %c0_i32 : i32, i32
  }
  func.func @transform_1(%arg0: i32) -> (i32, i32) {
    %c0_i32 = arith.constant 0 : i32
    %c0_i32_0 = arith.constant 0 : i32
    %c0_i32_1 = arith.constant 0 : i32
    return %c0_i32, %c0_i32_0 : i32, i32
  }
  func.func @transform_2(%arg0: i32) -> (i32, i32) {
    %c0_i32 = arith.constant 0 : i32
    %c0_i32_0 = arith.constant 0 : i32
    %c0_i32_1 = arith.constant 0 : i32
    return %c0_i32, %c0_i32_0 : i32, i32
  }
  func.func @transform_3(%arg0: i32) -> (i32, i32) {
    %c0_i32 = arith.constant 0 : i32
    %c0_i32_0 = arith.constant 0 : i32
    %c0_i32_1 = arith.constant 0 : i32
    return %c0_i32, %c0_i32_0 : i32, i32
  }
  func.func @transform_4(%arg0: i32) -> (i32, i32) {
    %c0_i32 = arith.constant 0 : i32
    %c0_i32_0 = arith.constant 0 : i32
    %c0_i32_1 = arith.constant 0 : i32
    return %c0_i32, %c0_i32_0 : i32, i32
  }
  func.func @transform_5(%arg0: i32) -> (i32, i32) {
    %c0_i32 = arith.constant 0 : i32
    %c0_i32_0 = arith.constant 0 : i32
    %c0_i32_1 = arith.constant 0 : i32
    return %c0_i32, %c0_i32_0 : i32, i32
  }
  func.func @transform_6(%arg0: i32) -> (i32, i32) {
    %c0_i32 = arith.constant 0 : i32
    %c0_i32_0 = arith.constant 0 : i32
    %c0_i32_1 = arith.constant 0 : i32
    return %c0_i32, %c0_i32_0 : i32, i32
  }
  func.func @transform_7(%arg0: i32) -> (i32, i32) {
    %c0_i32 = arith.constant 0 : i32
    %c0_i32_0 = arith.constant 0 : i32
    %c0_i32_1 = arith.constant 0 : i32
    return %c0_i32, %c0_i32_0 : i32, i32
  }
  func.func @transform_8(%arg0: i32) -> (i32, i32) {
    %c0_i32 = arith.constant 0 : i32
    %c0_i32_0 = arith.constant 0 : i32
    %c0_i32_1 = arith.constant 0 : i32
    return %c0_i32, %c0_i32_0 : i32, i32
  }
  func.func @transform_9(%arg0: i32) -> (i32, i32) {
    %c0_i32 = arith.constant 0 : i32
    %c0_i32_0 = arith.constant 0 : i32
    %c0_i32_1 = arith.constant 0 : i32
    return %c0_i32, %c0_i32_0 : i32, i32
  }
  func.func @transform_10(%arg0: i32) -> (i32, i32) {
    %c0_i32 = arith.constant 0 : i32
    %c0_i32_0 = arith.constant 0 : i32
    %c0_i32_1 = arith.constant 0 : i32
    return %c0_i32, %c0_i32_0 : i32, i32
  }
  func.func @transform_11(%arg0: i32) -> (i32, i32) {
    %c0_i32 = arith.constant 0 : i32
    %c0_i32_0 = arith.constant 0 : i32
    %c0_i32_1 = arith.constant 0 : i32
    return %c0_i32, %c0_i32_0 : i32, i32
  }
  func.func @transform_12(%arg0: i32) -> (i32, i32) {
    %c0_i32 = arith.constant 0 : i32
    %c0_i32_0 = arith.constant 0 : i32
    %c0_i32_1 = arith.constant 0 : i32
    return %c0_i32, %c0_i32_0 : i32, i32
  }
  func.func @transform_13(%arg0: i32) -> (i32, i32) {
    %c0_i32 = arith.constant 0 : i32
    %c0_i32_0 = arith.constant 0 : i32
    %c0_i32_1 = arith.constant 0 : i32
    return %c0_i32, %c0_i32_0 : i32, i32
  }
  func.func @transform_14(%arg0: i32) -> (i32, i32) {
    %c0_i32 = arith.constant 0 : i32
    %c0_i32_0 = arith.constant 0 : i32
    %c0_i32_1 = arith.constant 0 : i32
    return %c0_i32, %c0_i32_0 : i32, i32
  }
  func.func @transform_15(%arg0: i32) -> (i32, i32) {
    %c0_i32 = arith.constant 0 : i32
    %c0_i32_0 = arith.constant 0 : i32
    %c0_i32_1 = arith.constant 0 : i32
    return %c0_i32, %c0_i32_0 : i32, i32
  }
  func.func @transform_16(%arg0: i32) -> (i32, i32) {
    %c0_i32 = arith.constant 0 : i32
    %c0_i32_0 = arith.constant 0 : i32
    %c0_i32_1 = arith.constant 0 : i32
    return %c0_i32, %c0_i32_0 : i32, i32
  }
  func.func @transform_17(%arg0: i32) -> (i32, i32) {
    %c0_i32 = arith.constant 0 : i32
    %c0_i32_0 = arith.constant 0 : i32
    return %arg0, %c0_i32 : i32, i32
  }
}

</mosaic_0001>

<bundles_post_ra>
// kernel: _forward.1
= control target key start
LH: loop header
LB: loop body
LE: loop exit
PB: predicated region body
PF: predicated region fallthrough
CT: control target
= control target key end

     0   :  { %s3439_s0 = inlined_call_operand.vmem [shape: f32[8,128], index: 0, kind: input, shape index: {}]   ;;  %s3440_s1 = inlined_call_operand.hbm [shape: bf16[128,512], index: 1, kind: input, shape index: {}]   ;;  %s3441_s2 = inlined_call_operand.vmem [shape: f32[1,512], index: 2, kind: input, shape index: {}]   ;;  %s3442_s3 = inlined_call_operand.vmem [shape: f32[1,512], index: 3, kind: input, shape index: {}]   ;;  %s3443_s4 = inlined_call_operand.vmem [shape: f32[1,512], index: 4, kind: input, shape index: {}]   ;;  %s3444_s5 = inlined_call_operand.hbm [shape: bf16[512,512], index: 5, kind: input, shape index: {}]   ;;  %s3445_s6 = inlined_call_operand.vmem [shape: f32[1,512], index: 6, kind: input, shape index: {}]   ;;  %s3446_s7 = inlined_call_operand.vmem [shape: f32[1,512], index: 7, kind: input, shape index: {}]   ;;  %s3447_s8 = inlined_call_operand.vmem [shape: f32[1,512], index: 8, kind: input, shape index: {}]   ;;  %s3448_s9 = inlined_call_operand.hbm [shape: bf16[512,256], index: 9, kind: input, shape index: {}]   ;;  %s3449_s10 = inlined_call_operand.vmem [shape: f32[1,256], index: 10, kind: input, shape index: {}]   ;;  %s3450_s11 = inlined_call_operand.vmem [shape: f32[1,256], index: 11, kind: input, shape index: {}]   ;;  %s3451_s12 = inlined_call_operand.vmem [shape: f32[1,256], index: 12, kind: input, shape index: {}]   ;;  %s3452_s13 = inlined_call_operand.hbm [shape: bf16[256,128], index: 13, kind: input, shape index: {}]   ;;  %s3453_s14 = inlined_call_operand.vmem [shape: f32[1,128], index: 14, kind: input, shape index: {}]   ;;  %s3454_s15 = inlined_call_operand.hbm [shape: bf16[128,128], index: 15, kind: input, shape index: {}]   ;;  %s3455_s16 = inlined_call_operand.vmem [shape: f32[1,128], index: 16, kind: input, shape index: {}]   ;;  %s3456_s17 = inlined_call_operand.vmem [shape: f32[8,128], index: 17, kind: output, shape index: {}]  }
   0x1   :  { %3457 = sst [smem:[#allocation13_spill]] %s3439_s0 }
   0x2   :  { %3458 = sst [smem:[#allocation14_spill]] %s3440_s1 }
   0x3   :  { %22 = vsyncpa [#allocation3], 0 }
   0x4   :  { %23 = vsyncpa [#allocation5], 0 }
   0x5   :  { %24 = vsyncpa [#allocation8], 0  ;;  %s3169_s24 = smov [#allocation4]   ;;  %s3170_s26 = smov [#allocation7]  }
   0x6   :  { %s50_s25 = sshll.u32 %s3169_s24, 4  ;;  %s86_s27 = sshll.u32 %s3170_s26, 4  ;;  %s51_s25 = int_to_ptr.vmem [resolvable:$true] %s50_s25  ;;  %s87_s27 = int_to_ptr.vmem [resolvable:$true] %s86_s27 }
   0x7   :  { %s3071_s28 = scalar_lea.vmem %s51_s25, 16384  ;;  %p3076_p1 = scmp.lt.s32.totalorder %s51_s25, %s51_s25 }
   0x8   :  { %p3072_p0 = scmp.ne.s32.totalorder %s51_s25, %s3071_s28  ;;  %p3077_p2 = scmp.lt.s32.totalorder %s3071_s28, %s3071_s28 }
   0xa   :  { %p3078_p3 = por %p3077_p2, %p3076_p1 }
   0xc   :  { %p3079_p4 = pnand %p3078_p3, %p3072_p0 }
   0xe   :  { %3082 = shalt.err (!%p3079_p4)
}
   0xf   :  { %s3171_s29 = smov 256   ;;  %s3172_s0 = smov 16  }
  0x10   :  { %56 = dma.hbm_to_vmem [thread:$0]  %s3444_s5, 16384, %s51_s25, [#allocation5], %s3171_s29, %s3171_s29, %s3172_s0  }
  0x11   :  { %s3091_s19 = scalar_lea.vmem %s87_s27, 2048  ;;  %p3096_p6 = scmp.lt.s32.totalorder %s87_s27, %s87_s27 }
  0x12   :  { %p3092_p5 = scmp.ne.s32.totalorder %s87_s27, %s3091_s19  ;;  %p3097_p7 = scmp.lt.s32.totalorder %s3091_s19, %s3091_s19 }
  0x14   :  { %p3098_p8 = por %p3097_p7, %p3096_p6 }
  0x16   :  { %p3099_p9 = pnand %p3098_p8, %p3092_p5 }
  0x18   :  { %3102 = shalt.err (!%p3099_p9)
}
  0x19   :  { %s3173_s1 = smov 64   ;;  %s3174_s20 = smov 4  }
  0x1a   :  { %92 = dma.hbm_to_vmem [thread:$0]  %s3452_s13, 2048, %s87_s27, [#allocation8], %s3173_s1, %s3173_s1, %s3174_s20  }
  0x1b   :  { %s3175_s23 = smov [#allocation2]   ;;  %s3176_s26 = smov [#allocation6]  }
  0x1c   :  { %s32_s24 = sshll.u32 %s3175_s23, 4  ;;  %s68_s5 = sshll.u32 %s3176_s26, 4  ;;  %s33_s24 = int_to_ptr.vmem [resolvable:$true] %s32_s24  ;;  %s69_s5 = int_to_ptr.vmem [resolvable:$true] %s68_s5 }
  0x1d   :  { %s3111_s25 = scalar_lea.vmem %s33_s24, 4096  ;;  %p3116_p11 = scmp.lt.s32.totalorder %s33_s24, %s33_s24 }
  0x1e   :  { %p3112_p10 = scmp.ne.s32.totalorder %s33_s24, %s3111_s25  ;;  %p3117_p12 = scmp.lt.s32.totalorder %s3111_s25, %s3111_s25 }
  0x20   :  { %p3118_p13 = por %p3117_p12, %p3116_p11 }
  0x22   :  { %p3119_p0 = pnand %p3118_p13, %p3112_p10 }
  0x24   :  { %3122 = shalt.err (!%p3119_p0)
}
  0x25   :  { %s3459_s18 = sld [smem:[#allocation14_spill]]  ;;  %s3131_s19 = scalar_lea.vmem %s69_s5, 8192 }
  0x26   :  { %p3132_p1 = scmp.ne.s32.totalorder %s69_s5, %s3131_s19  ;;  %p3136_p2 = scmp.lt.s32.totalorder %s69_s5, %s69_s5 }
  0x27   :  { %p3137_p3 = scmp.lt.s32.totalorder %s3131_s19, %s3131_s19 }
  0x29   :  { %p3138_p4 = por %p3137_p3, %p3136_p2 }
  0x2b   :  { %38 = dma.hbm_to_vmem [thread:$0]  %s3459_s18, 4096, %s33_s24, [#allocation3], %s3171_s29, %s3171_s29, %s3172_s0  }
  0x2c   :  { %p3139_p5 = pnand %p3138_p4, %p3132_p1 }
  0x2e   :  { %3142 = shalt.err (!%p3139_p5)
}
  0x2f   :  { %s3177_s13 = smov 128   ;;  %s3178_s27 = smov 8  }
  0x30   :  { %74 = dma.hbm_to_vmem [thread:$0]  %s3448_s9, 8192, %s69_s5, [#allocation5], %s3177_s13, %s3177_s13, %s3178_s27  }
  0x31   :  { %s3179_s23 = smov [#allocation9]  }
  0x32   :  { %s100_s26 = sshll.u32 %s3179_s23, 4  ;;  %s101_s26 = int_to_ptr.vmem [resolvable:$true] %s100_s26 }
  0x33   :  { %s3151_s25 = scalar_lea.vmem %s101_s26, 1024  ;;  %p3156_p7 = scmp.lt.s32.totalorder %s101_s26, %s101_s26 }
  0x34   :  { %p3152_p6 = scmp.ne.s32.totalorder %s101_s26, %s3151_s25  ;;  %p3157_p8 = scmp.lt.s32.totalorder %s3151_s25, %s3151_s25 }
  0x36   :  { %p3158_p9 = por %p3157_p8, %p3156_p7 }
  0x38   :  { %p3159_p10 = pnand %p3158_p9, %p3152_p6 }
  0x3a   :  { %3162 = shalt.err (!%p3159_p10)
}
  0x3b   :  { %106 = dma.hbm_to_vmem [thread:$0]  %s3454_s15, 1024, %s101_s26, [#allocation8], %s3173_s1, %s3173_s1, %s3174_s20  }
  0x3c   :  { %3163 = dma.done.wait [#allocation3], 4096  }
  0x3d   :  { %3164 = vsyncadd [#allocation3], 4294963200 }
  0x3e   :  { %3165 = dma.done.wait [#allocation5], 24576  }
  0x3f   :  { %3166 = vsyncadd [#allocation5], 4294942720 }
  0x40   :  { %3167 = dma.done.wait [#allocation8], 3072  }
  0x41   :  { %3168 = vsyncadd [#allocation8], 4294964224  ;;  %v3180_v0 = vmov 0   ;;  %v2697_v1 = vld [vmem:[#allocation2 + $0xe4] ss:$16 sps:$4 sm:$0xff]   ;;  %s3460_s1 = sld [smem:[#allocation13_spill]]  ;;  %v161_v63 = vlaneseq }
  0x42   :  { %373 = vmatprep.mubr.bf16.mxu0 %v3180_v0  ;;  %414 = vmatprep.mubr.bf16.mxu1 %v3180_v0  ;;  %v2699_v2 = vld [vmem:[#allocation2 + $0xec] ss:$16 sps:$4 sm:$0xff]   ;;  %v2701_v3 = vld [vmem:[#allocation2 + $0xe0] ss:$16 sps:$4 sm:$0xff]   ;;  %v2702_v4 = vld [vmem:[#allocation2 + $0xe8] ss:$16 sps:$4 sm:$0xff]  }
  0x43   :  { %341 = vmatprep.subr.bf16.mxu0 %v2697_v1  ;;  %382 = vmatprep.subr.bf16.mxu1 %v2699_v2  ;;  %v2703_v5 = vld [vmem:[#allocation2 + $0xc4] ss:$16 sps:$4 sm:$0xff]   ;;  %v2705_v6 = vld [vmem:[#allocation2 + $0xcc] ss:$16 sps:$4 sm:$0xff]   ;;  %v2707_v7 = vld [vmem:[#allocation2 + $0xc0] ss:$16 sps:$4 sm:$0xff]  }
  0x44   :  { %342 = vmatpush1.bf16.msra.mxu0 %v2701_v3  ;;  %383 = vmatpush1.bf16.msra.mxu1 %v2702_v4  ;;  %v2708_v8 = vld [vmem:[#allocation2 + $0xc8] ss:$16 sps:$4 sm:$0xff]   ;;  %v2709_v9 = vld [vmem:[#allocation2 + $0xa4] ss:$16 sps:$4 sm:$0xff]   ;;  %v2711_v10 = vld [vmem:[#allocation2 + $0xac] ss:$16 sps:$4 sm:$0xff]  }
  0x45   :  { %343 = vmatprep.subr.bf16.mxu0 %v2703_v5  ;;  %384 = vmatprep.subr.bf16.mxu1 %v2705_v6  ;;  %v2713_v11 = vld [vmem:[#allocation2 + $0xa0] ss:$16 sps:$4 sm:$0xff]   ;;  %v2714_v12 = vld [vmem:[#allocation2 + $0xa8] ss:$16 sps:$4 sm:$0xff]   ;;  %v2715_v13 = vld [vmem:[#allocation2 + $0x84] ss:$16 sps:$4 sm:$0xff]  }
  0x46   :  { %v2717_v14 = vld [vmem:[#allocation2 + $0x8c] ss:$16 sps:$4 sm:$0xff]   ;;  %v2719_v15 = vld [vmem:[#allocation2 + $0x80] ss:$16 sps:$4 sm:$0xff]   ;;  %v2720_v16 = vld [vmem:[#allocation2 + $0x88] ss:$16 sps:$4 sm:$0xff]  }
  0x47   :  { %v2721_v17 = vld [vmem:[#allocation2 + $0x64] ss:$16 sps:$4 sm:$0xff]   ;;  %v2723_v18 = vld [vmem:[#allocation2 + $0x6c] ss:$16 sps:$4 sm:$0xff]   ;;  %v2725_v19 = vld [vmem:[#allocation2 + $0x60] ss:$16 sps:$4 sm:$0xff]  }
  0x48   :  { %344 = vmatpush1.bf16.msra.mxu0 %v2707_v7  ;;  %385 = vmatpush1.bf16.msra.mxu1 %v2708_v8  ;;  %v2726_v20 = vld [vmem:[#allocation2 + $0x68] ss:$16 sps:$4 sm:$0xff]   ;;  %v2727_v21 = vld [vmem:[#allocation2 + $0x44] ss:$16 sps:$4 sm:$0xff]   ;;  %v2729_v22 = vld [vmem:[#allocation2 + $0x4c] ss:$16 sps:$4 sm:$0xff]  }
  0x49   :  { %345 = vmatprep.subr.bf16.mxu0 %v2709_v9  ;;  %386 = vmatprep.subr.bf16.mxu1 %v2711_v10  ;;  %v2731_v23 = vld [vmem:[#allocation2 + $0x40] ss:$16 sps:$4 sm:$0xff]   ;;  %v2732_v24 = vld [vmem:[#allocation2 + $0x48] ss:$16 sps:$4 sm:$0xff]   ;;  %v2733_v25 = vld [vmem:[#allocation2 + $0x24] ss:$16 sps:$4 sm:$0xff]  }
  0x4a   :  { %v2735_v26 = vld [vmem:[#allocation2 + $0x2c] ss:$16 sps:$4 sm:$0xff]   ;;  %v2737_v27 = vld [vmem:[#allocation2 + $0x20] ss:$16 sps:$4 sm:$0xff]   ;;  %v2738_v28 = vld [vmem:[#allocation2 + $0x28] ss:$16 sps:$4 sm:$0xff]  }
  0x4b   :  { %v2739_v29 = vld [vmem:[#allocation2 + $0x4] ss:$16 sps:$4 sm:$0xff]   ;;  %v2741_v30 = vld [vmem:[#allocation2 + $0xc] ss:$16 sps:$4 sm:$0xff]   ;;  %v2743_v31 = vld [vmem:[#allocation2] ss:$16 sps:$4 sm:$0xff]  }
  0x4c   :  { %346 = vmatpush1.bf16.msra.mxu0 %v2713_v11  ;;  %387 = vmatpush1.bf16.msra.mxu1 %v2714_v12  ;;  %v2744_v32 = vld [vmem:[#allocation2 + $0x8] ss:$16 sps:$4 sm:$0xff]   ;;  %v125_v33 = vld [vmem:[%s3460_s1] sm:$0xff]  ;;  %v162_v0 = vshrl.u32 %v161_v63, 7  ;;  %vm3182_vm0 = vmmov 0  }
  0x4d   :  { %347 = vmatprep.subr.bf16.mxu0 %v2715_v13  ;;  %388 = vmatprep.subr.bf16.mxu1 %v2717_v14  ;;  %v126_v34 = vpack.c.bf16 %v125_v33, %v125_v33  ;;  %v2745_v35 = vld [vmem:[#allocation4 + $0xe0] ss:$16 sps:$4 sm:$0xff]   ;;  %v2747_v36 = vld [vmem:[#allocation4 + $0xe4] ss:$16 sps:$4 sm:$0xff]  }
  0x4e   :  { %v2748_v37 = vld [vmem:[#allocation4 + $0x2e0] ss:$16 sps:$4 sm:$0xff]   ;;  %v2750_v38 = vld [vmem:[#allocation4 + $0x2e4] ss:$16 sps:$4 sm:$0xff]   ;;  %v3297_v1 = vsub.s32 0, %v162_v0  ;;  %v3299_v2 = vsub.s32 2, %v162_v0 }
  0x4f   :  { %v2753_v39 = vld [vmem:[#allocation4 + $0xc4] ss:$16 sps:$4 sm:$0xff]   ;;  %v2751_v41 = vld [vmem:[#allocation4 + $0xc0] ss:$16 sps:$4 sm:$0xff]   ;;  %v3304_v4 = vsub.s32 1, %v162_v0  ;;  %v3309_v8 = vsub.s32 3, %v162_v0 }
  0x50   :  { %348 = vmatpush1.bf16.msra.mxu0 %v2719_v15  ;;  %389 = vmatpush1.bf16.msra.mxu1 %v2720_v16  ;;  %v2756_v40 = vld [vmem:[#allocation4 + $0x2c4] ss:$16 sps:$4 sm:$0xff]   ;;  %v2754_v42 = vld [vmem:[#allocation4 + $0x2c0] ss:$16 sps:$4 sm:$0xff]  }
  0x51   :  { %349 = vmatprep.subr.bf16.mxu0 %v2721_v17  ;;  %390 = vmatprep.subr.bf16.mxu1 %v2723_v18  ;;  %v2759_v43 = vld [vmem:[#allocation4 + $0xa4] ss:$16 sps:$4 sm:$0xff]   ;;  %v2757_v45 = vld [vmem:[#allocation4 + $0xa0] ss:$16 sps:$4 sm:$0xff]  }
  0x52   :  { %v2762_v44 = vld [vmem:[#allocation4 + $0x2a4] ss:$16 sps:$4 sm:$0xff]   ;;  %v2760_v46 = vld [vmem:[#allocation4 + $0x2a0] ss:$16 sps:$4 sm:$0xff]  }
  0x53   :  { %v2765_v47 = vld [vmem:[#allocation4 + $0x84] ss:$16 sps:$4 sm:$0xff]   ;;  %v2763_v49 = vld [vmem:[#allocation4 + $0x80] ss:$16 sps:$4 sm:$0xff]  }
  0x54   :  { %350 = vmatpush1.bf16.msra.mxu0 %v2725_v19  ;;  %391 = vmatpush1.bf16.msra.mxu1 %v2726_v20  ;;  %v2768_v48 = vld [vmem:[#allocation4 + $0x284] ss:$16 sps:$4 sm:$0xff]   ;;  %v2766_v50 = vld [vmem:[#allocation4 + $0x280] ss:$16 sps:$4 sm:$0xff]  }
  0x55   :  { %351 = vmatprep.subr.bf16.mxu0 %v2727_v21  ;;  %392 = vmatprep.subr.bf16.mxu1 %v2729_v22  ;;  %v2771_v51 = vld [vmem:[#allocation4 + $0x64] ss:$16 sps:$4 sm:$0xff]   ;;  %v2769_v53 = vld [vmem:[#allocation4 + $0x60] ss:$16 sps:$4 sm:$0xff]  }
  0x56   :  { %v2774_v52 = vld [vmem:[#allocation4 + $0x264] ss:$16 sps:$4 sm:$0xff]   ;;  %v2772_v54 = vld [vmem:[#allocation4 + $0x260] ss:$16 sps:$4 sm:$0xff]  }
  0x57   :  { %v2777_v55 = vld [vmem:[#allocation4 + $0x44] ss:$16 sps:$4 sm:$0xff]   ;;  %v2775_v57 = vld [vmem:[#allocation4 + $0x40] ss:$16 sps:$4 sm:$0xff]  }
  0x58   :  { %352 = vmatpush1.bf16.msra.mxu0 %v2731_v23  ;;  %393 = vmatpush1.bf16.msra.mxu1 %v2732_v24  ;;  %v2780_v56 = vld [vmem:[#allocation4 + $0x244] ss:$16 sps:$4 sm:$0xff]   ;;  %v2778_v58 = vld [vmem:[#allocation4 + $0x240] ss:$16 sps:$4 sm:$0xff]  }
  0x59   :  { %353 = vmatprep.subr.bf16.mxu0 %v2733_v25  ;;  %394 = vmatprep.subr.bf16.mxu1 %v2735_v26  ;;  %v2783_v59 = vld [vmem:[#allocation4 + $0x24] ss:$16 sps:$4 sm:$0xff]   ;;  %v2781_v61 = vld [vmem:[#allocation4 + $0x20] ss:$16 sps:$4 sm:$0xff]  }
  0x5a   :  { %v2786_v60 = vld [vmem:[#allocation4 + $0x224] ss:$16 sps:$4 sm:$0xff]   ;;  %v2784_v62 = vld [vmem:[#allocation4 + $0x220] ss:$16 sps:$4 sm:$0xff]  }
  0x5b   :  { %v159_v3 = vld [vmem:[%s3441_s2] sm:$0xf]  ;;  %v2792_v33 = vld [vmem:[#allocation4 + $0x204] ss:$16 sps:$4 sm:$0xff]  }
  0x5c   :  { %354 = vmatpush1.bf16.msra.mxu0 %v2737_v27  ;;  %395 = vmatpush1.bf16.msra.mxu1 %v2738_v28  ;;  %v164_v5 = vrot.slane %v159_v3, %v3297_v1  ;;  %v172_v6 = vrot.slane %v159_v3, %v3299_v2  ;;  %v168_v7 = vrot.slane %v159_v3, %v3304_v4  ;;  %v2832_v63 = vld [vmem:[#allocation4 + $0x320] ss:$16 sps:$4 sm:$0xff]   ;;  %v2837_v0 = vld [vmem:[#allocation4 + $0x104] ss:$16 sps:$4 sm:$0xff]  }
  0x5d   :  { %355 = vmatprep.subr.bf16.mxu0 %v2739_v29  ;;  %396 = vmatprep.subr.bf16.mxu1 %v2741_v30  ;;  %v176_v16 = vrot.slane %v159_v3, %v3309_v8  ;;  %v2840_v3 = vld [vmem:[#allocation4 + $0x304] ss:$16 sps:$4 sm:$0xff]  }
  0x60   :  { %356 = vmatpush1.bf16.msra.mxu0 %v2743_v31  ;;  %397 = vmatpush1.bf16.msra.mxu1 %v2744_v32  ;;  %v2789_v32 = vld [vmem:[#allocation4 + $0x4] ss:$16 sps:$4 sm:$0xff]  }
  0x61   :  { %1303 = vmatprep.subr.bf16.mxu0 %v2747_v36  ;;  %1344 = vmatprep.subr.bf16.mxu1 %v2750_v38  ;;  %v2795_v36 = vld [vmem:[#allocation4 + $0x1e4] ss:$16 sps:$4 sm:$0xff]   ;;  %v2793_v38 = vld [vmem:[#allocation4 + $0x1e0] ss:$16 sps:$4 sm:$0xff]  }
  0x63   :  { %374 = vmatmul.mubr.bf16.vlgmr.msra.gmra.mxu0 %v126_v34  ;;  %415 = vmatmul.mubr.bf16.vlgmr.msra.gmra.mxu1 %v126_v34  ;;  %v2787_v34 = vld [vmem:[#allocation4] ss:$16 sps:$4 sm:$0xff]  }
  0x64   :  { %1304 = vmatpush1.bf16.msra.mxu0 %v2745_v35  ;;  %1345 = vmatpush1.bf16.msra.mxu1 %v2748_v37  ;;  %v2790_v35 = vld [vmem:[#allocation4 + $0x200] ss:$16 sps:$4 sm:$0xff]   ;;  %v2798_v37 = vld [vmem:[#allocation4 + $0x3e4] ss:$16 sps:$4 sm:$0xff]  }
  0x65   :  { %1305 = vmatprep.subr.bf16.mxu0 %v2753_v39  ;;  %1346 = vmatprep.subr.bf16.mxu1 %v2756_v40  ;;  %v2796_v39 = vld [vmem:[#allocation4 + $0x3e0] ss:$16 sps:$4 sm:$0xff]   ;;  %v2801_v40 = vld [vmem:[#allocation4 + $0x1c4] ss:$16 sps:$4 sm:$0xff]  }
  0x68   :  { %1306 = vmatpush1.bf16.msra.mxu0 %v2751_v41  ;;  %1347 = vmatpush1.bf16.msra.mxu1 %v2754_v42  ;;  %v2804_v41 = vld [vmem:[#allocation4 + $0x3c4] ss:$16 sps:$4 sm:$0xff]   ;;  %v2799_v42 = vld [vmem:[#allocation4 + $0x1c0] ss:$16 sps:$4 sm:$0xff]  }
  0x69   :  { %1307 = vmatprep.subr.bf16.mxu0 %v2759_v43  ;;  %1348 = vmatprep.subr.bf16.mxu1 %v2762_v44  ;;  %v2802_v43 = vld [vmem:[#allocation4 + $0x3c0] ss:$16 sps:$4 sm:$0xff]   ;;  %v2807_v44 = vld [vmem:[#allocation4 + $0x1a4] ss:$16 sps:$4 sm:$0xff]  }
  0x6c   :  { %1308 = vmatpush1.bf16.msra.mxu0 %v2757_v45  ;;  %1349 = vmatpush1.bf16.msra.mxu1 %v2760_v46  ;;  %v2810_v45 = vld [vmem:[#allocation4 + $0x3a4] ss:$16 sps:$4 sm:$0xff]   ;;  %v2805_v46 = vld [vmem:[#allocation4 + $0x1a0] ss:$16 sps:$4 sm:$0xff]  }
  0x6d   :  { %1309 = vmatprep.subr.bf16.mxu0 %v2765_v47  ;;  %1350 = vmatprep.subr.bf16.mxu1 %v2768_v48  ;;  %v2808_v47 = vld [vmem:[#allocation4 + $0x3a0] ss:$16 sps:$4 sm:$0xff]   ;;  %v2813_v48 = vld [vmem:[#allocation4 + $0x184] ss:$16 sps:$4 sm:$0xff]  }
  0x70   :  { %1310 = vmatpush1.bf16.msra.mxu0 %v2763_v49  ;;  %1351 = vmatpush1.bf16.msra.mxu1 %v2766_v50  ;;  %v2811_v49 = vld [vmem:[#allocation4 + $0x180] ss:$16 sps:$4 sm:$0xff]  }
  0x71   :  { %1311 = vmatprep.subr.bf16.mxu0 %v2771_v51  ;;  %1352 = vmatprep.subr.bf16.mxu1 %v2774_v52  ;;  %v2814_v50 = vld [vmem:[#allocation4 + $0x380] ss:$16 sps:$4 sm:$0xff]   ;;  %v2816_v51 = vld [vmem:[#allocation4 + $0x384] ss:$16 sps:$4 sm:$0xff]  }
  0x72   :  { %v2819_v52 = vld [vmem:[#allocation4 + $0x164] ss:$16 sps:$4 sm:$0xff]  }
  0x74   :  { %1312 = vmatpush1.bf16.msra.mxu0 %v2769_v53  ;;  %1353 = vmatpush1.bf16.msra.mxu1 %v2772_v54  ;;  %v2822_v53 = vld [vmem:[#allocation4 + $0x364] ss:$16 sps:$4 sm:$0xff]   ;;  %v2817_v54 = vld [vmem:[#allocation4 + $0x160] ss:$16 sps:$4 sm:$0xff]  }
  0x75   :  { %1313 = vmatprep.subr.bf16.mxu0 %v2777_v55  ;;  %1354 = vmatprep.subr.bf16.mxu1 %v2780_v56  ;;  %v2820_v55 = vld [vmem:[#allocation4 + $0x360] ss:$16 sps:$4 sm:$0xff]   ;;  %v2825_v56 = vld [vmem:[#allocation4 + $0x144] ss:$16 sps:$4 sm:$0xff]  }
  0x78   :  { %1314 = vmatpush1.bf16.msra.mxu0 %v2775_v57  ;;  %1355 = vmatpush1.bf16.msra.mxu1 %v2778_v58  ;;  %v2828_v57 = vld [vmem:[#allocation4 + $0x344] ss:$16 sps:$4 sm:$0xff]   ;;  %v2823_v58 = vld [vmem:[#allocation4 + $0x140] ss:$16 sps:$4 sm:$0xff]  }
  0x79   :  { %1315 = vmatprep.subr.bf16.mxu0 %v2783_v59  ;;  %1356 = vmatprep.subr.bf16.mxu1 %v2786_v60  ;;  %v2826_v59 = vld [vmem:[#allocation4 + $0x340] ss:$16 sps:$4 sm:$0xff]   ;;  %v2831_v60 = vld [vmem:[#allocation4 + $0x124] ss:$16 sps:$4 sm:$0xff]  }
  0x7c   :  { %1316 = vmatpush1.bf16.msra.mxu0 %v2781_v61  ;;  %1357 = vmatpush1.bf16.msra.mxu1 %v2784_v62  ;;  %v2834_v61 = vld [vmem:[#allocation4 + $0x324] ss:$16 sps:$4 sm:$0xff]   ;;  %v2829_v62 = vld [vmem:[#allocation4 + $0x120] ss:$16 sps:$4 sm:$0xff]  }
  0x7d   :  { %1317 = vmatprep.subr.bf16.mxu0 %v2789_v32  ;;  %1358 = vmatprep.subr.bf16.mxu1 %v2792_v33 }
  0x80   :  { %1318 = vmatpush1.bf16.msra.mxu0 %v2787_v34  ;;  %1359 = vmatpush1.bf16.msra.mxu1 %v2790_v35 }
  0x81   :  { %1319 = vmatprep.subr.bf16.mxu0 %v2795_v36  ;;  %1360 = vmatprep.subr.bf16.mxu1 %v2798_v37 }
  0x84   :  { %1320 = vmatpush2.bf16.msra.mxu0 %v2793_v38  ;;  %1361 = vmatpush2.bf16.msra.mxu1 %v2796_v39 }
  0x85   :  { %1321 = vmatprep.subr.bf16.mxu0 %v2801_v40  ;;  %1362 = vmatprep.subr.bf16.mxu1 %v2804_v41 }
  0x88   :  { %1322 = vmatpush2.bf16.msra.mxu0 %v2799_v42  ;;  %1363 = vmatpush2.bf16.msra.mxu1 %v2802_v43 }
  0x89   :  { %1323 = vmatprep.subr.bf16.mxu0 %v2807_v44  ;;  %1364 = vmatprep.subr.bf16.mxu1 %v2810_v45 }
  0x8c   :  { %1324 = vmatpush2.bf16.msra.mxu0 %v2805_v46  ;;  %1365 = vmatpush2.bf16.msra.mxu1 %v2808_v47 }
  0x8d   :  { %1325 = vmatprep.subr.bf16.mxu0 %v2813_v48  ;;  %1366 = vmatprep.subr.bf16.mxu1 %v2816_v51  ;;  %v2841_v51 = vld [vmem:[#allocation4 + $0xe8] ss:$16 sps:$4 sm:$0xff]  }
  0x90   :  { %1326 = vmatpush2.bf16.msra.mxu0 %v2811_v49  ;;  %1367 = vmatpush2.bf16.msra.mxu1 %v2814_v50 }
  0x91   :  { %1327 = vmatprep.subr.bf16.mxu0 %v2819_v52  ;;  %1368 = vmatprep.subr.bf16.mxu1 %v2822_v53  ;;  %v2844_v52 = vld [vmem:[#allocation4 + $0x2e8] ss:$16 sps:$4 sm:$0xff]  }
  0x94   :  { %1328 = vmatpush2.bf16.msra.mxu0 %v2817_v54  ;;  %1369 = vmatpush2.bf16.msra.mxu1 %v2820_v55  ;;  %v2849_v55 = vld [vmem:[#allocation4 + $0xcc] ss:$16 sps:$4 sm:$0xff]  }
  0x95   :  { %1329 = vmatprep.subr.bf16.mxu0 %v2825_v56  ;;  %1370 = vmatprep.subr.bf16.mxu1 %v2828_v57  ;;  %v2852_v56 = vld [vmem:[#allocation4 + $0x2cc] ss:$16 sps:$4 sm:$0xff]   ;;  %v2847_v57 = vld [vmem:[#allocation4 + $0xc8] ss:$16 sps:$4 sm:$0xff]  }
  0x98   :  { %1330 = vmatpush2.bf16.msra.mxu0 %v2823_v58  ;;  %1371 = vmatpush2.bf16.msra.mxu1 %v2826_v59  ;;  %v2850_v58 = vld [vmem:[#allocation4 + $0x2c8] ss:$16 sps:$4 sm:$0xff]   ;;  %v2855_v59 = vld [vmem:[#allocation4 + $0xac] ss:$16 sps:$4 sm:$0xff]  }
  0x99   :  { %1331 = vmatprep.subr.bf16.mxu0 %v2831_v60  ;;  %1372 = vmatprep.subr.bf16.mxu1 %v2834_v61  ;;  %v2858_v60 = vld [vmem:[#allocation4 + $0x2ac] ss:$16 sps:$4 sm:$0xff]   ;;  %v2853_v61 = vld [vmem:[#allocation4 + $0xa8] ss:$16 sps:$4 sm:$0xff]  }
  0x9c   :  { %1332 = vmatpush2.bf16.msra.mxu0 %v2829_v62  ;;  %1373 = vmatpush2.bf16.msra.mxu1 %v2832_v63  ;;  %v2856_v62 = vld [vmem:[#allocation4 + $0x2a8] ss:$16 sps:$4 sm:$0xff]   ;;  %v2861_v63 = vld [vmem:[#allocation4 + $0x8c] ss:$16 sps:$4 sm:$0xff]  }
  0x9d   :  { %1333 = vmatprep.subr.bf16.mxu0 %v2837_v0  ;;  %1374 = vmatprep.subr.bf16.mxu1 %v2840_v3  ;;  %v2864_v0 = vld [vmem:[#allocation4 + $0x28c] ss:$16 sps:$4 sm:$0xff]   ;;  %v2859_v3 = vld [vmem:[#allocation4 + $0x88] ss:$16 sps:$4 sm:$0xff]  }
 0x123   :  { %v375_v9 = vpop.f32.mrf.mxu0  ;;  %v416_v10 = vpop.f32.mrf.mxu1 }
 0x124   :  { %v3311_v11 = vadd.f32 %v375_v9, %v164_v5  ;;  %v3313_v12 = vadd.f32 %v416_v10, %v172_v6  ;;  %v2835_v5 = vld [vmem:[#allocation4 + $0x100] ss:$16 sps:$4 sm:$0xff]   ;;  %v2846_v9 = vld [vmem:[#allocation4 + $0x2ec] ss:$16 sps:$4 sm:$0xff]  }
 0x125   :  { %v377_v13 = vpop.f32.mrf.mxu0  ;;  %v418_v14 = vpop.f32.mrf.mxu1  ;;  %v2838_v6 = vld [vmem:[#allocation4 + $0x300] ss:$16 sps:$4 sm:$0xff]   ;;  %1334 = vmatpush2.bf16.msra.mxu0 %v2835_v5  ;;  %v2862_v5 = vld [vmem:[#allocation4 + $0x288] ss:$16 sps:$4 sm:$0xff]  }
 0x126   :  { %v3315_v15 = vadd.f32 %v377_v13, %v168_v7  ;;  %v430_v19 = vmul.f32 %v3311_v11, %v3311_v11  ;;  %v432_v20 = vmul.f32 %v3313_v12, %v3313_v12  ;;  %v3326_v25 = vadd.f32 %v418_v14, %v176_v16  ;;  %1375 = vmatpush2.bf16.msra.mxu1 %v2838_v6  ;;  %v2843_v7 = vld [vmem:[#allocation4 + $0xec] ss:$16 sps:$4 sm:$0xff]  }
 0x127   :  { %v379_v17 = vpop.f32.mrf.mxu0  ;;  %v420_v18 = vpop.f32.mrf.mxu1  ;;  %1385 = vmatprep.subr.bf16.mxu0 %v2843_v7  ;;  %1426 = vmatprep.subr.bf16.mxu1 %v2846_v9  ;;  %v2867_v6 = vld [vmem:[#allocation4 + $0x6c] ss:$16 sps:$4 sm:$0xff]   ;;  %v2865_v9 = vld [vmem:[#allocation4 + $0x68] ss:$16 sps:$4 sm:$0xff]  }
 0x128   :  { %v431_v21 = vmul.f32 %v3315_v15, %v3315_v15  ;;  %v423_v22 = vadd.f32 %v3315_v15, %v3311_v11  ;;  %v433_v30 = vmul.f32 %v3326_v25, %v3326_v25  ;;  %v2870_v7 = vld [vmem:[#allocation4 + $0x26c] ss:$16 sps:$4 sm:$0xff]  }
 0x129   :  { %v380_v23 = vpop.f32.mrf.mxu0  ;;  %v421_v24 = vpop.f32.mrf.mxu1 }
 0x12a   :  { %v424_v26 = vadd.f32 %v423_v22, %v3313_v12  ;;  %v434_v27 = vadd.f32 %v431_v21, %v430_v19  ;;  %v453_v21 = vld [vmem:[%s3442_s3] sm:$0xf] }
 0x12b   :  { %v479_v22 = vld [vmem:[%s3443_s4] sm:$0xf]  ;;  %v462_v23 = vrot.slane %v453_v21, %v3304_v4  ;;  %v470_v24 = vrot.slane %v453_v21, %v3309_v8 }
 0x12c   :  { %v425_v28 = vadd.f32 %v424_v26, %v3326_v25  ;;  %v435_v29 = vadd.f32 %v434_v27, %v432_v20  ;;  %v458_v26 = vrot.slane %v453_v21, %v3297_v1  ;;  %v466_v27 = vrot.slane %v453_v21, %v3299_v2  ;;  %v2880_v21 = vld [vmem:[#allocation4 + $0x228] ss:$16 sps:$4 sm:$0xff]  }
 0x12d   :  { %v488_v33 = vrot.slane %v479_v22, %v3304_v4  ;;  %v496_v34 = vrot.slane %v479_v22, %v3309_v8  ;;  %v484_v35 = vrot.slane %v479_v22, %v3297_v1  ;;  %v492_v36 = vrot.slane %v479_v22, %v3299_v2  ;;  %v2885_v22 = vld [vmem:[#allocation4 + $0xc] ss:$16 sps:$4 sm:$0xff]  }
 0x12e   :  { %426 = vadd.xlane.f32.xlu0 %v425_v28  ;;  %v436_v31 = vadd.f32 %v435_v29, %v433_v30 }
 0x132   :  { %437 = vadd.xlane.f32.xlu0 %v436_v31 }
 0x1b7   :  { %v427_v10 = vpop.xlane.xlu0 %426 }
 0x1b8   :  { %v429_v13 = vmul.f32 0.001953125, %v427_v10  ;;  %v2868_v10 = vld [vmem:[#allocation4 + $0x268] ss:$16 sps:$4 sm:$0xff]  }
 0x1ba   :  { %v440_v16 = vmul.f32 %v429_v13, %v429_v13  ;;  %v443_v28 = vsub.f32 %v3311_v11, %v429_v13  ;;  %v445_v29 = vsub.f32 %v3313_v12, %v429_v13  ;;  %v444_v30 = vsub.f32 %v3315_v15, %v429_v13 }
 0x1bb   :  { %v438_v14 = vpop.xlane.xlu0 %437  ;;  %v446_v31 = vsub.f32 %v3326_v25, %v429_v13  ;;  %v2873_v13 = vld [vmem:[#allocation4 + $0x4c] ss:$16 sps:$4 sm:$0xff]  }
 0x1bc   :  { %v439_v17 = vmul.f32 0.001953125, %v438_v14  ;;  %v2876_v14 = vld [vmem:[#allocation4 + $0x24c] ss:$16 sps:$4 sm:$0xff]  }
 0x1be   :  { %v441_v18 = vsub.f32 %v439_v17, %v440_v16  ;;  %v2871_v16 = vld [vmem:[#allocation4 + $0x48] ss:$16 sps:$4 sm:$0xff]  }
 0x1bf   :  { %v2874_v17 = vld [vmem:[#allocation4 + $0x248] ss:$16 sps:$4 sm:$0xff]  }
 0x1c0   :  { %v442_v19 = vmax.f32 %v441_v18, 0.0  ;;  %v2879_v18 = vld [vmem:[#allocation4 + $0x2c] ss:$16 sps:$4 sm:$0xff]  }
 0x1c2   :  { %v447_v20 = vadd.f32 1e-05, %v442_v19  ;;  %v2882_v19 = vld [vmem:[#allocation4 + $0x22c] ss:$16 sps:$4 sm:$0xff]  }
 0x1c4   :  { %3057 = vrsqrt.f32 %v447_v20  ;;  %v2877_v20 = vld [vmem:[#allocation4 + $0x28] ss:$16 sps:$4 sm:$0xff]  }
 0x1d1   :  { %v3058_v32 = vpop.eup %3057 }
 0x1d2   :  { %v450_v37 = vmul.f32 %v3058_v32, %v444_v30  ;;  %v452_v38 = vmul.f32 %v3058_v32, %v446_v31  ;;  %v449_v39 = vmul.f32 %v3058_v32, %v443_v28  ;;  %v451_v40 = vmul.f32 %v3058_v32, %v445_v29  ;;  %v2894_v28 = vld [vmem:[#allocation4 + $0x3ec] ss:$16 sps:$4 sm:$0xff]   ;;  %v2889_v29 = vld [vmem:[#allocation4 + $0x1e8] ss:$16 sps:$4 sm:$0xff]  }
 0x1d3   :  { %v2892_v30 = vld [vmem:[#allocation4 + $0x3e8] ss:$16 sps:$4 sm:$0xff]   ;;  %v2897_v31 = vld [vmem:[#allocation4 + $0x1cc] ss:$16 sps:$4 sm:$0xff]  }
 0x1d4   :  { %v476_v11 = vmul.f32 %v462_v23, %v450_v37  ;;  %v478_v41 = vmul.f32 %v470_v24, %v452_v38  ;;  %v475_v12 = vmul.f32 %v458_v26, %v449_v39  ;;  %v477_v42 = vmul.f32 %v466_v27, %v451_v40  ;;  %v2888_v23 = vld [vmem:[#allocation4 + $0x20c] ss:$16 sps:$4 sm:$0xff]   ;;  %v2883_v24 = vld [vmem:[#allocation4 + $0x8] ss:$16 sps:$4 sm:$0xff]  }
 0x1d5   :  { %v2886_v26 = vld [vmem:[#allocation4 + $0x208] ss:$16 sps:$4 sm:$0xff]   ;;  %v2891_v27 = vld [vmem:[#allocation4 + $0x1ec] ss:$16 sps:$4 sm:$0xff]  }
 0x1d6   :  { %v502_v15 = vadd.f32 %v488_v33, %v476_v11  ;;  %v504_v43 = vadd.f32 %v496_v34, %v478_v41  ;;  %v501_v25 = vadd.f32 %v484_v35, %v475_v12  ;;  %v503_v44 = vadd.f32 %v492_v36, %v477_v42  ;;  %v2900_v32 = vld [vmem:[#allocation4 + $0x3cc] ss:$16 sps:$4 sm:$0xff]   ;;  %v2895_v33 = vld [vmem:[#allocation4 + $0x1c8] ss:$16 sps:$4 sm:$0xff]  }
 0x1d7   :  { %v2898_v34 = vld [vmem:[#allocation4 + $0x3c8] ss:$16 sps:$4 sm:$0xff]   ;;  %v2903_v35 = vld [vmem:[#allocation4 + $0x1ac] ss:$16 sps:$4 sm:$0xff]  }
 0x1d8   :  { %v506_v45 = vmax.f32 %v502_v15, 0.0  ;;  %v508_v46 = vmax.f32 %v504_v43, 0.0  ;;  %v505_v47 = vmax.f32 %v501_v25, 0.0  ;;  %v507_v48 = vmax.f32 %v503_v44, 0.0  ;;  %v2906_v36 = vld [vmem:[#allocation4 + $0x3ac] ss:$16 sps:$4 sm:$0xff]  }
 0x1d9   :  { %v2901_v37 = vld [vmem:[#allocation4 + $0x1a8] ss:$16 sps:$4 sm:$0xff]   ;;  %v2909_v39 = vld [vmem:[#allocation4 + $0x18c] ss:$16 sps:$4 sm:$0xff]  }
 0x1da   :  { %v510_v49 = vpack.c.bf16 %v506_v45, %v506_v45  ;;  %v512_v50 = vpack.c.bf16 %v508_v46, %v508_v46  ;;  %v3350_v53 = vpack.c.bf16 %v505_v47, %v505_v47  ;;  %v3352_v54 = vpack.c.bf16 %v507_v48, %v507_v48  ;;  %v2904_v38 = vld [vmem:[#allocation4 + $0x3a8] ss:$16 sps:$4 sm:$0xff]   ;;  %v2912_v40 = vld [vmem:[#allocation4 + $0x38c] ss:$16 sps:$4 sm:$0xff]  }
 0x1db   :  { %v2907_v11 = vld [vmem:[#allocation4 + $0x188] ss:$16 sps:$4 sm:$0xff]   ;;  %v2915_v12 = vld [vmem:[#allocation4 + $0x16c] ss:$16 sps:$4 sm:$0xff]  }
 0x1dc   :  { %1335 = vmatprep.mubr.bf16.mxu0 %v510_v49  ;;  %1376 = vmatprep.mubr.bf16.mxu1 %v512_v50  ;;  %v2910_v41 = vld [vmem:[#allocation4 + $0x388] ss:$16 sps:$4 sm:$0xff]   ;;  %v2918_v42 = vld [vmem:[#allocation4 + $0x36c] ss:$16 sps:$4 sm:$0xff]  }
 0x1dd   :  { %1336 = vmatmul.mubr.bf16.vlgmr.msra.gmra.mxu0 %v3350_v53  ;;  %1377 = vmatmul.mubr.bf16.vlgmr.msra.gmra.mxu1 %v3352_v54  ;;  %v2913_v15 = vld [vmem:[#allocation4 + $0x168] ss:$16 sps:$4 sm:$0xff]   ;;  %v2921_v25 = vld [vmem:[#allocation4 + $0x14c] ss:$16 sps:$4 sm:$0xff]  }
 0x1de   :  { %1386 = vmatpush1.bf16.msra.mxu0 %v2841_v51  ;;  %1427 = vmatpush1.bf16.msra.mxu1 %v2844_v52  ;;  %v2916_v43 = vld [vmem:[#allocation4 + $0x368] ss:$16 sps:$4 sm:$0xff]   ;;  %v2924_v44 = vld [vmem:[#allocation4 + $0x34c] ss:$16 sps:$4 sm:$0xff]  }
 0x1df   :  { %1417 = vmatprep.mubr.bf16.mxu0 %v510_v49  ;;  %1458 = vmatprep.mubr.bf16.mxu1 %v512_v50  ;;  %v2919_v45 = vld [vmem:[#allocation4 + $0x148] ss:$16 sps:$4 sm:$0xff]   ;;  %v2927_v47 = vld [vmem:[#allocation4 + $0x12c] ss:$16 sps:$4 sm:$0xff]  }
 0x1e0   :  { %1387 = vmatprep.subr.bf16.mxu0 %v2849_v55  ;;  %1428 = vmatprep.subr.bf16.mxu1 %v2852_v56  ;;  %v2922_v46 = vld [vmem:[#allocation4 + $0x348] ss:$16 sps:$4 sm:$0xff]   ;;  %v2930_v48 = vld [vmem:[#allocation4 + $0x32c] ss:$16 sps:$4 sm:$0xff]  }
 0x1e1   :  { %v2925_v49 = vld [vmem:[#allocation4 + $0x128] ss:$16 sps:$4 sm:$0xff]   ;;  %v2933_v51 = vld [vmem:[#allocation4 + $0x10c] ss:$16 sps:$4 sm:$0xff]  }
 0x1e2   :  { %1388 = vmatpush1.bf16.msra.mxu0 %v2847_v57  ;;  %1429 = vmatpush1.bf16.msra.mxu1 %v2850_v58  ;;  %v2928_v50 = vld [vmem:[#allocation4 + $0x328] ss:$16 sps:$4 sm:$0xff]   ;;  %v2936_v52 = vld [vmem:[#allocation4 + $0x30c] ss:$16 sps:$4 sm:$0xff]  }
 0x1e3   :  { %1389 = vmatprep.subr.bf16.mxu0 %v2855_v59  ;;  %1430 = vmatprep.subr.bf16.mxu1 %v2858_v60  ;;  %v2931_v55 = vld [vmem:[#allocation4 + $0x108] ss:$16 sps:$4 sm:$0xff]   ;;  %v2939_v58 = vld [vmem:[#allocation6 + $0x74] ss:$8 sps:$4 sm:$0xff]  }
 0x1e4   :  { %v2934_v56 = vld [vmem:[#allocation4 + $0x308] ss:$16 sps:$4 sm:$0xff]   ;;  %v2942_v60 = vld [vmem:[#allocation6 + $0x174] ss:$8 sps:$4 sm:$0xff]  }
 0x1e5   :  { %v2937_v57 = vld [vmem:[#allocation6 + $0x70] ss:$8 sps:$4 sm:$0xff]  }
 0x1e6   :  { %1390 = vmatpush1.bf16.msra.mxu0 %v2853_v61  ;;  %1431 = vmatpush1.bf16.msra.mxu1 %v2856_v62  ;;  %v2940_v59 = vld [vmem:[#allocation6 + $0x170] ss:$8 sps:$4 sm:$0xff]   ;;  %v2945_v61 = vld [vmem:[#allocation6 + $0x64] ss:$8 sps:$4 sm:$0xff]  }
 0x1e7   :  { %1391 = vmatprep.subr.bf16.mxu0 %v2861_v63  ;;  %1432 = vmatprep.subr.bf16.mxu1 %v2864_v0  ;;  %v2948_v62 = vld [vmem:[#allocation6 + $0x164] ss:$8 sps:$4 sm:$0xff]   ;;  %v2943_v63 = vld [vmem:[#allocation6 + $0x60] ss:$8 sps:$4 sm:$0xff]  }
 0x1e8   :  { %v2946_v0 = vld [vmem:[#allocation6 + $0x160] ss:$8 sps:$4 sm:$0xff]  }
 0x1ea   :  { %1392 = vmatpush1.bf16.msra.mxu0 %v2859_v3  ;;  %1433 = vmatpush1.bf16.msra.mxu1 %v2862_v5  ;;  %v2951_v3 = vld [vmem:[#allocation6 + $0x54] ss:$8 sps:$4 sm:$0xff]  }
 0x1eb   :  { %1393 = vmatprep.subr.bf16.mxu0 %v2867_v6  ;;  %1434 = vmatprep.subr.bf16.mxu1 %v2870_v7  ;;  %v2954_v5 = vld [vmem:[#allocation6 + $0x154] ss:$8 sps:$4 sm:$0xff]   ;;  %v2957_v6 = vld [vmem:[#allocation6 + $0x44] ss:$8 sps:$4 sm:$0xff]  }
 0x1ec   :  { %v2960_v7 = vld [vmem:[#allocation6 + $0x144] ss:$8 sps:$4 sm:$0xff]  }
 0x1ee   :  { %1394 = vmatpush1.bf16.msra.mxu0 %v2865_v9  ;;  %1435 = vmatpush1.bf16.msra.mxu1 %v2868_v10  ;;  %v2955_v9 = vld [vmem:[#allocation6 + $0x40] ss:$8 sps:$4 sm:$0xff]  }
 0x1ef   :  { %1395 = vmatprep.subr.bf16.mxu0 %v2873_v13  ;;  %1436 = vmatprep.subr.bf16.mxu1 %v2876_v14  ;;  %v2958_v10 = vld [vmem:[#allocation6 + $0x140] ss:$8 sps:$4 sm:$0xff]   ;;  %v2963_v13 = vld [vmem:[#allocation6 + $0x34] ss:$8 sps:$4 sm:$0xff]  }
 0x1f0   :  { %v2966_v14 = vld [vmem:[#allocation6 + $0x134] ss:$8 sps:$4 sm:$0xff]  }
 0x1f2   :  { %1396 = vmatpush1.bf16.msra.mxu0 %v2871_v16  ;;  %1437 = vmatpush1.bf16.msra.mxu1 %v2874_v17  ;;  %v2961_v16 = vld [vmem:[#allocation6 + $0x30] ss:$8 sps:$4 sm:$0xff]  }
 0x1f3   :  { %1397 = vmatprep.subr.bf16.mxu0 %v2879_v18  ;;  %1438 = vmatprep.subr.bf16.mxu1 %v2882_v19  ;;  %v2964_v17 = vld [vmem:[#allocation6 + $0x130] ss:$8 sps:$4 sm:$0xff]   ;;  %v2969_v18 = vld [vmem:[#allocation6 + $0x24] ss:$8 sps:$4 sm:$0xff]  }
 0x1f4   :  { %v2972_v19 = vld [vmem:[#allocation6 + $0x124] ss:$8 sps:$4 sm:$0xff]  }
 0x1f6   :  { %1398 = vmatpush1.bf16.msra.mxu0 %v2877_v20  ;;  %1439 = vmatpush1.bf16.msra.mxu1 %v2880_v21  ;;  %v2967_v20 = vld [vmem:[#allocation6 + $0x20] ss:$8 sps:$4 sm:$0xff]  }
 0x1f7   :  { %1399 = vmatprep.subr.bf16.mxu0 %v2885_v22  ;;  %1440 = vmatprep.subr.bf16.mxu1 %v2888_v23  ;;  %v2970_v21 = vld [vmem:[#allocation6 + $0x120] ss:$8 sps:$4 sm:$0xff]   ;;  %v2975_v22 = vld [vmem:[#allocation6 + $0x14] ss:$8 sps:$4 sm:$0xff]  }
 0x1f8   :  { %v2978_v23 = vld [vmem:[#allocation6 + $0x114] ss:$8 sps:$4 sm:$0xff]  }
 0x1fa   :  { %1400 = vmatpush1.bf16.msra.mxu0 %v2883_v24  ;;  %1441 = vmatpush1.bf16.msra.mxu1 %v2886_v26  ;;  %v2973_v24 = vld [vmem:[#allocation6 + $0x10] ss:$8 sps:$4 sm:$0xff]  }
 0x1fb   :  { %1401 = vmatprep.subr.bf16.mxu0 %v2891_v27  ;;  %1442 = vmatprep.subr.bf16.mxu1 %v2894_v28  ;;  %v2976_v26 = vld [vmem:[#allocation6 + $0x110] ss:$8 sps:$4 sm:$0xff]  }
 0x1fe   :  { %1402 = vmatpush2.bf16.msra.mxu0 %v2889_v29  ;;  %1443 = vmatpush2.bf16.msra.mxu1 %v2892_v30 }
 0x1ff   :  { %1403 = vmatprep.subr.bf16.mxu0 %v2897_v31  ;;  %1444 = vmatprep.subr.bf16.mxu1 %v2900_v32 }
 0x202   :  { %1404 = vmatpush2.bf16.msra.mxu0 %v2895_v33  ;;  %1445 = vmatpush2.bf16.msra.mxu1 %v2898_v34 }
 0x203   :  { %1405 = vmatprep.subr.bf16.mxu0 %v2903_v35  ;;  %1446 = vmatprep.subr.bf16.mxu1 %v2906_v36  ;;  %v641_v35 = vld [vmem:[%s3445_s6] sm:$0xf] }
 0x204   :  { %v650_v36 = vrot.slane %v641_v35, %v3304_v4 }
 0x206   :  { %1406 = vmatpush2.bf16.msra.mxu0 %v2901_v37  ;;  %1447 = vmatpush2.bf16.msra.mxu1 %v2904_v38  ;;  %v646_v37 = vrot.slane %v641_v35, %v3297_v1 }
 0x207   :  { %1407 = vmatprep.subr.bf16.mxu0 %v2909_v39  ;;  %1448 = vmatprep.subr.bf16.mxu1 %v2912_v40 }
 0x20a   :  { %1408 = vmatpush2.bf16.msra.mxu0 %v2907_v11  ;;  %1449 = vmatpush2.bf16.msra.mxu1 %v2910_v41  ;;  %v654_v11 = vrot.slane %v641_v35, %v3299_v2 }
 0x20b   :  { %1409 = vmatprep.subr.bf16.mxu0 %v2915_v12  ;;  %1450 = vmatprep.subr.bf16.mxu1 %v2918_v42  ;;  %v658_v12 = vrot.slane %v641_v35, %v3309_v8  ;;  %v3026_v35 = vld [vmem:[#allocation6 + $0x194] ss:$8 sps:$4 sm:$0xff]  }
 0x20e   :  { %1410 = vmatpush2.bf16.msra.mxu0 %v2913_v15  ;;  %1451 = vmatpush2.bf16.msra.mxu1 %v2916_v43 }
 0x20f   :  { %1411 = vmatprep.subr.bf16.mxu0 %v2921_v25  ;;  %1452 = vmatprep.subr.bf16.mxu1 %v2924_v44 }
 0x212   :  { %1412 = vmatpush2.bf16.msra.mxu0 %v2919_v45  ;;  %1453 = vmatpush2.bf16.msra.mxu1 %v2922_v46 }
 0x213   :  { %1413 = vmatprep.subr.bf16.mxu0 %v2927_v47  ;;  %1454 = vmatprep.subr.bf16.mxu1 %v2930_v48 }
 0x216   :  { %1414 = vmatpush2.bf16.msra.mxu0 %v2925_v49  ;;  %1455 = vmatpush2.bf16.msra.mxu1 %v2928_v50 }
 0x217   :  { %1415 = vmatprep.subr.bf16.mxu0 %v2933_v51  ;;  %1456 = vmatprep.subr.bf16.mxu1 %v2936_v52 }
 0x21a   :  { %1416 = vmatpush2.bf16.msra.mxu0 %v2931_v55  ;;  %1457 = vmatpush2.bf16.msra.mxu1 %v2934_v56 }
 0x21b   :  { %1952 = vmatprep.subr.bf16.mxu0 %v2939_v58  ;;  %1993 = vmatprep.subr.bf16.mxu1 %v2942_v60 }
 0x21d   :  { %1418 = vmatmul.mubr.bf16.vlgmr.msra.gmra.mxu0 %v3350_v53  ;;  %1459 = vmatmul.mubr.bf16.vlgmr.msra.gmra.mxu1 %v3352_v54  ;;  %v2949_v53 = vld [vmem:[#allocation6 + $0x50] ss:$8 sps:$4 sm:$0xff]  }
 0x21e   :  { %1953 = vmatpush1.bf16.msra.mxu0 %v2937_v57  ;;  %1994 = vmatpush1.bf16.msra.mxu1 %v2940_v59  ;;  %v2952_v54 = vld [vmem:[#allocation6 + $0x150] ss:$8 sps:$4 sm:$0xff]  }
 0x21f   :  { %1954 = vmatprep.subr.bf16.mxu0 %v2945_v61  ;;  %1995 = vmatprep.subr.bf16.mxu1 %v2948_v62 }
 0x222   :  { %1955 = vmatpush1.bf16.msra.mxu0 %v2943_v63  ;;  %1996 = vmatpush1.bf16.msra.mxu1 %v2946_v0  ;;  %v2981_v0 = vld [vmem:[#allocation6 + $0x4] ss:$8 sps:$4 sm:$0xff]  }
 0x223   :  { %1956 = vmatprep.subr.bf16.mxu0 %v2951_v3  ;;  %1997 = vmatprep.subr.bf16.mxu1 %v2954_v5  ;;  %v2984_v3 = vld [vmem:[#allocation6 + $0x104] ss:$8 sps:$4 sm:$0xff]   ;;  %v2979_v5 = vld [vmem:[#allocation6] ss:$8 sps:$4 sm:$0xff]  }
 0x226   :  { %1957 = vmatpush1.bf16.msra.mxu0 %v2949_v53  ;;  %1998 = vmatpush1.bf16.msra.mxu1 %v2952_v54  ;;  %v2982_v53 = vld [vmem:[#allocation6 + $0x100] ss:$8 sps:$4 sm:$0xff]   ;;  %v2987_v54 = vld [vmem:[#allocation6 + $0xf4] ss:$8 sps:$4 sm:$0xff]  }
 0x227   :  { %1958 = vmatprep.subr.bf16.mxu0 %v2957_v6  ;;  %1999 = vmatprep.subr.bf16.mxu1 %v2960_v7  ;;  %v2990_v6 = vld [vmem:[#allocation6 + $0x1f4] ss:$8 sps:$4 sm:$0xff]   ;;  %v2985_v7 = vld [vmem:[#allocation6 + $0xf0] ss:$8 sps:$4 sm:$0xff]  }
 0x22a   :  { %1959 = vmatpush1.bf16.msra.mxu0 %v2955_v9  ;;  %2000 = vmatpush1.bf16.msra.mxu1 %v2958_v10  ;;  %v2988_v9 = vld [vmem:[#allocation6 + $0x1f0] ss:$8 sps:$4 sm:$0xff]   ;;  %v2993_v10 = vld [vmem:[#allocation6 + $0xe4] ss:$8 sps:$4 sm:$0xff]  }
 0x22b   :  { %1960 = vmatprep.subr.bf16.mxu0 %v2963_v13  ;;  %2001 = vmatprep.subr.bf16.mxu1 %v2966_v14  ;;  %v2996_v13 = vld [vmem:[#allocation6 + $0x1e4] ss:$8 sps:$4 sm:$0xff]   ;;  %v2991_v14 = vld [vmem:[#allocation6 + $0xe0] ss:$8 sps:$4 sm:$0xff]  }
 0x22e   :  { %1961 = vmatpush1.bf16.msra.mxu0 %v2961_v16  ;;  %2002 = vmatpush1.bf16.msra.mxu1 %v2964_v17  ;;  %v2994_v16 = vld [vmem:[#allocation6 + $0x1e0] ss:$8 sps:$4 sm:$0xff]   ;;  %v2999_v17 = vld [vmem:[#allocation6 + $0xd4] ss:$8 sps:$4 sm:$0xff]  }
 0x22f   :  { %1962 = vmatprep.subr.bf16.mxu0 %v2969_v18  ;;  %2003 = vmatprep.subr.bf16.mxu1 %v2972_v19  ;;  %v3002_v18 = vld [vmem:[#allocation6 + $0x1d4] ss:$8 sps:$4 sm:$0xff]   ;;  %v2997_v19 = vld [vmem:[#allocation6 + $0xd0] ss:$8 sps:$4 sm:$0xff]  }
 0x232   :  { %1963 = vmatpush1.bf16.msra.mxu0 %v2967_v20  ;;  %2004 = vmatpush1.bf16.msra.mxu1 %v2970_v21  ;;  %v3000_v20 = vld [vmem:[#allocation6 + $0x1d0] ss:$8 sps:$4 sm:$0xff]   ;;  %v3005_v21 = vld [vmem:[#allocation6 + $0xc4] ss:$8 sps:$4 sm:$0xff]  }
 0x233   :  { %1964 = vmatprep.subr.bf16.mxu0 %v2975_v22  ;;  %2005 = vmatprep.subr.bf16.mxu1 %v2978_v23  ;;  %v3008_v22 = vld [vmem:[#allocation6 + $0x1c4] ss:$8 sps:$4 sm:$0xff]   ;;  %v3003_v23 = vld [vmem:[#allocation6 + $0xc0] ss:$8 sps:$4 sm:$0xff]  }
 0x236   :  { %1965 = vmatpush1.bf16.msra.mxu0 %v2973_v24  ;;  %2006 = vmatpush1.bf16.msra.mxu1 %v2976_v26  ;;  %v3006_v24 = vld [vmem:[#allocation6 + $0x1c0] ss:$8 sps:$4 sm:$0xff]   ;;  %v3011_v26 = vld [vmem:[#allocation6 + $0xb4] ss:$8 sps:$4 sm:$0xff]  }
 0x237   :  { %1966 = vmatprep.subr.bf16.mxu0 %v2981_v0  ;;  %2007 = vmatprep.subr.bf16.mxu1 %v2984_v3 }
 0x23a   :  { %1967 = vmatpush1.bf16.msra.mxu0 %v2979_v5  ;;  %2008 = vmatpush1.bf16.msra.mxu1 %v2982_v53 }
 0x23b   :  { %1968 = vmatprep.subr.bf16.mxu0 %v2987_v54  ;;  %2009 = vmatprep.subr.bf16.mxu1 %v2990_v6 }
 0x23e   :  { %1969 = vmatpush2.bf16.msra.mxu0 %v2985_v7  ;;  %2010 = vmatpush2.bf16.msra.mxu1 %v2988_v9 }
 0x23f   :  { %1970 = vmatprep.subr.bf16.mxu0 %v2993_v10  ;;  %2011 = vmatprep.subr.bf16.mxu1 %v2996_v13 }
 0x242   :  { %1971 = vmatpush2.bf16.msra.mxu0 %v2991_v14  ;;  %2012 = vmatpush2.bf16.msra.mxu1 %v2994_v16 }
 0x243   :  { %1972 = vmatprep.subr.bf16.mxu0 %v2999_v17  ;;  %2013 = vmatprep.subr.bf16.mxu1 %v3002_v18 }
 0x246   :  { %1973 = vmatpush2.bf16.msra.mxu0 %v2997_v19  ;;  %2014 = vmatpush2.bf16.msra.mxu1 %v3000_v20 }
 0x247   :  { %1974 = vmatprep.subr.bf16.mxu0 %v3005_v21  ;;  %2015 = vmatprep.subr.bf16.mxu1 %v3008_v22  ;;  %v1620_v22 = vld [vmem:[%s3449_s10] sm:$0x3] }
 0x24a   :  { %1975 = vmatpush2.bf16.msra.mxu0 %v3003_v23  ;;  %2016 = vmatpush2.bf16.msra.mxu1 %v3006_v24  ;;  %v1625_v23 = vrot.slane %v1620_v22, %v3297_v1  ;;  %v1629_v24 = vrot.slane %v1620_v22, %v3304_v4 }
 0x24b   :  { %1976 = vmatprep.subr.bf16.mxu0 %v3011_v26 }
 0x29d   :  { %v1337_v27 = vpop.f32.mrf.mxu0  ;;  %v1378_v28 = vpop.f32.mrf.mxu1 }
 0x29e   :  { %v1338_v39 = vadd.f32 %v1337_v27, %v646_v37  ;;  %v3014_v27 = vld [vmem:[#allocation6 + $0x1b4] ss:$8 sps:$4 sm:$0xff]   ;;  %v3024_v37 = vld [vmem:[#allocation6 + $0x190] ss:$8 sps:$4 sm:$0xff]  }
 0x29f   :  { %v1339_v29 = vpop.f32.mrf.mxu0  ;;  %v1380_v30 = vpop.f32.mrf.mxu1  ;;  %2017 = vmatprep.subr.bf16.mxu1 %v3014_v27 }
 0x2a0   :  { %v1340_v38 = vadd.f32 %v1339_v29, %v650_v36  ;;  %v3366_v41 = vadd.f32 %v1378_v28, %v1338_v39  ;;  %v3009_v28 = vld [vmem:[#allocation6 + $0xb0] ss:$8 sps:$4 sm:$0xff]   ;;  %v3032_v39 = vld [vmem:[#allocation6 + $0x184] ss:$8 sps:$4 sm:$0xff]  }
 0x2a1   :  { %v1341_v31 = vpop.f32.mrf.mxu0  ;;  %v1382_v32 = vpop.f32.mrf.mxu1  ;;  %v3012_v29 = vld [vmem:[#allocation6 + $0x1b0] ss:$8 sps:$4 sm:$0xff]   ;;  %1977 = vmatpush2.bf16.msra.mxu0 %v3009_v28 }
 0x2a2   :  { %v3363_v40 = vadd.f32 %v1380_v30, %v1340_v38  ;;  %v1473_v46 = vmul.f32 %v3366_v41, %v3366_v41  ;;  %v3017_v30 = vld [vmem:[#allocation6 + $0xa4] ss:$8 sps:$4 sm:$0xff]   ;;  %2018 = vmatpush2.bf16.msra.mxu1 %v3012_v29  ;;  %v3015_v32 = vld [vmem:[#allocation6 + $0xa0] ss:$8 sps:$4 sm:$0xff]   ;;  %v3021_v36 = vld [vmem:[#allocation6 + $0x90] ss:$8 sps:$4 sm:$0xff]  }
 0x2a3   :  { %v1342_v33 = vpop.f32.mrf.mxu0  ;;  %v1383_v34 = vpop.f32.mrf.mxu1  ;;  %v3020_v31 = vld [vmem:[#allocation6 + $0x1a4] ss:$8 sps:$4 sm:$0xff]   ;;  %1978 = vmatprep.subr.bf16.mxu0 %v3017_v30 }
 0x2a4   :  { %v1474_v43 = vmul.f32 %v3363_v40, %v3363_v40  ;;  %v1467_v49 = vadd.f32 %v3363_v40, %v3366_v41  ;;  %v3018_v33 = vld [vmem:[#allocation6 + $0x1a0] ss:$8 sps:$4 sm:$0xff]   ;;  %2019 = vmatprep.subr.bf16.mxu1 %v3020_v31  ;;  %v3023_v34 = vld [vmem:[#allocation6 + $0x94] ss:$8 sps:$4 sm:$0xff]   ;;  %v3029_v38 = vld [vmem:[#allocation6 + $0x84] ss:$8 sps:$4 sm:$0xff]  }
 0x2a5   :  { %1979 = vmatpush2.bf16.msra.mxu0 %v3015_v32 }
 0x2a6   :  { %v1477_v57 = vadd.f32 %v1474_v43, %v1473_v46  ;;  %2020 = vmatpush2.bf16.msra.mxu1 %v3018_v33  ;;  %1980 = vmatprep.subr.bf16.mxu0 %v3023_v34 }
 0x2a7   :  { %2021 = vmatprep.subr.bf16.mxu1 %v3026_v35 }
 0x2a9   :  { %1981 = vmatpush2.bf16.msra.mxu0 %v3021_v36 }
 0x2aa   :  { %2022 = vmatpush2.bf16.msra.mxu1 %v3024_v37  ;;  %1982 = vmatprep.subr.bf16.mxu0 %v3029_v38 }
 0x2ab   :  { %2023 = vmatprep.subr.bf16.mxu1 %v3032_v39 }
 0x2dd   :  { %v1419_v42 = vpop.f32.mrf.mxu0  ;;  %v1460_v15 = vpop.f32.mrf.mxu1 }
 0x2de   :  { %v1420_v25 = vadd.f32 %v1419_v42, %v654_v11  ;;  %v3027_v11 = vld [vmem:[#allocation6 + $0x80] ss:$8 sps:$4 sm:$0xff]  }
 0x2df   :  { %v1421_v44 = vpop.f32.mrf.mxu0  ;;  %v1462_v45 = vpop.f32.mrf.mxu1  ;;  %1983 = vmatpush2.bf16.msra.mxu0 %v3027_v11 }
 0x2e0   :  { %v3373_v47 = vadd.f32 %v1460_v15, %v1420_v25  ;;  %v1422_v48 = vadd.f32 %v1421_v44, %v658_v12  ;;  %v3030_v12 = vld [vmem:[#allocation6 + $0x180] ss:$8 sps:$4 sm:$0xff]  }
 0x2e1   :  { %v1423_v50 = vpop.f32.mrf.mxu0  ;;  %v1464_v51 = vpop.f32.mrf.mxu1  ;;  %2024 = vmatpush2.bf16.msra.mxu1 %v3030_v12 }
 0x2e2   :  { %v1475_v52 = vmul.f32 %v3373_v47, %v3373_v47  ;;  %v3379_v55 = vadd.f32 %v1462_v45, %v1422_v48  ;;  %v1468_v56 = vadd.f32 %v1467_v49, %v3373_v47  ;;  %v1496_v49 = vld [vmem:[%s3446_s7] sm:$0xf] }
 0x2e3   :  { %v1424_v58 = vpop.f32.mrf.mxu0  ;;  %v1465_v59 = vpop.f32.mrf.mxu1  ;;  %v1522_v50 = vld [vmem:[%s3447_s8] sm:$0xf]  ;;  %v1505_v51 = vrot.slane %v1496_v49, %v3304_v4 }
 0x2e4   :  { %v1469_v60 = vadd.f32 %v1468_v56, %v3379_v55  ;;  %v1476_v61 = vmul.f32 %v3379_v55, %v3379_v55  ;;  %v1478_v62 = vadd.f32 %v1477_v57, %v1475_v52  ;;  %v1513_v52 = vrot.slane %v1496_v49, %v3309_v8 }
 0x2e5   :  { %v1501_v56 = vrot.slane %v1496_v49, %v3297_v1  ;;  %v1509_v57 = vrot.slane %v1496_v49, %v3299_v2  ;;  %v1539_v0 = vrot.slane %v1522_v50, %v3309_v8  ;;  %v1527_v3 = vrot.slane %v1522_v50, %v3297_v1  ;;  %v3041_v49 = vld [vmem:[#allocation7 + $0x58] sm:$0xff]  }
 0x2e6   :  { %1470 = vadd.xlane.f32.xlu1 %v1469_v60  ;;  %v1479_v63 = vadd.f32 %v1478_v62, %v1476_v61  ;;  %v1535_v5 = vrot.slane %v1522_v50, %v3299_v2 }
 0x2ea   :  { %1480 = vadd.xlane.f32.xlu1 %v1479_v63  ;;  %v1531_v63 = vrot.slane %v1522_v50, %v3304_v4  ;;  %v3042_v50 = vld [vmem:[#allocation7 + $0x18] sm:$0xff]  }
 0x36f   :  { %v1471_v42 = vpop.xlane.xlu1 %1470 }
 0x370   :  { %v1472_v15 = vmul.f32 0.001953125, %v1471_v42  ;;  %v3033_v42 = vld [vmem:[#allocation7 + $0x78] sm:$0xff]  }
 0x371   :  { %2632 = vmatprep.subr.bf16.mxu0 %v3033_v42 }
 0x372   :  { %v1483_v25 = vmul.f32 %v1472_v15, %v1472_v15  ;;  %v1486_v58 = vsub.f32 %v3366_v41, %v1472_v15  ;;  %v1488_v59 = vsub.f32 %v3373_v47, %v1472_v15  ;;  %v1487_v60 = vsub.f32 %v3363_v40, %v1472_v15 }
 0x373   :  { %v1481_v43 = vpop.xlane.xlu1 %1480  ;;  %v1489_v61 = vsub.f32 %v3379_v55, %v1472_v15  ;;  %v3034_v15 = vld [vmem:[#allocation7 + $0x38] sm:$0xff]  }
 0x374   :  { %v1482_v44 = vmul.f32 0.001953125, %v1481_v43  ;;  %v3035_v43 = vld [vmem:[#allocation7 + $0x70] sm:$0xff]  }
 0x376   :  { %v1484_v45 = vsub.f32 %v1482_v44, %v1483_v25  ;;  %v3036_v25 = vld [vmem:[#allocation7 + $0x30] sm:$0xff]   ;;  %v3037_v44 = vld [vmem:[#allocation7 + $0x68] sm:$0xff]  }
 0x378   :  { %v1485_v46 = vmax.f32 %v1484_v45, 0.0  ;;  %v3038_v45 = vld [vmem:[#allocation7 + $0x28] sm:$0xff]  }
 0x37a   :  { %v1490_v48 = vadd.f32 1e-05, %v1485_v46  ;;  %v3039_v46 = vld [vmem:[#allocation7 + $0x60] sm:$0xff]  }
 0x37c   :  { %3059 = vrsqrt.f32 %v1490_v48  ;;  %v3040_v48 = vld [vmem:[#allocation7 + $0x20] sm:$0xff]  }
 0x389   :  { %v3060_v62 = vpop.eup %3059 }
 0x38a   :  { %v1493_v53 = vmul.f32 %v3060_v62, %v1487_v60  ;;  %v1495_v54 = vmul.f32 %v3060_v62, %v1489_v61  ;;  %v1492_v6 = vmul.f32 %v3060_v62, %v1486_v58  ;;  %v1494_v7 = vmul.f32 %v3060_v62, %v1488_v59  ;;  %v3047_v58 = vld [vmem:[#allocation7 + $0x40] sm:$0xff]   ;;  %v3049_v60 = vld [vmem:[#allocation9 + $0x38] sm:$0xff]   ;;  %v3050_v62 = vld [vmem:[#allocation9 + $0x30] sm:$0xff]  }
 0x38b   :  { %v3048_v59 = vld [vmem:[#allocation7] sm:$0xff]   ;;  %v3181_v61 = vmov 0.0  }
 0x38c   :  { %v1519_v41 = vmul.f32 %v1505_v51, %v1493_v53  ;;  %v1521_v9 = vmul.f32 %v1513_v52, %v1495_v54  ;;  %v1518_v47 = vmul.f32 %v1501_v56, %v1492_v6  ;;  %v1520_v10 = vmul.f32 %v1509_v57, %v1494_v7  ;;  %v3043_v51 = vld [vmem:[#allocation7 + $0x50] sm:$0xff]   ;;  %v3045_v56 = vld [vmem:[#allocation7 + $0x48] sm:$0xff]   ;;  %2663 = vmatprep.subr.bf16.mxu1 %v3181_v61 }
 0x38d   :  { %v3044_v52 = vld [vmem:[#allocation7 + $0x10] sm:$0xff]   ;;  %v3046_v57 = vld [vmem:[#allocation7 + $0x8] sm:$0xff]  }
 0x38e   :  { %v1545_v40 = vadd.f32 %v1531_v63, %v1519_v41  ;;  %v1547_v13 = vadd.f32 %v1539_v0, %v1521_v9  ;;  %v1544_v55 = vadd.f32 %v1527_v3, %v1518_v47  ;;  %v1546_v14 = vadd.f32 %v1535_v5, %v1520_v10  ;;  %v3051_v63 = vld [vmem:[#allocation9 + $0x28] sm:$0xff]   ;;  %v3052_v0 = vld [vmem:[#allocation9 + $0x20] sm:$0xff]   ;;  %v3053_v3 = vld [vmem:[#allocation9 + $0x18] sm:$0xff]  }
 0x38f   :  { %v2054_v10 = vld [vmem:[%s3450_s11] sm:$0x3] }
 0x390   :  { %v1549_v16 = vmax.f32 %v1545_v40, 0.0  ;;  %v1551_v17 = vmax.f32 %v1547_v13, 0.0  ;;  %v1548_v18 = vmax.f32 %v1544_v55, 0.0  ;;  %v1550_v8 = vmax.f32 %v1546_v14, 0.0  ;;  %v2068_v40 = vld [vmem:[%s3451_s12] sm:$0x3] }
 0x391   :  { %v2059_v14 = vrot.slane %v2054_v10, %v3297_v1 }
 0x392   :  { %v1553_v19 = vpack.c.bf16 %v1549_v16, %v1549_v16  ;;  %v1555_v20 = vpack.c.bf16 %v1551_v17, %v1551_v17  ;;  %v1552_v21 = vpack.c.bf16 %v1548_v18, %v1548_v18  ;;  %v1554_v2 = vpack.c.bf16 %v1550_v8, %v1550_v8 }
 0x393   :  { %v2063_v16 = vrot.slane %v2054_v10, %v3304_v4  ;;  %v2073_v8 = vrot.slane %v2068_v40, %v3297_v1  ;;  %v3056_v1 = vld [vmem:[#allocation9] sm:$0xff]  }
 0x394   :  { %1984 = vmatprep.mubr.bf16.mxu0 %v1553_v19  ;;  %2025 = vmatprep.mubr.bf16.mxu1 %v1555_v20  ;;  %v2077_v19 = vrot.slane %v2068_v40, %v3304_v4 }
 0x395   :  { %1985 = vmatmul.mubr.bf16.vlgmr.msra.gmra.mxu0 %v1552_v21  ;;  %2026 = vmatmul.mubr.bf16.vlgmr.msra.gmra.mxu1 %v1554_v2 }
 0x396   :  { %2633 = vmatpush3.bf16.msra.mxu0 %v3034_v15  ;;  %2664 = vmatpush3.bf16.msra.mxu1 %v3049_v60 }
 0x397   :  { %2634 = vmatprep.subr.bf16.mxu0 %v3035_v43  ;;  %2665 = vmatprep.subr.bf16.mxu1 %v3181_v61 }
 0x398   :  { %2679 = vmatprep.mubr.msk.bf16.mxu1 %vm3182_vm0, %v3181_v61 }
 0x39a   :  { %2635 = vmatpush3.bf16.msra.mxu0 %v3036_v25  ;;  %2666 = vmatpush3.bf16.msra.mxu1 %v3050_v62 }
 0x39b   :  { %2636 = vmatprep.subr.bf16.mxu0 %v3037_v44  ;;  %2667 = vmatprep.subr.bf16.mxu1 %v3181_v61 }
 0x39e   :  { %2637 = vmatpush3.bf16.msra.mxu0 %v3038_v45  ;;  %2668 = vmatpush3.bf16.msra.mxu1 %v3051_v63 }
 0x39f   :  { %2638 = vmatprep.subr.bf16.mxu0 %v3039_v46  ;;  %2669 = vmatprep.subr.bf16.mxu1 %v3181_v61 }
 0x3a2   :  { %2639 = vmatpush3.bf16.msra.mxu0 %v3040_v48  ;;  %2670 = vmatpush3.bf16.msra.mxu1 %v3052_v0 }
 0x3a3   :  { %2640 = vmatprep.subr.bf16.mxu0 %v3041_v49  ;;  %2671 = vmatprep.subr.bf16.mxu1 %v3181_v61 }
 0x3a6   :  { %2641 = vmatpush3.bf16.msra.mxu0 %v3042_v50  ;;  %2672 = vmatpush3.bf16.msra.mxu1 %v3053_v3 }
 0x3a7   :  { %2642 = vmatprep.subr.bf16.mxu0 %v3043_v51  ;;  %2673 = vmatprep.subr.bf16.mxu1 %v3181_v61 }
 0x3aa   :  { %2643 = vmatpush3.bf16.msra.mxu0 %v3044_v52 }
 0x3ab   :  { %2644 = vmatprep.subr.bf16.mxu0 %v3045_v56 }
 0x3ae   :  { %2645 = vmatpush3.bf16.msra.mxu0 %v3046_v57 }
 0x3af   :  { %2646 = vmatprep.subr.bf16.mxu0 %v3047_v58 }
 0x3b2   :  { %2647 = vmatpush3.bf16.msra.mxu0 %v3048_v59 }
 0x455   :  { %v1986_v26 = vpop.f32.mrf.mxu0  ;;  %v2027_v27 = vpop.f32.mrf.mxu1 }
 0x456   :  { %v1987_v28 = vadd.f32 %v1986_v26, %v1625_v23 }
 0x457   :  { %v1988_v29 = vpop.f32.mrf.mxu0  ;;  %v2029_v30 = vpop.f32.mrf.mxu1 }
 0x458   :  { %v3408_v31 = vadd.f32 %v2027_v27, %v1987_v28  ;;  %v1989_v32 = vadd.f32 %v1988_v29, %v1629_v24  ;;  %v3054_v29 = vld [vmem:[#allocation9 + $0x10] sm:$0xff]  }
 0x459   :  { %v1990_v33 = vpop.f32.mrf.mxu0  ;;  %v2031_v34 = vpop.f32.mrf.mxu1  ;;  %2674 = vmatpush3.bf16.msra.mxu1 %v3054_v29 }
 0x45a   :  { %v3410_v35 = vadd.f32 %v2029_v30, %v1989_v32  ;;  %v2039_v39 = vmul.f32 %v3408_v31, %v3408_v31  ;;  %2675 = vmatprep.subr.bf16.mxu1 %v3181_v61  ;;  %v3055_v30 = vld [vmem:[#allocation9 + $0x8] sm:$0xff]  }
 0x45b   :  { %v1991_v36 = vpop.f32.mrf.mxu0  ;;  %v2032_v37 = vpop.f32.mrf.mxu1 }
 0x45c   :  { %v2034_v38 = vadd.f32 %v3410_v35, %v3408_v31  ;;  %v2040_v11 = vmul.f32 %v3410_v35, %v3410_v35 }
 0x45d   :  { %2676 = vmatpush3.bf16.msra.mxu1 %v3055_v30 }
 0x45e   :  { %2035 = vadd.xlane.f32.xlu0 %v2034_v38  ;;  %v2041_v12 = vadd.f32 %v2040_v11, %v2039_v39  ;;  %2677 = vmatprep.subr.bf16.mxu1 %v3181_v61  ;;  %v2623_v39 = vld [vmem:[%s3455_s16] ss:$0 sm:$0xff] }
 0x460   :  { %2042 = vadd.xlane.f32.xlu1 %v2041_v12 }
 0x461   :  { %2678 = vmatpush3.bf16.msra.mxu1 %v3056_v1 }
 0x4e7   :  { %v2036_v5 = vpop.xlane.xlu0 %2035 }
 0x4e8   :  { %v2038_v53 = vmul.f32 0.00390625, %v2036_v5 }
 0x4e9   :  { %v2043_v54 = vpop.xlane.xlu1 %2042 }
 0x4ea   :  { %v2044_v6 = vmul.f32 0.00390625, %v2043_v54  ;;  %v2045_v7 = vmul.f32 %v2038_v53, %v2038_v53  ;;  %v2048_v13 = vsub.f32 %v3408_v31, %v2038_v53  ;;  %v2049_v55 = vsub.f32 %v3410_v35, %v2038_v53  ;;  %v2606_v31 = vld [vmem:[%s3453_s14] ss:$0 sm:$0xff] }
 0x4ec   :  { %v2046_v41 = vsub.f32 %v2044_v6, %v2045_v7 }
 0x4ee   :  { %v2047_v9 = vmax.f32 %v2046_v41, 0.0 }
 0x4f0   :  { %v2050_v47 = vadd.f32 1e-05, %v2047_v9 }
 0x4f2   :  { %3061 = vrsqrt.f32 %v2050_v47 }
 0x4ff   :  { %v3062_v17 = vpop.eup %3061 }
 0x500   :  { %v2053_v18 = vmul.f32 %v3062_v17, %v2049_v55  ;;  %v2052_v20 = vmul.f32 %v3062_v17, %v2048_v13 }
 0x502   :  { %v2067_v21 = vmul.f32 %v2063_v16, %v2053_v18  ;;  %v2066_v2 = vmul.f32 %v2059_v14, %v2052_v20 }
 0x504   :  { %v2081_v22 = vadd.f32 %v2077_v19, %v2067_v21  ;;  %v2080_v23 = vadd.f32 %v2073_v8, %v2066_v2 }
 0x506   :  { %v2083_v24 = vmax.f32 %v2081_v22, 0.0  ;;  %v2082_v26 = vmax.f32 %v2080_v23, 0.0 }
 0x508   :  { %v2085_v27 = vpack.c.bf16 %v2083_v24, %v2083_v24  ;;  %v2084_v28 = vpack.c.bf16 %v2082_v26, %v2082_v26 }
 0x50a   :  { %2253 = vmatprep.mubr.bf16.mxu0 %v2085_v27 }
 0x50b   :  { %2254 = vmatmul.mubr.bf16.vlgmr.msra.gmra.mxu0 %v2084_v28 }
 0x5cb   :  { %v2648_v4 = vpop.f32.mrf.mxu0 }
 0x5cd   :  { %v2649_v32 = vpop.f32.mrf.mxu0 }
 0x5ce   :  { %v2650_v33 = vadd.f32 %v2649_v32, %v2648_v4 }
 0x5cf   :  { %v2651_v34 = vpop.f32.mrf.mxu0 }
 0x5d0   :  { %v2256_v35 = vadd.f32 %v2650_v33, %v2606_v31 }
 0x5d1   :  { %v2652_v36 = vpop.f32.mrf.mxu0 }
 0x5d2   :  { %v2261_v37 = vmax.f32 %v2256_v35, 0.0 }
 0x5d4   :  { %v2262_v38 = vpack.c.bf16 %v2261_v37, %v2261_v37 }
 0x5d6   :  { %2680 = vmatmul.mubr.bf16.vlgmr.msra.gmra.mxu1 %v2262_v38 }
 0x696   :  { %v2368_v11 = vpop.f32.mrf.mxu1 }
 0x697   :  { %v2369_v12 = vadd.f32 %v2623_v39, %v2368_v11 }
 0x698   :  { %v2681_v42 = vpop.f32.mrf.mxu1 }
 0x699   :  { %2374 = vst [vmem:[%s3456_s17] sm:$0xff] %v2369_v12 }
 0x69a   :  { %v2371_v15 = vpop.f32.mrf.mxu1 }
 0x69c   :  { %v2682_v43 = vpop.f32.mrf.mxu1 }
 0x69d   :  { %2379 = vsyncpa [#allocation3], 1 }
 0x69e   :  { %2380 = vsyncpa [#allocation5], 1 }
 0x69f   :  { %2381 = vsyncpa [#allocation8], 1 }

// kernel: _forward.1
= control target key start
LH: loop header
LB: loop body
LE: loop exit
PB: predicated region body
PF: predicated region fallthrough
CT: control target
= control target key end

     0   :  { %s3439_s0 = inlined_call_operand.vmem [shape: f32[8,128], index: 0, kind: input, shape index: {}]   ;;  %s3440_s1 = inlined_call_operand.hbm [shape: bf16[128,512], index: 1, kind: input, shape index: {}]   ;;  %s3441_s2 = inlined_call_operand.vmem [shape: f32[1,512], index: 2, kind: input, shape index: {}]   ;;  %s3442_s3 = inlined_call_operand.vmem [shape: f32[1,512], index: 3, kind: input, shape index: {}]   ;;  %s3443_s4 = inlined_call_operand.vmem [shape: f32[1,512], index: 4, kind: input, shape index: {}]   ;;  %s3444_s5 = inlined_call_operand.hbm [shape: bf16[512,512], index: 5, kind: input, shape index: {}]   ;;  %s3445_s6 = inlined_call_operand.vmem [shape: f32[1,512], index: 6, kind: input, shape index: {}]   ;;  %s3446_s7 = inlined_call_operand.vmem [shape: f32[1,512], index: 7, kind: input, shape index: {}]   ;;  %s3447_s8 = inlined_call_operand.vmem [shape: f32[1,512], index: 8, kind: input, shape index: {}]   ;;  %s3448_s9 = inlined_call_operand.hbm [shape: bf16[512,256], index: 9, kind: input, shape index: {}]   ;;  %s3449_s10 = inlined_call_operand.vmem [shape: f32[1,256], index: 10, kind: input, shape index: {}]   ;;  %s3450_s11 = inlined_call_operand.vmem [shape: f32[1,256], index: 11, kind: input, shape index: {}]   ;;  %s3451_s12 = inlined_call_operand.vmem [shape: f32[1,256], index: 12, kind: input, shape index: {}]   ;;  %s3452_s13 = inlined_call_operand.hbm [shape: bf16[256,128], index: 13, kind: input, shape index: {}]   ;;  %s3453_s14 = inlined_call_operand.vmem [shape: f32[1,128], index: 14, kind: input, shape index: {}]   ;;  %s3454_s15 = inlined_call_operand.hbm [shape: bf16[128,128], index: 15, kind: input, shape index: {}]   ;;  %s3455_s16 = inlined_call_operand.vmem [shape: f32[1,128], index: 16, kind: input, shape index: {}]   ;;  %s3456_s17 = inlined_call_operand.vmem [shape: f32[8,128], index: 17, kind: output, shape index: {}]  }
   0x1   :  { %3457 = sst [smem:[#allocation13_spill]] %s3439_s0 }
   0x2   :  { %3458 = sst [smem:[#allocation14_spill]] %s3440_s1 }
   0x3   :  { %22 = vsyncpa [#allocation3], 0 }
   0x4   :  { %23 = vsyncpa [#allocation5], 0 }
   0x5   :  { %24 = vsyncpa [#allocation8], 0  ;;  %s3169_s24 = smov [#allocation4]   ;;  %s3170_s26 = smov [#allocation7]  }
   0x6   :  { %s50_s25 = sshll.u32 %s3169_s24, 4  ;;  %s86_s27 = sshll.u32 %s3170_s26, 4  ;;  %s51_s25 = int_to_ptr.vmem [resolvable:$true] %s50_s25  ;;  %s87_s27 = int_to_ptr.vmem [resolvable:$true] %s86_s27 }
   0x7   :  { %s3071_s28 = scalar_lea.vmem %s51_s25, 16384  ;;  %p3076_p1 = scmp.lt.s32.totalorder %s51_s25, %s51_s25 }
   0x8   :  { %p3072_p0 = scmp.ne.s32.totalorder %s51_s25, %s3071_s28  ;;  %p3077_p2 = scmp.lt.s32.totalorder %s3071_s28, %s3071_s28 }
   0xa   :  { %p3078_p3 = por %p3077_p2, %p3076_p1 }
   0xc   :  { %p3079_p4 = pnand %p3078_p3, %p3072_p0 }
   0xe   :  { %3082 = shalt.err (!%p3079_p4)
}
   0xf   :  { %s3171_s29 = smov 256   ;;  %s3172_s0 = smov 16  }
  0x10   :  { %56 = dma.hbm_to_vmem [thread:$0]  %s3444_s5, 16384, %s51_s25, [#allocation5], %s3171_s29, %s3171_s29, %s3172_s0  }
  0x11   :  { %s3091_s19 = scalar_lea.vmem %s87_s27, 2048  ;;  %p3096_p6 = scmp.lt.s32.totalorder %s87_s27, %s87_s27 }
  0x12   :  { %p3092_p5 = scmp.ne.s32.totalorder %s87_s27, %s3091_s19  ;;  %p3097_p7 = scmp.lt.s32.totalorder %s3091_s19, %s3091_s19 }
  0x14   :  { %p3098_p8 = por %p3097_p7, %p3096_p6 }
  0x16   :  { %p3099_p9 = pnand %p3098_p8, %p3092_p5 }
  0x18   :  { %3102 = shalt.err (!%p3099_p9)
}
  0x19   :  { %s3173_s1 = smov 64   ;;  %s3174_s20 = smov 4  }
  0x1a   :  { %92 = dma.hbm_to_vmem [thread:$0]  %s3452_s13, 2048, %s87_s27, [#allocation8], %s3173_s1, %s3173_s1, %s3174_s20  }
  0x1b   :  { %s3175_s23 = smov [#allocation2]   ;;  %s3176_s26 = smov [#allocation6]  }
  0x1c   :  { %s32_s24 = sshll.u32 %s3175_s23, 4  ;;  %s68_s5 = sshll.u32 %s3176_s26, 4  ;;  %s33_s24 = int_to_ptr.vmem [resolvable:$true] %s32_s24  ;;  %s69_s5 = int_to_ptr.vmem [resolvable:$true] %s68_s5 }
  0x1d   :  { %s3111_s25 = scalar_lea.vmem %s33_s24, 4096  ;;  %p3116_p11 = scmp.lt.s32.totalorder %s33_s24, %s33_s24 }
  0x1e   :  { %p3112_p10 = scmp.ne.s32.totalorder %s33_s24, %s3111_s25  ;;  %p3117_p12 = scmp.lt.s32.totalorder %s3111_s25, %s3111_s25 }
  0x20   :  { %p3118_p13 = por %p3117_p12, %p3116_p11 }
  0x22   :  { %p3119_p0 = pnand %p3118_p13, %p3112_p10 }
  0x24   :  { %3122 = shalt.err (!%p3119_p0)
}
  0x25   :  { %s3459_s18 = sld [smem:[#allocation14_spill]]  ;;  %s3131_s19 = scalar_lea.vmem %s69_s5, 8192 }
  0x26   :  { %p3132_p1 = scmp.ne.s32.totalorder %s69_s5, %s3131_s19  ;;  %p3136_p2 = scmp.lt.s32.totalorder %s69_s5, %s69_s5 }
  0x27   :  { %p3137_p3 = scmp.lt.s32.totalorder %s3131_s19, %s3131_s19 }
  0x29   :  { %p3138_p4 = por %p3137_p3, %p3136_p2 }
  0x2b   :  { %38 = dma.hbm_to_vmem [thread:$0]  %s3459_s18, 4096, %s33_s24, [#allocation3], %s3171_s29, %s3171_s29, %s3172_s0  }
  0x2c   :  { %p3139_p5 = pnand %p3138_p4, %p3132_p1 }
  0x2e   :  { %3142 = shalt.err (!%p3139_p5)
}
  0x2f   :  { %s3177_s13 = smov 128   ;;  %s3178_s27 = smov 8  }
  0x30   :  { %74 = dma.hbm_to_vmem [thread:$0]  %s3448_s9, 8192, %s69_s5, [#allocation5], %s3177_s13, %s3177_s13, %s3178_s27  }
  0x31   :  { %s3179_s23 = smov [#allocation9]  }
  0x32   :  { %s100_s26 = sshll.u32 %s3179_s23, 4  ;;  %s101_s26 = int_to_ptr.vmem [resolvable:$true] %s100_s26 }
  0x33   :  { %s3151_s25 = scalar_lea.vmem %s101_s26, 1024  ;;  %p3156_p7 = scmp.lt.s32.totalorder %s101_s26, %s101_s26 }
  0x34   :  { %p3152_p6 = scmp.ne.s32.totalorder %s101_s26, %s3151_s25  ;;  %p3157_p8 = scmp.lt.s32.totalorder %s3151_s25, %s3151_s25 }
  0x36   :  { %p3158_p9 = por %p3157_p8, %p3156_p7 }
  0x38   :  { %p3159_p10 = pnand %p3158_p9, %p3152_p6 }
  0x3a   :  { %3162 = shalt.err (!%p3159_p10)
}
  0x3b   :  { %106 = dma.hbm_to_vmem [thread:$0]  %s3454_s15, 1024, %s101_s26, [#allocation8], %s3173_s1, %s3173_s1, %s3174_s20  }
  0x3c   :  { %3163 = dma.done.wait [#allocation3], 4096  }
  0x3d   :  { %3164 = vsyncadd [#allocation3], 4294963200 }
  0x3e   :  { %3165 = dma.done.wait [#allocation5], 24576  }
  0x3f   :  { %3166 = vsyncadd [#allocation5], 4294942720 }
  0x40   :  { %3167 = dma.done.wait [#allocation8], 3072  }
  0x41   :  { %3168 = vsyncadd [#allocation8], 4294964224  ;;  %v3180_v0 = vmov 0   ;;  %v2697_v1 = vld [vmem:[#allocation2 + $0xe4] ss:$16 sps:$4 sm:$0xff]   ;;  %s3460_s1 = sld [smem:[#allocation13_spill]]  ;;  %v161_v63 = vlaneseq }
  0x42   :  { %373 = vmatprep.mubr.bf16.mxu0 %v3180_v0  ;;  %414 = vmatprep.mubr.bf16.mxu1 %v3180_v0  ;;  %v2699_v2 = vld [vmem:[#allocation2 + $0xec] ss:$16 sps:$4 sm:$0xff]   ;;  %v2701_v3 = vld [vmem:[#allocation2 + $0xe0] ss:$16 sps:$4 sm:$0xff]   ;;  %v2702_v4 = vld [vmem:[#allocation2 + $0xe8] ss:$16 sps:$4 sm:$0xff]  }
  0x43   :  { %341 = vmatprep.subr.bf16.mxu0 %v2697_v1  ;;  %382 = vmatprep.subr.bf16.mxu1 %v2699_v2  ;;  %v2703_v5 = vld [vmem:[#allocation2 + $0xc4] ss:$16 sps:$4 sm:$0xff]   ;;  %v2705_v6 = vld [vmem:[#allocation2 + $0xcc] ss:$16 sps:$4 sm:$0xff]   ;;  %v2707_v7 = vld [vmem:[#allocation2 + $0xc0] ss:$16 sps:$4 sm:$0xff]  }
  0x44   :  { %342 = vmatpush1.bf16.msra.mxu0 %v2701_v3  ;;  %383 = vmatpush1.bf16.msra.mxu1 %v2702_v4  ;;  %v2708_v8 = vld [vmem:[#allocation2 + $0xc8] ss:$16 sps:$4 sm:$0xff]   ;;  %v2709_v9 = vld [vmem:[#allocation2 + $0xa4] ss:$16 sps:$4 sm:$0xff]   ;;  %v2711_v10 = vld [vmem:[#allocation2 + $0xac] ss:$16 sps:$4 sm:$0xff]  }
  0x45   :  { %343 = vmatprep.subr.bf16.mxu0 %v2703_v5  ;;  %384 = vmatprep.subr.bf16.mxu1 %v2705_v6  ;;  %v2713_v11 = vld [vmem:[#allocation2 + $0xa0] ss:$16 sps:$4 sm:$0xff]   ;;  %v2714_v12 = vld [vmem:[#allocation2 + $0xa8] ss:$16 sps:$4 sm:$0xff]   ;;  %v2715_v13 = vld [vmem:[#allocation2 + $0x84] ss:$16 sps:$4 sm:$0xff]  }
  0x46   :  { %v2717_v14 = vld [vmem:[#allocation2 + $0x8c] ss:$16 sps:$4 sm:$0xff]   ;;  %v2719_v15 = vld [vmem:[#allocation2 + $0x80] ss:$16 sps:$4 sm:$0xff]   ;;  %v2720_v16 = vld [vmem:[#allocation2 + $0x88] ss:$16 sps:$4 sm:$0xff]  }
  0x47   :  { %v2721_v17 = vld [vmem:[#allocation2 + $0x64] ss:$16 sps:$4 sm:$0xff]   ;;  %v2723_v18 = vld [vmem:[#allocation2 + $0x6c] ss:$16 sps:$4 sm:$0xff]   ;;  %v2725_v19 = vld [vmem:[#allocation2 + $0x60] ss:$16 sps:$4 sm:$0xff]  }
  0x48   :  { %344 = vmatpush1.bf16.msra.mxu0 %v2707_v7  ;;  %385 = vmatpush1.bf16.msra.mxu1 %v2708_v8  ;;  %v2726_v20 = vld [vmem:[#allocation2 + $0x68] ss:$16 sps:$4 sm:$0xff]   ;;  %v2727_v21 = vld [vmem:[#allocation2 + $0x44] ss:$16 sps:$4 sm:$0xff]   ;;  %v2729_v22 = vld [vmem:[#allocation2 + $0x4c] ss:$16 sps:$4 sm:$0xff]  }
  0x49   :  { %345 = vmatprep.subr.bf16.mxu0 %v2709_v9  ;;  %386 = vmatprep.subr.bf16.mxu1 %v2711_v10  ;;  %v2731_v23 = vld [vmem:[#allocation2 + $0x40] ss:$16 sps:$4 sm:$0xff]   ;;  %v2732_v24 = vld [vmem:[#allocation2 + $0x48] ss:$16 sps:$4 sm:$0xff]   ;;  %v2733_v25 = vld [vmem:[#allocation2 + $0x24] ss:$16 sps:$4 sm:$0xff]  }
  0x4a   :  { %v2735_v26 = vld [vmem:[#allocation2 + $0x2c] ss:$16 sps:$4 sm:$0xff]   ;;  %v2737_v27 = vld [vmem:[#allocation2 + $0x20] ss:$16 sps:$4 sm:$0xff]   ;;  %v2738_v28 = vld [vmem:[#allocation2 + $0x28] ss:$16 sps:$4 sm:$0xff]  }
  0x4b   :  { %v2739_v29 = vld [vmem:[#allocation2 + $0x4] ss:$16 sps:$4 sm:$0xff]   ;;  %v2741_v30 = vld [vmem:[#allocation2 + $0xc] ss:$16 sps:$4 sm:$0xff]   ;;  %v2743_v31 = vld [vmem:[#allocation2] ss:$16 sps:$4 sm:$0xff]  }
  0x4c   :  { %346 = vmatpush1.bf16.msra.mxu0 %v2713_v11  ;;  %387 = vmatpush1.bf16.msra.mxu1 %v2714_v12  ;;  %v2744_v32 = vld [vmem:[#allocation2 + $0x8] ss:$16 sps:$4 sm:$0xff]   ;;  %v125_v33 = vld [vmem:[%s3460_s1] sm:$0xff]  ;;  %v162_v0 = vshrl.u32 %v161_v63, 7  ;;  %vm3182_vm0 = vmmov 0  }
  0x4d   :  { %347 = vmatprep.subr.bf16.mxu0 %v2715_v13  ;;  %388 = vmatprep.subr.bf16.mxu1 %v2717_v14  ;;  %v126_v34 = vpack.c.bf16 %v125_v33, %v125_v33  ;;  %v2745_v35 = vld [vmem:[#allocation4 + $0xe0] ss:$16 sps:$4 sm:$0xff]   ;;  %v2747_v36 = vld [vmem:[#allocation4 + $0xe4] ss:$16 sps:$4 sm:$0xff]  }
  0x4e   :  { %v2748_v37 = vld [vmem:[#allocation4 + $0x2e0] ss:$16 sps:$4 sm:$0xff]   ;;  %v2750_v38 = vld [vmem:[#allocation4 + $0x2e4] ss:$16 sps:$4 sm:$0xff]   ;;  %v3297_v1 = vsub.s32 0, %v162_v0  ;;  %v3299_v2 = vsub.s32 2, %v162_v0 }
  0x4f   :  { %v2753_v39 = vld [vmem:[#allocation4 + $0xc4] ss:$16 sps:$4 sm:$0xff]   ;;  %v2751_v41 = vld [vmem:[#allocation4 + $0xc0] ss:$16 sps:$4 sm:$0xff]   ;;  %v3304_v4 = vsub.s32 1, %v162_v0  ;;  %v3309_v8 = vsub.s32 3, %v162_v0 }
  0x50   :  { %348 = vmatpush1.bf16.msra.mxu0 %v2719_v15  ;;  %389 = vmatpush1.bf16.msra.mxu1 %v2720_v16  ;;  %v2756_v40 = vld [vmem:[#allocation4 + $0x2c4] ss:$16 sps:$4 sm:$0xff]   ;;  %v2754_v42 = vld [vmem:[#allocation4 + $0x2c0] ss:$16 sps:$4 sm:$0xff]  }
  0x51   :  { %349 = vmatprep.subr.bf16.mxu0 %v2721_v17  ;;  %390 = vmatprep.subr.bf16.mxu1 %v2723_v18  ;;  %v2759_v43 = vld [vmem:[#allocation4 + $0xa4] ss:$16 sps:$4 sm:$0xff]   ;;  %v2757_v45 = vld [vmem:[#allocation4 + $0xa0] ss:$16 sps:$4 sm:$0xff]  }
  0x52   :  { %v2762_v44 = vld [vmem:[#allocation4 + $0x2a4] ss:$16 sps:$4 sm:$0xff]   ;;  %v2760_v46 = vld [vmem:[#allocation4 + $0x2a0] ss:$16 sps:$4 sm:$0xff]  }
  0x53   :  { %v2765_v47 = vld [vmem:[#allocation4 + $0x84] ss:$16 sps:$4 sm:$0xff]   ;;  %v2763_v49 = vld [vmem:[#allocation4 + $0x80] ss:$16 sps:$4 sm:$0xff]  }
  0x54   :  { %350 = vmatpush1.bf16.msra.mxu0 %v2725_v19  ;;  %391 = vmatpush1.bf16.msra.mxu1 %v2726_v20  ;;  %v2768_v48 = vld [vmem:[#allocation4 + $0x284] ss:$16 sps:$4 sm:$0xff]   ;;  %v2766_v50 = vld [vmem:[#allocation4 + $0x280] ss:$16 sps:$4 sm:$0xff]  }
  0x55   :  { %351 = vmatprep.subr.bf16.mxu0 %v2727_v21  ;;  %392 = vmatprep.subr.bf16.mxu1 %v2729_v22  ;;  %v2771_v51 = vld [vmem:[#allocation4 + $0x64] ss:$16 sps:$4 sm:$0xff]   ;;  %v2769_v53 = vld [vmem:[#allocation4 + $0x60] ss:$16 sps:$4 sm:$0xff]  }
  0x56   :  { %v2774_v52 = vld [vmem:[#allocation4 + $0x264] ss:$16 sps:$4 sm:$0xff]   ;;  %v2772_v54 = vld [vmem:[#allocation4 + $0x260] ss:$16 sps:$4 sm:$0xff]  }
  0x57   :  { %v2777_v55 = vld [vmem:[#allocation4 + $0x44] ss:$16 sps:$4 sm:$0xff]   ;;  %v2775_v57 = vld [vmem:[#allocation4 + $0x40] ss:$16 sps:$4 sm:$0xff]  }
  0x58   :  { %352 = vmatpush1.bf16.msra.mxu0 %v2731_v23  ;;  %393 = vmatpush1.bf16.msra.mxu1 %v2732_v24  ;;  %v2780_v56 = vld [vmem:[#allocation4 + $0x244] ss:$16 sps:$4 sm:$0xff]   ;;  %v2778_v58 = vld [vmem:[#allocation4 + $0x240] ss:$16 sps:$4 sm:$0xff]  }
  0x59   :  { %353 = vmatprep.subr.bf16.mxu0 %v2733_v25  ;;  %394 = vmatprep.subr.bf16.mxu1 %v2735_v26  ;;  %v2783_v59 = vld [vmem:[#allocation4 + $0x24] ss:$16 sps:$4 sm:$0xff]   ;;  %v2781_v61 = vld [vmem:[#allocation4 + $0x20] ss:$16 sps:$4 sm:$0xff]  }
  0x5a   :  { %v2786_v60 = vld [vmem:[#allocation4 + $0x224] ss:$16 sps:$4 sm:$0xff]   ;;  %v2784_v62 = vld [vmem:[#allocation4 + $0x220] ss:$16 sps:$4 sm:$0xff]  }
  0x5b   :  { %v159_v3 = vld [vmem:[%s3441_s2] sm:$0xf]  ;;  %v2792_v33 = vld [vmem:[#allocation4 + $0x204] ss:$16 sps:$4 sm:$0xff]  }
  0x5c   :  { %354 = vmatpush1.bf16.msra.mxu0 %v2737_v27  ;;  %395 = vmatpush1.bf16.msra.mxu1 %v2738_v28  ;;  %v164_v5 = vrot.slane %v159_v3, %v3297_v1  ;;  %v172_v6 = vrot.slane %v159_v3, %v3299_v2  ;;  %v168_v7 = vrot.slane %v159_v3, %v3304_v4  ;;  %v2832_v63 = vld [vmem:[#allocation4 + $0x320] ss:$16 sps:$4 sm:$0xff]   ;;  %v2837_v0 = vld [vmem:[#allocation4 + $0x104] ss:$16 sps:$4 sm:$0xff]  }
  0x5d   :  { %355 = vmatprep.subr.bf16.mxu0 %v2739_v29  ;;  %396 = vmatprep.subr.bf16.mxu1 %v2741_v30  ;;  %v176_v16 = vrot.slane %v159_v3, %v3309_v8  ;;  %v2840_v3 = vld [vmem:[#allocation4 + $0x304] ss:$16 sps:$4 sm:$0xff]  }
  0x60   :  { %356 = vmatpush1.bf16.msra.mxu0 %v2743_v31  ;;  %397 = vmatpush1.bf16.msra.mxu1 %v2744_v32  ;;  %v2789_v32 = vld [vmem:[#allocation4 + $0x4] ss:$16 sps:$4 sm:$0xff]  }
  0x61   :  { %1303 = vmatprep.subr.bf16.mxu0 %v2747_v36  ;;  %1344 = vmatprep.subr.bf16.mxu1 %v2750_v38  ;;  %v2795_v36 = vld [vmem:[#allocation4 + $0x1e4] ss:$16 sps:$4 sm:$0xff]   ;;  %v2793_v38 = vld [vmem:[#allocation4 + $0x1e0] ss:$16 sps:$4 sm:$0xff]  }
  0x63   :  { %374 = vmatmul.mubr.bf16.vlgmr.msra.gmra.mxu0 %v126_v34  ;;  %415 = vmatmul.mubr.bf16.vlgmr.msra.gmra.mxu1 %v126_v34  ;;  %v2787_v34 = vld [vmem:[#allocation4] ss:$16 sps:$4 sm:$0xff]  }
  0x64   :  { %1304 = vmatpush1.bf16.msra.mxu0 %v2745_v35  ;;  %1345 = vmatpush1.bf16.msra.mxu1 %v2748_v37  ;;  %v2790_v35 = vld [vmem:[#allocation4 + $0x200] ss:$16 sps:$4 sm:$0xff]   ;;  %v2798_v37 = vld [vmem:[#allocation4 + $0x3e4] ss:$16 sps:$4 sm:$0xff]  }
  0x65   :  { %1305 = vmatprep.subr.bf16.mxu0 %v2753_v39  ;;  %1346 = vmatprep.subr.bf16.mxu1 %v2756_v40  ;;  %v2796_v39 = vld [vmem:[#allocation4 + $0x3e0] ss:$16 sps:$4 sm:$0xff]   ;;  %v2801_v40 = vld [vmem:[#allocation4 + $0x1c4] ss:$16 sps:$4 sm:$0xff]  }
  0x68   :  { %1306 = vmatpush1.bf16.msra.mxu0 %v2751_v41  ;;  %1347 = vmatpush1.bf16.msra.mxu1 %v2754_v42  ;;  %v2804_v41 = vld [vmem:[#allocation4 + $0x3c4] ss:$16 sps:$4 sm:$0xff]   ;;  %v2799_v42 = vld [vmem:[#allocation4 + $0x1c0] ss:$16 sps:$4 sm:$0xff]  }
  0x69   :  { %1307 = vmatprep.subr.bf16.mxu0 %v2759_v43  ;;  %1348 = vmatprep.subr.bf16.mxu1 %v2762_v44  ;;  %v2802_v43 = vld [vmem:[#allocation4 + $0x3c0] ss:$16 sps:$4 sm:$0xff]   ;;  %v2807_v44 = vld [vmem:[#allocation4 + $0x1a4] ss:$16 sps:$4 sm:$0xff]  }
  0x6c   :  { %1308 = vmatpush1.bf16.msra.mxu0 %v2757_v45  ;;  %1349 = vmatpush1.bf16.msra.mxu1 %v2760_v46  ;;  %v2810_v45 = vld [vmem:[#allocation4 + $0x3a4] ss:$16 sps:$4 sm:$0xff]   ;;  %v2805_v46 = vld [vmem:[#allocation4 + $0x1a0] ss:$16 sps:$4 sm:$0xff]  }
  0x6d   :  { %1309 = vmatprep.subr.bf16.mxu0 %v2765_v47  ;;  %1350 = vmatprep.subr.bf16.mxu1 %v2768_v48  ;;  %v2808_v47 = vld [vmem:[#allocation4 + $0x3a0] ss:$16 sps:$4 sm:$0xff]   ;;  %v2813_v48 = vld [vmem:[#allocation4 + $0x184] ss:$16 sps:$4 sm:$0xff]  }
  0x70   :  { %1310 = vmatpush1.bf16.msra.mxu0 %v2763_v49  ;;  %1351 = vmatpush1.bf16.msra.mxu1 %v2766_v50  ;;  %v2811_v49 = vld [vmem:[#allocation4 + $0x180] ss:$16 sps:$4 sm:$0xff]  }
  0x71   :  { %1311 = vmatprep.subr.bf16.mxu0 %v2771_v51  ;;  %1352 = vmatprep.subr.bf16.mxu1 %v2774_v52  ;;  %v2814_v50 = vld [vmem:[#allocation4 + $0x380] ss:$16 sps:$4 sm:$0xff]   ;;  %v2816_v51 = vld [vmem:[#allocation4 + $0x384] ss:$16 sps:$4 sm:$0xff]  }
  0x72   :  { %v2819_v52 = vld [vmem:[#allocation4 + $0x164] ss:$16 sps:$4 sm:$0xff]  }
  0x74   :  { %1312 = vmatpush1.bf16.msra.mxu0 %v2769_v53  ;;  %1353 = vmatpush1.bf16.msra.mxu1 %v2772_v54  ;;  %v2822_v53 = vld [vmem:[#allocation4 + $0x364] ss:$16 sps:$4 sm:$0xff]   ;;  %v2817_v54 = vld [vmem:[#allocation4 + $0x160] ss:$16 sps:$4 sm:$0xff]  }
  0x75   :  { %1313 = vmatprep.subr.bf16.mxu0 %v2777_v55  ;;  %1354 = vmatprep.subr.bf16.mxu1 %v2780_v56  ;;  %v2820_v55 = vld [vmem:[#allocation4 + $0x360] ss:$16 sps:$4 sm:$0xff]   ;;  %v2825_v56 = vld [vmem:[#allocation4 + $0x144] ss:$16 sps:$4 sm:$0xff]  }
  0x78   :  { %1314 = vmatpush1.bf16.msra.mxu0 %v2775_v57  ;;  %1355 = vmatpush1.bf16.msra.mxu1 %v2778_v58  ;;  %v2828_v57 = vld [vmem:[#allocation4 + $0x344] ss:$16 sps:$4 sm:$0xff]   ;;  %v2823_v58 = vld [vmem:[#allocation4 + $0x140] ss:$16 sps:$4 sm:$0xff]  }
  0x79   :  { %1315 = vmatprep.subr.bf16.mxu0 %v2783_v59  ;;  %1356 = vmatprep.subr.bf16.mxu1 %v2786_v60  ;;  %v2826_v59 = vld [vmem:[#allocation4 + $0x340] ss:$16 sps:$4 sm:$0xff]   ;;  %v2831_v60 = vld [vmem:[#allocation4 + $0x124] ss:$16 sps:$4 sm:$0xff]  }
  0x7c   :  { %1316 = vmatpush1.bf16.msra.mxu0 %v2781_v61  ;;  %1357 = vmatpush1.bf16.msra.mxu1 %v2784_v62  ;;  %v2834_v61 = vld [vmem:[#allocation4 + $0x324] ss:$16 sps:$4 sm:$0xff]   ;;  %v2829_v62 = vld [vmem:[#allocation4 + $0x120] ss:$16 sps:$4 sm:$0xff]  }
  0x7d   :  { %1317 = vmatprep.subr.bf16.mxu0 %v2789_v32  ;;  %1358 = vmatprep.subr.bf16.mxu1 %v2792_v33 }
  0x80   :  { %1318 = vmatpush1.bf16.msra.mxu0 %v2787_v34  ;;  %1359 = vmatpush1.bf16.msra.mxu1 %v2790_v35 }
  0x81   :  { %1319 = vmatprep.subr.bf16.mxu0 %v2795_v36  ;;  %1360 = vmatprep.subr.bf16.mxu1 %v2798_v37 }
  0x84   :  { %1320 = vmatpush2.bf16.msra.mxu0 %v2793_v38  ;;  %1361 = vmatpush2.bf16.msra.mxu1 %v2796_v39 }
  0x85   :  { %1321 = vmatprep.subr.bf16.mxu0 %v2801_v40  ;;  %1362 = vmatprep.subr.bf16.mxu1 %v2804_v41 }
  0x88   :  { %1322 = vmatpush2.bf16.msra.mxu0 %v2799_v42  ;;  %1363 = vmatpush2.bf16.msra.mxu1 %v2802_v43 }
  0x89   :  { %1323 = vmatprep.subr.bf16.mxu0 %v2807_v44  ;;  %1364 = vmatprep.subr.bf16.mxu1 %v2810_v45 }
  0x8c   :  { %1324 = vmatpush2.bf16.msra.mxu0 %v2805_v46  ;;  %1365 = vmatpush2.bf16.msra.mxu1 %v2808_v47 }
  0x8d   :  { %1325 = vmatprep.subr.bf16.mxu0 %v2813_v48  ;;  %1366 = vmatprep.subr.bf16.mxu1 %v2816_v51  ;;  %v2841_v51 = vld [vmem:[#allocation4 + $0xe8] ss:$16 sps:$4 sm:$0xff]  }
  0x90   :  { %1326 = vmatpush2.bf16.msra.mxu0 %v2811_v49  ;;  %1367 = vmatpush2.bf16.msra.mxu1 %v2814_v50 }
  0x91   :  { %1327 = vmatprep.subr.bf16.mxu0 %v2819_v52  ;;  %1368 = vmatprep.subr.bf16.mxu1 %v2822_v53  ;;  %v2844_v52 = vld [vmem:[#allocation4 + $0x2e8] ss:$16 sps:$4 sm:$0xff]  }
  0x94   :  { %1328 = vmatpush2.bf16.msra.mxu0 %v2817_v54  ;;  %1369 = vmatpush2.bf16.msra.mxu1 %v2820_v55  ;;  %v2849_v55 = vld [vmem:[#allocation4 + $0xcc] ss:$16 sps:$4 sm:$0xff]  }
  0x95   :  { %1329 = vmatprep.subr.bf16.mxu0 %v2825_v56  ;;  %1370 = vmatprep.subr.bf16.mxu1 %v2828_v57  ;;  %v2852_v56 = vld [vmem:[#allocation4 + $0x2cc] ss:$16 sps:$4 sm:$0xff]   ;;  %v2847_v57 = vld [vmem:[#allocation4 + $0xc8] ss:$16 sps:$4 sm:$0xff]  }
  0x98   :  { %1330 = vmatpush2.bf16.msra.mxu0 %v2823_v58  ;;  %1371 = vmatpush2.bf16.msra.mxu1 %v2826_v59  ;;  %v2850_v58 = vld [vmem:[#allocation4 + $0x2c8] ss:$16 sps:$4 sm:$0xff]   ;;  %v2855_v59 = vld [vmem:[#allocation4 + $0xac] ss:$16 sps:$4 sm:$0xff]  }
  0x99   :  { %1331 = vmatprep.subr.bf16.mxu0 %v2831_v60  ;;  %1372 = vmatprep.subr.bf16.mxu1 %v2834_v61  ;;  %v2858_v60 = vld [vmem:[#allocation4 + $0x2ac] ss:$16 sps:$4 sm:$0xff]   ;;  %v2853_v61 = vld [vmem:[#allocation4 + $0xa8] ss:$16 sps:$4 sm:$0xff]  }
  0x9c   :  { %1332 = vmatpush2.bf16.msra.mxu0 %v2829_v62  ;;  %1373 = vmatpush2.bf16.msra.mxu1 %v2832_v63  ;;  %v2856_v62 = vld [vmem:[#allocation4 + $0x2a8] ss:$16 sps:$4 sm:$0xff]   ;;  %v2861_v63 = vld [vmem:[#allocation4 + $0x8c] ss:$16 sps:$4 sm:$0xff]  }
  0x9d   :  { %1333 = vmatprep.subr.bf16.mxu0 %v2837_v0  ;;  %1374 = vmatprep.subr.bf16.mxu1 %v2840_v3  ;;  %v2864_v0 = vld [vmem:[#allocation4 + $0x28c] ss:$16 sps:$4 sm:$0xff]   ;;  %v2859_v3 = vld [vmem:[#allocation4 + $0x88] ss:$16 sps:$4 sm:$0xff]  }
 0x123   :  { %v375_v9 = vpop.f32.mrf.mxu0  ;;  %v416_v10 = vpop.f32.mrf.mxu1 }
 0x124   :  { %v3311_v11 = vadd.f32 %v375_v9, %v164_v5  ;;  %v3313_v12 = vadd.f32 %v416_v10, %v172_v6  ;;  %v2835_v5 = vld [vmem:[#allocation4 + $0x100] ss:$16 sps:$4 sm:$0xff]   ;;  %v2846_v9 = vld [vmem:[#allocation4 + $0x2ec] ss:$16 sps:$4 sm:$0xff]  }
 0x125   :  { %v377_v13 = vpop.f32.mrf.mxu0  ;;  %v418_v14 = vpop.f32.mrf.mxu1  ;;  %v2838_v6 = vld [vmem:[#allocation4 + $0x300] ss:$16 sps:$4 sm:$0xff]   ;;  %1334 = vmatpush2.bf16.msra.mxu0 %v2835_v5  ;;  %v2862_v5 = vld [vmem:[#allocation4 + $0x288] ss:$16 sps:$4 sm:$0xff]  }
 0x126   :  { %v3315_v15 = vadd.f32 %v377_v13, %v168_v7  ;;  %v430_v19 = vmul.f32 %v3311_v11, %v3311_v11  ;;  %v432_v20 = vmul.f32 %v3313_v12, %v3313_v12  ;;  %v3326_v25 = vadd.f32 %v418_v14, %v176_v16  ;;  %1375 = vmatpush2.bf16.msra.mxu1 %v2838_v6  ;;  %v2843_v7 = vld [vmem:[#allocation4 + $0xec] ss:$16 sps:$4 sm:$0xff]  }
 0x127   :  { %v379_v17 = vpop.f32.mrf.mxu0  ;;  %v420_v18 = vpop.f32.mrf.mxu1  ;;  %1385 = vmatprep.subr.bf16.mxu0 %v2843_v7  ;;  %1426 = vmatprep.subr.bf16.mxu1 %v2846_v9  ;;  %v2867_v6 = vld [vmem:[#allocation4 + $0x6c] ss:$16 sps:$4 sm:$0xff]   ;;  %v2865_v9 = vld [vmem:[#allocation4 + $0x68] ss:$16 sps:$4 sm:$0xff]  }
 0x128   :  { %v431_v21 = vmul.f32 %v3315_v15, %v3315_v15  ;;  %v423_v22 = vadd.f32 %v3315_v15, %v3311_v11  ;;  %v433_v30 = vmul.f32 %v3326_v25, %v3326_v25  ;;  %v2870_v7 = vld [vmem:[#allocation4 + $0x26c] ss:$16 sps:$4 sm:$0xff]  }
 0x129   :  { %v380_v23 = vpop.f32.mrf.mxu0  ;;  %v421_v24 = vpop.f32.mrf.mxu1 }
 0x12a   :  { %v424_v26 = vadd.f32 %v423_v22, %v3313_v12  ;;  %v434_v27 = vadd.f32 %v431_v21, %v430_v19  ;;  %v453_v21 = vld [vmem:[%s3442_s3] sm:$0xf] }
 0x12b   :  { %v479_v22 = vld [vmem:[%s3443_s4] sm:$0xf]  ;;  %v462_v23 = vrot.slane %v453_v21, %v3304_v4  ;;  %v470_v24 = vrot.slane %v453_v21, %v3309_v8 }
 0x12c   :  { %v425_v28 = vadd.f32 %v424_v26, %v3326_v25  ;;  %v435_v29 = vadd.f32 %v434_v27, %v432_v20  ;;  %v458_v26 = vrot.slane %v453_v21, %v3297_v1  ;;  %v466_v27 = vrot.slane %v453_v21, %v3299_v2  ;;  %v2880_v21 = vld [vmem:[#allocation4 + $0x228] ss:$16 sps:$4 sm:$0xff]  }
 0x12d   :  { %v488_v33 = vrot.slane %v479_v22, %v3304_v4  ;;  %v496_v34 = vrot.slane %v479_v22, %v3309_v8  ;;  %v484_v35 = vrot.slane %v479_v22, %v3297_v1  ;;  %v492_v36 = vrot.slane %v479_v22, %v3299_v2  ;;  %v2885_v22 = vld [vmem:[#allocation4 + $0xc] ss:$16 sps:$4 sm:$0xff]  }
 0x12e   :  { %426 = vadd.xlane.f32.xlu0 %v425_v28  ;;  %v436_v31 = vadd.f32 %v435_v29, %v433_v30 }
 0x132   :  { %437 = vadd.xlane.f32.xlu0 %v436_v31 }
 0x1b7   :  { %v427_v10 = vpop.xlane.xlu0 %426 }
 0x1b8   :  { %v429_v13 = vmul.f32 0.001953125, %v427_v10  ;;  %v2868_v10 = vld [vmem:[#allocation4 + $0x268] ss:$16 sps:$4 sm:$0xff]  }
 0x1ba   :  { %v440_v16 = vmul.f32 %v429_v13, %v429_v13  ;;  %v443_v28 = vsub.f32 %v3311_v11, %v429_v13  ;;  %v445_v29 = vsub.f32 %v3313_v12, %v429_v13  ;;  %v444_v30 = vsub.f32 %v3315_v15, %v429_v13 }
 0x1bb   :  { %v438_v14 = vpop.xlane.xlu0 %437  ;;  %v446_v31 = vsub.f32 %v3326_v25, %v429_v13  ;;  %v2873_v13 = vld [vmem:[#allocation4 + $0x4c] ss:$16 sps:$4 sm:$0xff]  }
 0x1bc   :  { %v439_v17 = vmul.f32 0.001953125, %v438_v14  ;;  %v2876_v14 = vld [vmem:[#allocation4 + $0x24c] ss:$16 sps:$4 sm:$0xff]  }
 0x1be   :  { %v441_v18 = vsub.f32 %v439_v17, %v440_v16  ;;  %v2871_v16 = vld [vmem:[#allocation4 + $0x48] ss:$16 sps:$4 sm:$0xff]  }
 0x1bf   :  { %v2874_v17 = vld [vmem:[#allocation4 + $0x248] ss:$16 sps:$4 sm:$0xff]  }
 0x1c0   :  { %v442_v19 = vmax.f32 %v441_v18, 0.0  ;;  %v2879_v18 = vld [vmem:[#allocation4 + $0x2c] ss:$16 sps:$4 sm:$0xff]  }
 0x1c2   :  { %v447_v20 = vadd.f32 1e-05, %v442_v19  ;;  %v2882_v19 = vld [vmem:[#allocation4 + $0x22c] ss:$16 sps:$4 sm:$0xff]  }
 0x1c4   :  { %3057 = vrsqrt.f32 %v447_v20  ;;  %v2877_v20 = vld [vmem:[#allocation4 + $0x28] ss:$16 sps:$4 sm:$0xff]  }
 0x1d1   :  { %v3058_v32 = vpop.eup %3057 }
 0x1d2   :  { %v450_v37 = vmul.f32 %v3058_v32, %v444_v30  ;;  %v452_v38 = vmul.f32 %v3058_v32, %v446_v31  ;;  %v449_v39 = vmul.f32 %v3058_v32, %v443_v28  ;;  %v451_v40 = vmul.f32 %v3058_v32, %v445_v29  ;;  %v2894_v28 = vld [vmem:[#allocation4 + $0x3ec] ss:$16 sps:$4 sm:$0xff]   ;;  %v2889_v29 = vld [vmem:[#allocation4 + $0x1e8] ss:$16 sps:$4 sm:$0xff]  }
 0x1d3   :  { %v2892_v30 = vld [vmem:[#allocation4 + $0x3e8] ss:$16 sps:$4 sm:$0xff]   ;;  %v2897_v31 = vld [vmem:[#allocation4 + $0x1cc] ss:$16 sps:$4 sm:$0xff]  }
 0x1d4   :  { %v476_v11 = vmul.f32 %v462_v23, %v450_v37  ;;  %v478_v41 = vmul.f32 %v470_v24, %v452_v38  ;;  %v475_v12 = vmul.f32 %v458_v26, %v449_v39  ;;  %v477_v42 = vmul.f32 %v466_v27, %v451_v40  ;;  %v2888_v23 = vld [vmem:[#allocation4 + $0x20c] ss:$16 sps:$4 sm:$0xff]   ;;  %v2883_v24 = vld [vmem:[#allocation4 + $0x8] ss:$16 sps:$4 sm:$0xff]  }
 0x1d5   :  { %v2886_v26 = vld [vmem:[#allocation4 + $0x208] ss:$16 sps:$4 sm:$0xff]   ;;  %v2891_v27 = vld [vmem:[#allocation4 + $0x1ec] ss:$16 sps:$4 sm:$0xff]  }
 0x1d6   :  { %v502_v15 = vadd.f32 %v488_v33, %v476_v11  ;;  %v504_v43 = vadd.f32 %v496_v34, %v478_v41  ;;  %v501_v25 = vadd.f32 %v484_v35, %v475_v12  ;;  %v503_v44 = vadd.f32 %v492_v36, %v477_v42  ;;  %v2900_v32 = vld [vmem:[#allocation4 + $0x3cc] ss:$16 sps:$4 sm:$0xff]   ;;  %v2895_v33 = vld [vmem:[#allocation4 + $0x1c8] ss:$16 sps:$4 sm:$0xff]  }
 0x1d7   :  { %v2898_v34 = vld [vmem:[#allocation4 + $0x3c8] ss:$16 sps:$4 sm:$0xff]   ;;  %v2903_v35 = vld [vmem:[#allocation4 + $0x1ac] ss:$16 sps:$4 sm:$0xff]  }
 0x1d8   :  { %v506_v45 = vmax.f32 %v502_v15, 0.0  ;;  %v508_v46 = vmax.f32 %v504_v43, 0.0  ;;  %v505_v47 = vmax.f32 %v501_v25, 0.0  ;;  %v507_v48 = vmax.f32 %v503_v44, 0.0  ;;  %v2906_v36 = vld [vmem:[#allocation4 + $0x3ac] ss:$16 sps:$4 sm:$0xff]  }
 0x1d9   :  { %v2901_v37 = vld [vmem:[#allocation4 + $0x1a8] ss:$16 sps:$4 sm:$0xff]   ;;  %v2909_v39 = vld [vmem:[#allocation4 + $0x18c] ss:$16 sps:$4 sm:$0xff]  }
 0x1da   :  { %v510_v49 = vpack.c.bf16 %v506_v45, %v506_v45  ;;  %v512_v50 = vpack.c.bf16 %v508_v46, %v508_v46  ;;  %v3350_v53 = vpack.c.bf16 %v505_v47, %v505_v47  ;;  %v3352_v54 = vpack.c.bf16 %v507_v48, %v507_v48  ;;  %v2904_v38 = vld [vmem:[#allocation4 + $0x3a8] ss:$16 sps:$4 sm:$0xff]   ;;  %v2912_v40 = vld [vmem:[#allocation4 + $0x38c] ss:$16 sps:$4 sm:$0xff]  }
 0x1db   :  { %v2907_v11 = vld [vmem:[#allocation4 + $0x188] ss:$16 sps:$4 sm:$0xff]   ;;  %v2915_v12 = vld [vmem:[#allocation4 + $0x16c] ss:$16 sps:$4 sm:$0xff]  }
 0x1dc   :  { %1335 = vmatprep.mubr.bf16.mxu0 %v510_v49  ;;  %1376 = vmatprep.mubr.bf16.mxu1 %v512_v50  ;;  %v2910_v41 = vld [vmem:[#allocation4 + $0x388] ss:$16 sps:$4 sm:$0xff]   ;;  %v2918_v42 = vld [vmem:[#allocation4 + $0x36c] ss:$16 sps:$4 sm:$0xff]  }
 0x1dd   :  { %1336 = vmatmul.mubr.bf16.vlgmr.msra.gmra.mxu0 %v3350_v53  ;;  %1377 = vmatmul.mubr.bf16.vlgmr.msra.gmra.mxu1 %v3352_v54  ;;  %v2913_v15 = vld [vmem:[#allocation4 + $0x168] ss:$16 sps:$4 sm:$0xff]   ;;  %v2921_v25 = vld [vmem:[#allocation4 + $0x14c] ss:$16 sps:$4 sm:$0xff]  }
 0x1de   :  { %1386 = vmatpush1.bf16.msra.mxu0 %v2841_v51  ;;  %1427 = vmatpush1.bf16.msra.mxu1 %v2844_v52  ;;  %v2916_v43 = vld [vmem:[#allocation4 + $0x368] ss:$16 sps:$4 sm:$0xff]   ;;  %v2924_v44 = vld [vmem:[#allocation4 + $0x34c] ss:$16 sps:$4 sm:$0xff]  }
 0x1df   :  { %1417 = vmatprep.mubr.bf16.mxu0 %v510_v49  ;;  %1458 = vmatprep.mubr.bf16.mxu1 %v512_v50  ;;  %v2919_v45 = vld [vmem:[#allocation4 + $0x148] ss:$16 sps:$4 sm:$0xff]   ;;  %v2927_v47 = vld [vmem:[#allocation4 + $0x12c] ss:$16 sps:$4 sm:$0xff]  }
 0x1e0   :  { %1387 = vmatprep.subr.bf16.mxu0 %v2849_v55  ;;  %1428 = vmatprep.subr.bf16.mxu1 %v2852_v56  ;;  %v2922_v46 = vld [vmem:[#allocation4 + $0x348] ss:$16 sps:$4 sm:$0xff]   ;;  %v2930_v48 = vld [vmem:[#allocation4 + $0x32c] ss:$16 sps:$4 sm:$0xff]  }
 0x1e1   :  { %v2925_v49 = vld [vmem:[#allocation4 + $0x128] ss:$16 sps:$4 sm:$0xff]   ;;  %v2933_v51 = vld [vmem:[#allocation4 + $0x10c] ss:$16 sps:$4 sm:$0xff]  }
 0x1e2   :  { %1388 = vmatpush1.bf16.msra.mxu0 %v2847_v57  ;;  %1429 = vmatpush1.bf16.msra.mxu1 %v2850_v58  ;;  %v2928_v50 = vld [vmem:[#allocation4 + $0x328] ss:$16 sps:$4 sm:$0xff]   ;;  %v2936_v52 = vld [vmem:[#allocation4 + $0x30c] ss:$16 sps:$4 sm:$0xff]  }
 0x1e3   :  { %1389 = vmatprep.subr.bf16.mxu0 %v2855_v59  ;;  %1430 = vmatprep.subr.bf16.mxu1 %v2858_v60  ;;  %v2931_v55 = vld [vmem:[#allocation4 + $0x108] ss:$16 sps:$4 sm:$0xff]   ;;  %v2939_v58 = vld [vmem:[#allocation6 + $0x74] ss:$8 sps:$4 sm:$0xff]  }
 0x1e4   :  { %v2934_v56 = vld [vmem:[#allocation4 + $0x308] ss:$16 sps:$4 sm:$0xff]   ;;  %v2942_v60 = vld [vmem:[#allocation6 + $0x174] ss:$8 sps:$4 sm:$0xff]  }
 0x1e5   :  { %v2937_v57 = vld [vmem:[#allocation6 + $0x70] ss:$8 sps:$4 sm:$0xff]  }
 0x1e6   :  { %1390 = vmatpush1.bf16.msra.mxu0 %v2853_v61  ;;  %1431 = vmatpush1.bf16.msra.mxu1 %v2856_v62  ;;  %v2940_v59 = vld [vmem:[#allocation6 + $0x170] ss:$8 sps:$4 sm:$0xff]   ;;  %v2945_v61 = vld [vmem:[#allocation6 + $0x64] ss:$8 sps:$4 sm:$0xff]  }
 0x1e7   :  { %1391 = vmatprep.subr.bf16.mxu0 %v2861_v63  ;;  %1432 = vmatprep.subr.bf16.mxu1 %v2864_v0  ;;  %v2948_v62 = vld [vmem:[#allocation6 + $0x164] ss:$8 sps:$4 sm:$0xff]   ;;  %v2943_v63 = vld [vmem:[#allocation6 + $0x60] ss:$8 sps:$4 sm:$0xff]  }
 0x1e8   :  { %v2946_v0 = vld [vmem:[#allocation6 + $0x160] ss:$8 sps:$4 sm:$0xff]  }
 0x1ea   :  { %1392 = vmatpush1.bf16.msra.mxu0 %v2859_v3  ;;  %1433 = vmatpush1.bf16.msra.mxu1 %v2862_v5  ;;  %v2951_v3 = vld [vmem:[#allocation6 + $0x54] ss:$8 sps:$4 sm:$0xff]  }
 0x1eb   :  { %1393 = vmatprep.subr.bf16.mxu0 %v2867_v6  ;;  %1434 = vmatprep.subr.bf16.mxu1 %v2870_v7  ;;  %v2954_v5 = vld [vmem:[#allocation6 + $0x154] ss:$8 sps:$4 sm:$0xff]   ;;  %v2957_v6 = vld [vmem:[#allocation6 + $0x44] ss:$8 sps:$4 sm:$0xff]  }
 0x1ec   :  { %v2960_v7 = vld [vmem:[#allocation6 + $0x144] ss:$8 sps:$4 sm:$0xff]  }
 0x1ee   :  { %1394 = vmatpush1.bf16.msra.mxu0 %v2865_v9  ;;  %1435 = vmatpush1.bf16.msra.mxu1 %v2868_v10  ;;  %v2955_v9 = vld [vmem:[#allocation6 + $0x40] ss:$8 sps:$4 sm:$0xff]  }
 0x1ef   :  { %1395 = vmatprep.subr.bf16.mxu0 %v2873_v13  ;;  %1436 = vmatprep.subr.bf16.mxu1 %v2876_v14  ;;  %v2958_v10 = vld [vmem:[#allocation6 + $0x140] ss:$8 sps:$4 sm:$0xff]   ;;  %v2963_v13 = vld [vmem:[#allocation6 + $0x34] ss:$8 sps:$4 sm:$0xff]  }
 0x1f0   :  { %v2966_v14 = vld [vmem:[#allocation6 + $0x134] ss:$8 sps:$4 sm:$0xff]  }
 0x1f2   :  { %1396 = vmatpush1.bf16.msra.mxu0 %v2871_v16  ;;  %1437 = vmatpush1.bf16.msra.mxu1 %v2874_v17  ;;  %v2961_v16 = vld [vmem:[#allocation6 + $0x30] ss:$8 sps:$4 sm:$0xff]  }
 0x1f3   :  { %1397 = vmatprep.subr.bf16.mxu0 %v2879_v18  ;;  %1438 = vmatprep.subr.bf16.mxu1 %v2882_v19  ;;  %v2964_v17 = vld [vmem:[#allocation6 + $0x130] ss:$8 sps:$4 sm:$0xff]   ;;  %v2969_v18 = vld [vmem:[#allocation6 + $0x24] ss:$8 sps:$4 sm:$0xff]  }
 0x1f4   :  { %v2972_v19 = vld [vmem:[#allocation6 + $0x124] ss:$8 sps:$4 sm:$0xff]  }
 0x1f6   :  { %1398 = vmatpush1.bf16.msra.mxu0 %v2877_v20  ;;  %1439 = vmatpush1.bf16.msra.mxu1 %v2880_v21  ;;  %v2967_v20 = vld [vmem:[#allocation6 + $0x20] ss:$8 sps:$4 sm:$0xff]  }
 0x1f7   :  { %1399 = vmatprep.subr.bf16.mxu0 %v2885_v22  ;;  %1440 = vmatprep.subr.bf16.mxu1 %v2888_v23  ;;  %v2970_v21 = vld [vmem:[#allocation6 + $0x120] ss:$8 sps:$4 sm:$0xff]   ;;  %v2975_v22 = vld [vmem:[#allocation6 + $0x14] ss:$8 sps:$4 sm:$0xff]  }
 0x1f8   :  { %v2978_v23 = vld [vmem:[#allocation6 + $0x114] ss:$8 sps:$4 sm:$0xff]  }
 0x1fa   :  { %1400 = vmatpush1.bf16.msra.mxu0 %v2883_v24  ;;  %1441 = vmatpush1.bf16.msra.mxu1 %v2886_v26  ;;  %v2973_v24 = vld [vmem:[#allocation6 + $0x10] ss:$8 sps:$4 sm:$0xff]  }
 0x1fb   :  { %1401 = vmatprep.subr.bf16.mxu0 %v2891_v27  ;;  %1442 = vmatprep.subr.bf16.mxu1 %v2894_v28  ;;  %v2976_v26 = vld [vmem:[#allocation6 + $0x110] ss:$8 sps:$4 sm:$0xff]  }
 0x1fe   :  { %1402 = vmatpush2.bf16.msra.mxu0 %v2889_v29  ;;  %1443 = vmatpush2.bf16.msra.mxu1 %v2892_v30 }
 0x1ff   :  { %1403 = vmatprep.subr.bf16.mxu0 %v2897_v31  ;;  %1444 = vmatprep.subr.bf16.mxu1 %v2900_v32 }
 0x202   :  { %1404 = vmatpush2.bf16.msra.mxu0 %v2895_v33  ;;  %1445 = vmatpush2.bf16.msra.mxu1 %v2898_v34 }
 0x203   :  { %1405 = vmatprep.subr.bf16.mxu0 %v2903_v35  ;;  %1446 = vmatprep.subr.bf16.mxu1 %v2906_v36  ;;  %v641_v35 = vld [vmem:[%s3445_s6] sm:$0xf] }
 0x204   :  { %v650_v36 = vrot.slane %v641_v35, %v3304_v4 }
 0x206   :  { %1406 = vmatpush2.bf16.msra.mxu0 %v2901_v37  ;;  %1447 = vmatpush2.bf16.msra.mxu1 %v2904_v38  ;;  %v646_v37 = vrot.slane %v641_v35, %v3297_v1 }
 0x207   :  { %1407 = vmatprep.subr.bf16.mxu0 %v2909_v39  ;;  %1448 = vmatprep.subr.bf16.mxu1 %v2912_v40 }
 0x20a   :  { %1408 = vmatpush2.bf16.msra.mxu0 %v2907_v11  ;;  %1449 = vmatpush2.bf16.msra.mxu1 %v2910_v41  ;;  %v654_v11 = vrot.slane %v641_v35, %v3299_v2 }
 0x20b   :  { %1409 = vmatprep.subr.bf16.mxu0 %v2915_v12  ;;  %1450 = vmatprep.subr.bf16.mxu1 %v2918_v42  ;;  %v658_v12 = vrot.slane %v641_v35, %v3309_v8  ;;  %v3026_v35 = vld [vmem:[#allocation6 + $0x194] ss:$8 sps:$4 sm:$0xff]  }
 0x20e   :  { %1410 = vmatpush2.bf16.msra.mxu0 %v2913_v15  ;;  %1451 = vmatpush2.bf16.msra.mxu1 %v2916_v43 }
 0x20f   :  { %1411 = vmatprep.subr.bf16.mxu0 %v2921_v25  ;;  %1452 = vmatprep.subr.bf16.mxu1 %v2924_v44 }
 0x212   :  { %1412 = vmatpush2.bf16.msra.mxu0 %v2919_v45  ;;  %1453 = vmatpush2.bf16.msra.mxu1 %v2922_v46 }
 0x213   :  { %1413 = vmatprep.subr.bf16.mxu0 %v2927_v47  ;;  %1454 = vmatprep.subr.bf16.mxu1 %v2930_v48 }
 0x216   :  { %1414 = vmatpush2.bf16.msra.mxu0 %v2925_v49  ;;  %1455 = vmatpush2.bf16.msra.mxu1 %v2928_v50 }
 0x217   :  { %1415 = vmatprep.subr.bf16.mxu0 %v2933_v51  ;;  %1456 = vmatprep.subr.bf16.mxu1 %v2936_v52 }
 0x21a   :  { %1416 = vmatpush2.bf16.msra.mxu0 %v2931_v55  ;;  %1457 = vmatpush2.bf16.msra.mxu1 %v2934_v56 }
 0x21b   :  { %1952 = vmatprep.subr.bf16.mxu0 %v2939_v58  ;;  %1993 = vmatprep.subr.bf16.mxu1 %v2942_v60 }
 0x21d   :  { %1418 = vmatmul.mubr.bf16.vlgmr.msra.gmra.mxu0 %v3350_v53  ;;  %1459 = vmatmul.mubr.bf16.vlgmr.msra.gmra.mxu1 %v3352_v54  ;;  %v2949_v53 = vld [vmem:[#allocation6 + $0x50] ss:$8 sps:$4 sm:$0xff]  }
 0x21e   :  { %1953 = vmatpush1.bf16.msra.mxu0 %v2937_v57  ;;  %1994 = vmatpush1.bf16.msra.mxu1 %v2940_v59  ;;  %v2952_v54 = vld [vmem:[#allocation6 + $0x150] ss:$8 sps:$4 sm:$0xff]  }
 0x21f   :  { %1954 = vmatprep.subr.bf16.mxu0 %v2945_v61  ;;  %1995 = vmatprep.subr.bf16.mxu1 %v2948_v62 }
 0x222   :  { %1955 = vmatpush1.bf16.msra.mxu0 %v2943_v63  ;;  %1996 = vmatpush1.bf16.msra.mxu1 %v2946_v0  ;;  %v2981_v0 = vld [vmem:[#allocation6 + $0x4] ss:$8 sps:$4 sm:$0xff]  }
 0x223   :  { %1956 = vmatprep.subr.bf16.mxu0 %v2951_v3  ;;  %1997 = vmatprep.subr.bf16.mxu1 %v2954_v5  ;;  %v2984_v3 = vld [vmem:[#allocation6 + $0x104] ss:$8 sps:$4 sm:$0xff]   ;;  %v2979_v5 = vld [vmem:[#allocation6] ss:$8 sps:$4 sm:$0xff]  }
 0x226   :  { %1957 = vmatpush1.bf16.msra.mxu0 %v2949_v53  ;;  %1998 = vmatpush1.bf16.msra.mxu1 %v2952_v54  ;;  %v2982_v53 = vld [vmem:[#allocation6 + $0x100] ss:$8 sps:$4 sm:$0xff]   ;;  %v2987_v54 = vld [vmem:[#allocation6 + $0xf4] ss:$8 sps:$4 sm:$0xff]  }
 0x227   :  { %1958 = vmatprep.subr.bf16.mxu0 %v2957_v6  ;;  %1999 = vmatprep.subr.bf16.mxu1 %v2960_v7  ;;  %v2990_v6 = vld [vmem:[#allocation6 + $0x1f4] ss:$8 sps:$4 sm:$0xff]   ;;  %v2985_v7 = vld [vmem:[#allocation6 + $0xf0] ss:$8 sps:$4 sm:$0xff]  }
 0x22a   :  { %1959 = vmatpush1.bf16.msra.mxu0 %v2955_v9  ;;  %2000 = vmatpush1.bf16.msra.mxu1 %v2958_v10  ;;  %v2988_v9 = vld [vmem:[#allocation6 + $0x1f0] ss:$8 sps:$4 sm:$0xff]   ;;  %v2993_v10 = vld [vmem:[#allocation6 + $0xe4] ss:$8 sps:$4 sm:$0xff]  }
 0x22b   :  { %1960 = vmatprep.subr.bf16.mxu0 %v2963_v13  ;;  %2001 = vmatprep.subr.bf16.mxu1 %v2966_v14  ;;  %v2996_v13 = vld [vmem:[#allocation6 + $0x1e4] ss:$8 sps:$4 sm:$0xff]   ;;  %v2991_v14 = vld [vmem:[#allocation6 + $0xe0] ss:$8 sps:$4 sm:$0xff]  }
 0x22e   :  { %1961 = vmatpush1.bf16.msra.mxu0 %v2961_v16  ;;  %2002 = vmatpush1.bf16.msra.mxu1 %v2964_v17  ;;  %v2994_v16 = vld [vmem:[#allocation6 + $0x1e0] ss:$8 sps:$4 sm:$0xff]   ;;  %v2999_v17 = vld [vmem:[#allocation6 + $0xd4] ss:$8 sps:$4 sm:$0xff]  }
 0x22f   :  { %1962 = vmatprep.subr.bf16.mxu0 %v2969_v18  ;;  %2003 = vmatprep.subr.bf16.mxu1 %v2972_v19  ;;  %v3002_v18 = vld [vmem:[#allocation6 + $0x1d4] ss:$8 sps:$4 sm:$0xff]   ;;  %v2997_v19 = vld [vmem:[#allocation6 + $0xd0] ss:$8 sps:$4 sm:$0xff]  }
 0x232   :  { %1963 = vmatpush1.bf16.msra.mxu0 %v2967_v20  ;;  %2004 = vmatpush1.bf16.msra.mxu1 %v2970_v21  ;;  %v3000_v20 = vld [vmem:[#allocation6 + $0x1d0] ss:$8 sps:$4 sm:$0xff]   ;;  %v3005_v21 = vld [vmem:[#allocation6 + $0xc4] ss:$8 sps:$4 sm:$0xff]  }
 0x233   :  { %1964 = vmatprep.subr.bf16.mxu0 %v2975_v22  ;;  %2005 = vmatprep.subr.bf16.mxu1 %v2978_v23  ;;  %v3008_v22 = vld [vmem:[#allocation6 + $0x1c4] ss:$8 sps:$4 sm:$0xff]   ;;  %v3003_v23 = vld [vmem:[#allocation6 + $0xc0] ss:$8 sps:$4 sm:$0xff]  }
 0x236   :  { %1965 = vmatpush1.bf16.msra.mxu0 %v2973_v24  ;;  %2006 = vmatpush1.bf16.msra.mxu1 %v2976_v26  ;;  %v3006_v24 = vld [vmem:[#allocation6 + $0x1c0] ss:$8 sps:$4 sm:$0xff]   ;;  %v3011_v26 = vld [vmem:[#allocation6 + $0xb4] ss:$8 sps:$4 sm:$0xff]  }
 0x237   :  { %1966 = vmatprep.subr.bf16.mxu0 %v2981_v0  ;;  %2007 = vmatprep.subr.bf16.mxu1 %v2984_v3 }
 0x23a   :  { %1967 = vmatpush1.bf16.msra.mxu0 %v2979_v5  ;;  %2008 = vmatpush1.bf16.msra.mxu1 %v2982_v53 }
 0x23b   :  { %1968 = vmatprep.subr.bf16.mxu0 %v2987_v54  ;;  %2009 = vmatprep.subr.bf16.mxu1 %v2990_v6 }
 0x23e   :  { %1969 = vmatpush2.bf16.msra.mxu0 %v2985_v7  ;;  %2010 = vmatpush2.bf16.msra.mxu1 %v2988_v9 }
 0x23f   :  { %1970 = vmatprep.subr.bf16.mxu0 %v2993_v10  ;;  %2011 = vmatprep.subr.bf16.mxu1 %v2996_v13 }
 0x242   :  { %1971 = vmatpush2.bf16.msra.mxu0 %v2991_v14  ;;  %2012 = vmatpush2.bf16.msra.mxu1 %v2994_v16 }
 0x243   :  { %1972 = vmatprep.subr.bf16.mxu0 %v2999_v17  ;;  %2013 = vmatprep.subr.bf16.mxu1 %v3002_v18 }
 0x246   :  { %1973 = vmatpush2.bf16.msra.mxu0 %v2997_v19  ;;  %2014 = vmatpush2.bf16.msra.mxu1 %v3000_v20 }
 0x247   :  { %1974 = vmatprep.subr.bf16.mxu0 %v3005_v21  ;;  %2015 = vmatprep.subr.bf16.mxu1 %v3008_v22  ;;  %v1620_v22 = vld [vmem:[%s3449_s10] sm:$0x3] }
 0x24a   :  { %1975 = vmatpush2.bf16.msra.mxu0 %v3003_v23  ;;  %2016 = vmatpush2.bf16.msra.mxu1 %v3006_v24  ;;  %v1625_v23 = vrot.slane %v1620_v22, %v3297_v1  ;;  %v1629_v24 = vrot.slane %v1620_v22, %v3304_v4 }
 0x24b   :  { %1976 = vmatprep.subr.bf16.mxu0 %v3011_v26 }
 0x29d   :  { %v1337_v27 = vpop.f32.mrf.mxu0  ;;  %v1378_v28 = vpop.f32.mrf.mxu1 }
 0x29e   :  { %v1338_v39 = vadd.f32 %v1337_v27, %v646_v37  ;;  %v3014_v27 = vld [vmem:[#allocation6 + $0x1b4] ss:$8 sps:$4 sm:$0xff]   ;;  %v3024_v37 = vld [vmem:[#allocation6 + $0x190] ss:$8 sps:$4 sm:$0xff]  }
 0x29f   :  { %v1339_v29 = vpop.f32.mrf.mxu0  ;;  %v1380_v30 = vpop.f32.mrf.mxu1  ;;  %2017 = vmatprep.subr.bf16.mxu1 %v3014_v27 }
 0x2a0   :  { %v1340_v38 = vadd.f32 %v1339_v29, %v650_v36  ;;  %v3366_v41 = vadd.f32 %v1378_v28, %v1338_v39  ;;  %v3009_v28 = vld [vmem:[#allocation6 + $0xb0] ss:$8 sps:$4 sm:$0xff]   ;;  %v3032_v39 = vld [vmem:[#allocation6 + $0x184] ss:$8 sps:$4 sm:$0xff]  }
 0x2a1   :  { %v1341_v31 = vpop.f32.mrf.mxu0  ;;  %v1382_v32 = vpop.f32.mrf.mxu1  ;;  %v3012_v29 = vld [vmem:[#allocation6 + $0x1b0] ss:$8 sps:$4 sm:$0xff]   ;;  %1977 = vmatpush2.bf16.msra.mxu0 %v3009_v28 }
 0x2a2   :  { %v3363_v40 = vadd.f32 %v1380_v30, %v1340_v38  ;;  %v1473_v46 = vmul.f32 %v3366_v41, %v3366_v41  ;;  %v3017_v30 = vld [vmem:[#allocation6 + $0xa4] ss:$8 sps:$4 sm:$0xff]   ;;  %2018 = vmatpush2.bf16.msra.mxu1 %v3012_v29  ;;  %v3015_v32 = vld [vmem:[#allocation6 + $0xa0] ss:$8 sps:$4 sm:$0xff]   ;;  %v3021_v36 = vld [vmem:[#allocation6 + $0x90] ss:$8 sps:$4 sm:$0xff]  }
 0x2a3   :  { %v1342_v33 = vpop.f32.mrf.mxu0  ;;  %v1383_v34 = vpop.f32.mrf.mxu1  ;;  %v3020_v31 = vld [vmem:[#allocation6 + $0x1a4] ss:$8 sps:$4 sm:$0xff]   ;;  %1978 = vmatprep.subr.bf16.mxu0 %v3017_v30 }
 0x2a4   :  { %v1474_v43 = vmul.f32 %v3363_v40, %v3363_v40  ;;  %v1467_v49 = vadd.f32 %v3363_v40, %v3366_v41  ;;  %v3018_v33 = vld [vmem:[#allocation6 + $0x1a0] ss:$8 sps:$4 sm:$0xff]   ;;  %2019 = vmatprep.subr.bf16.mxu1 %v3020_v31  ;;  %v3023_v34 = vld [vmem:[#allocation6 + $0x94] ss:$8 sps:$4 sm:$0xff]   ;;  %v3029_v38 = vld [vmem:[#allocation6 + $0x84] ss:$8 sps:$4 sm:$0xff]  }
 0x2a5   :  { %1979 = vmatpush2.bf16.msra.mxu0 %v3015_v32 }
 0x2a6   :  { %v1477_v57 = vadd.f32 %v1474_v43, %v1473_v46  ;;  %2020 = vmatpush2.bf16.msra.mxu1 %v3018_v33  ;;  %1980 = vmatprep.subr.bf16.mxu0 %v3023_v34 }
 0x2a7   :  { %2021 = vmatprep.subr.bf16.mxu1 %v3026_v35 }
 0x2a9   :  { %1981 = vmatpush2.bf16.msra.mxu0 %v3021_v36 }
 0x2aa   :  { %2022 = vmatpush2.bf16.msra.mxu1 %v3024_v37  ;;  %1982 = vmatprep.subr.bf16.mxu0 %v3029_v38 }
 0x2ab   :  { %2023 = vmatprep.subr.bf16.mxu1 %v3032_v39 }
 0x2dd   :  { %v1419_v42 = vpop.f32.mrf.mxu0  ;;  %v1460_v15 = vpop.f32.mrf.mxu1 }
 0x2de   :  { %v1420_v25 = vadd.f32 %v1419_v42, %v654_v11  ;;  %v3027_v11 = vld [vmem:[#allocation6 + $0x80] ss:$8 sps:$4 sm:$0xff]  }
 0x2df   :  { %v1421_v44 = vpop.f32.mrf.mxu0  ;;  %v1462_v45 = vpop.f32.mrf.mxu1  ;;  %1983 = vmatpush2.bf16.msra.mxu0 %v3027_v11 }
 0x2e0   :  { %v3373_v47 = vadd.f32 %v1460_v15, %v1420_v25  ;;  %v1422_v48 = vadd.f32 %v1421_v44, %v658_v12  ;;  %v3030_v12 = vld [vmem:[#allocation6 + $0x180] ss:$8 sps:$4 sm:$0xff]  }
 0x2e1   :  { %v1423_v50 = vpop.f32.mrf.mxu0  ;;  %v1464_v51 = vpop.f32.mrf.mxu1  ;;  %2024 = vmatpush2.bf16.msra.mxu1 %v3030_v12 }
 0x2e2   :  { %v1475_v52 = vmul.f32 %v3373_v47, %v3373_v47  ;;  %v3379_v55 = vadd.f32 %v1462_v45, %v1422_v48  ;;  %v1468_v56 = vadd.f32 %v1467_v49, %v3373_v47  ;;  %v1496_v49 = vld [vmem:[%s3446_s7] sm:$0xf] }
 0x2e3   :  { %v1424_v58 = vpop.f32.mrf.mxu0  ;;  %v1465_v59 = vpop.f32.mrf.mxu1  ;;  %v1522_v50 = vld [vmem:[%s3447_s8] sm:$0xf]  ;;  %v1505_v51 = vrot.slane %v1496_v49, %v3304_v4 }
 0x2e4   :  { %v1469_v60 = vadd.f32 %v1468_v56, %v3379_v55  ;;  %v1476_v61 = vmul.f32 %v3379_v55, %v3379_v55  ;;  %v1478_v62 = vadd.f32 %v1477_v57, %v1475_v52  ;;  %v1513_v52 = vrot.slane %v1496_v49, %v3309_v8 }
 0x2e5   :  { %v1501_v56 = vrot.slane %v1496_v49, %v3297_v1  ;;  %v1509_v57 = vrot.slane %v1496_v49, %v3299_v2  ;;  %v1539_v0 = vrot.slane %v1522_v50, %v3309_v8  ;;  %v1527_v3 = vrot.slane %v1522_v50, %v3297_v1  ;;  %v3041_v49 = vld [vmem:[#allocation7 + $0x58] sm:$0xff]  }
 0x2e6   :  { %1470 = vadd.xlane.f32.xlu1 %v1469_v60  ;;  %v1479_v63 = vadd.f32 %v1478_v62, %v1476_v61  ;;  %v1535_v5 = vrot.slane %v1522_v50, %v3299_v2 }
 0x2ea   :  { %1480 = vadd.xlane.f32.xlu1 %v1479_v63  ;;  %v1531_v63 = vrot.slane %v1522_v50, %v3304_v4  ;;  %v3042_v50 = vld [vmem:[#allocation7 + $0x18] sm:$0xff]  }
 0x36f   :  { %v1471_v42 = vpop.xlane.xlu1 %1470 }
 0x370   :  { %v1472_v15 = vmul.f32 0.001953125, %v1471_v42  ;;  %v3033_v42 = vld [vmem:[#allocation7 + $0x78] sm:$0xff]  }
 0x371   :  { %2632 = vmatprep.subr.bf16.mxu0 %v3033_v42 }
 0x372   :  { %v1483_v25 = vmul.f32 %v1472_v15, %v1472_v15  ;;  %v1486_v58 = vsub.f32 %v3366_v41, %v1472_v15  ;;  %v1488_v59 = vsub.f32 %v3373_v47, %v1472_v15  ;;  %v1487_v60 = vsub.f32 %v3363_v40, %v1472_v15 }
 0x373   :  { %v1481_v43 = vpop.xlane.xlu1 %1480  ;;  %v1489_v61 = vsub.f32 %v3379_v55, %v1472_v15  ;;  %v3034_v15 = vld [vmem:[#allocation7 + $0x38] sm:$0xff]  }
 0x374   :  { %v1482_v44 = vmul.f32 0.001953125, %v1481_v43  ;;  %v3035_v43 = vld [vmem:[#allocation7 + $0x70] sm:$0xff]  }
 0x376   :  { %v1484_v45 = vsub.f32 %v1482_v44, %v1483_v25  ;;  %v3036_v25 = vld [vmem:[#allocation7 + $0x30] sm:$0xff]   ;;  %v3037_v44 = vld [vmem:[#allocation7 + $0x68] sm:$0xff]  }
 0x378   :  { %v1485_v46 = vmax.f32 %v1484_v45, 0.0  ;;  %v3038_v45 = vld [vmem:[#allocation7 + $0x28] sm:$0xff]  }
 0x37a   :  { %v1490_v48 = vadd.f32 1e-05, %v1485_v46  ;;  %v3039_v46 = vld [vmem:[#allocation7 + $0x60] sm:$0xff]  }
 0x37c   :  { %3059 = vrsqrt.f32 %v1490_v48  ;;  %v3040_v48 = vld [vmem:[#allocation7 + $0x20] sm:$0xff]  }
 0x389   :  { %v3060_v62 = vpop.eup %3059 }
 0x38a   :  { %v1493_v53 = vmul.f32 %v3060_v62, %v1487_v60  ;;  %v1495_v54 = vmul.f32 %v3060_v62, %v1489_v61  ;;  %v1492_v6 = vmul.f32 %v3060_v62, %v1486_v58  ;;  %v1494_v7 = vmul.f32 %v3060_v62, %v1488_v59  ;;  %v3047_v58 = vld [vmem:[#allocation7 + $0x40] sm:$0xff]   ;;  %v3049_v60 = vld [vmem:[#allocation9 + $0x38] sm:$0xff]   ;;  %v3050_v62 = vld [vmem:[#allocation9 + $0x30] sm:$0xff]  }
 0x38b   :  { %v3048_v59 = vld [vmem:[#allocation7] sm:$0xff]   ;;  %v3181_v61 = vmov 0.0  }
 0x38c   :  { %v1519_v41 = vmul.f32 %v1505_v51, %v1493_v53  ;;  %v1521_v9 = vmul.f32 %v1513_v52, %v1495_v54  ;;  %v1518_v47 = vmul.f32 %v1501_v56, %v1492_v6  ;;  %v1520_v10 = vmul.f32 %v1509_v57, %v1494_v7  ;;  %v3043_v51 = vld [vmem:[#allocation7 + $0x50] sm:$0xff]   ;;  %v3045_v56 = vld [vmem:[#allocation7 + $0x48] sm:$0xff]   ;;  %2663 = vmatprep.subr.bf16.mxu1 %v3181_v61 }
 0x38d   :  { %v3044_v52 = vld [vmem:[#allocation7 + $0x10] sm:$0xff]   ;;  %v3046_v57 = vld [vmem:[#allocation7 + $0x8] sm:$0xff]  }
 0x38e   :  { %v1545_v40 = vadd.f32 %v1531_v63, %v1519_v41  ;;  %v1547_v13 = vadd.f32 %v1539_v0, %v1521_v9  ;;  %v1544_v55 = vadd.f32 %v1527_v3, %v1518_v47  ;;  %v1546_v14 = vadd.f32 %v1535_v5, %v1520_v10  ;;  %v3051_v63 = vld [vmem:[#allocation9 + $0x28] sm:$0xff]   ;;  %v3052_v0 = vld [vmem:[#allocation9 + $0x20] sm:$0xff]   ;;  %v3053_v3 = vld [vmem:[#allocation9 + $0x18] sm:$0xff]  }
 0x38f   :  { %v2054_v10 = vld [vmem:[%s3450_s11] sm:$0x3] }
 0x390   :  { %v1549_v16 = vmax.f32 %v1545_v40, 0.0  ;;  %v1551_v17 = vmax.f32 %v1547_v13, 0.0  ;;  %v1548_v18 = vmax.f32 %v1544_v55, 0.0  ;;  %v1550_v8 = vmax.f32 %v1546_v14, 0.0  ;;  %v2068_v40 = vld [vmem:[%s3451_s12] sm:$0x3] }
 0x391   :  { %v2059_v14 = vrot.slane %v2054_v10, %v3297_v1 }
 0x392   :  { %v1553_v19 = vpack.c.bf16 %v1549_v16, %v1549_v16  ;;  %v1555_v20 = vpack.c.bf16 %v1551_v17, %v1551_v17  ;;  %v1552_v21 = vpack.c.bf16 %v1548_v18, %v1548_v18  ;;  %v1554_v2 = vpack.c.bf16 %v1550_v8, %v1550_v8 }
 0x393   :  { %v2063_v16 = vrot.slane %v2054_v10, %v3304_v4  ;;  %v2073_v8 = vrot.slane %v2068_v40, %v3297_v1  ;;  %v3056_v1 = vld [vmem:[#allocation9] sm:$0xff]  }
 0x394   :  { %1984 = vmatprep.mubr.bf16.mxu0 %v1553_v19  ;;  %2025 = vmatprep.mubr.bf16.mxu1 %v1555_v20  ;;  %v2077_v19 = vrot.slane %v2068_v40, %v3304_v4 }
 0x395   :  { %1985 = vmatmul.mubr.bf16.vlgmr.msra.gmra.mxu0 %v1552_v21  ;;  %2026 = vmatmul.mubr.bf16.vlgmr.msra.gmra.mxu1 %v1554_v2 }
 0x396   :  { %2633 = vmatpush3.bf16.msra.mxu0 %v3034_v15  ;;  %2664 = vmatpush3.bf16.msra.mxu1 %v3049_v60 }
 0x397   :  { %2634 = vmatprep.subr.bf16.mxu0 %v3035_v43  ;;  %2665 = vmatprep.subr.bf16.mxu1 %v3181_v61 }
 0x398   :  { %2679 = vmatprep.mubr.msk.bf16.mxu1 %vm3182_vm0, %v3181_v61 }
 0x39a   :  { %2635 = vmatpush3.bf16.msra.mxu0 %v3036_v25  ;;  %2666 = vmatpush3.bf16.msra.mxu1 %v3050_v62 }
 0x39b   :  { %2636 = vmatprep.subr.bf16.mxu0 %v3037_v44  ;;  %2667 = vmatprep.subr.bf16.mxu1 %v3181_v61 }
 0x39e   :  { %2637 = vmatpush3.bf16.msra.mxu0 %v3038_v45  ;;  %2668 = vmatpush3.bf16.msra.mxu1 %v3051_v63 }
 0x39f   :  { %2638 = vmatprep.subr.bf16.mxu0 %v3039_v46  ;;  %2669 = vmatprep.subr.bf16.mxu1 %v3181_v61 }
 0x3a2   :  { %2639 = vmatpush3.bf16.msra.mxu0 %v3040_v48  ;;  %2670 = vmatpush3.bf16.msra.mxu1 %v3052_v0 }
 0x3a3   :  { %2640 = vmatprep.subr.bf16.mxu0 %v3041_v49  ;;  %2671 = vmatprep.subr.bf16.mxu1 %v3181_v61 }
 0x3a6   :  { %2641 = vmatpush3.bf16.msra.mxu0 %v3042_v50  ;;  %2672 = vmatpush3.bf16.msra.mxu1 %v3053_v3 }
 0x3a7   :  { %2642 = vmatprep.subr.bf16.mxu0 %v3043_v51  ;;  %2673 = vmatprep.subr.bf16.mxu1 %v3181_v61 }
 0x3aa   :  { %2643 = vmatpush3.bf16.msra.mxu0 %v3044_v52 }
 0x3ab   :  { %2644 = vmatprep.subr.bf16.mxu0 %v3045_v56 }
 0x3ae   :  { %2645 = vmatpush3.bf16.msra.mxu0 %v3046_v57 }
 0x3af   :  { %2646 = vmatprep.subr.bf16.mxu0 %v3047_v58 }
 0x3b2   :  { %2647 = vmatpush3.bf16.msra.mxu0 %v3048_v59 }
 0x455   :  { %v1986_v26 = vpop.f32.mrf.mxu0  ;;  %v2027_v27 = vpop.f32.mrf.mxu1 }
 0x456   :  { %v1987_v28 = vadd.f32 %v1986_v26, %v1625_v23 }
 0x457   :  { %v1988_v29 = vpop.f32.mrf.mxu0  ;;  %v2029_v30 = vpop.f32.mrf.mxu1 }
 0x458   :  { %v3408_v31 = vadd.f32 %v2027_v27, %v1987_v28  ;;  %v1989_v32 = vadd.f32 %v1988_v29, %v1629_v24  ;;  %v3054_v29 = vld [vmem:[#allocation9 + $0x10] sm:$0xff]  }
 0x459   :  { %v1990_v33 = vpop.f32.mrf.mxu0  ;;  %v2031_v34 = vpop.f32.mrf.mxu1  ;;  %2674 = vmatpush3.bf16.msra.mxu1 %v3054_v29 }
 0x45a   :  { %v3410_v35 = vadd.f32 %v2029_v30, %v1989_v32  ;;  %v2039_v39 = vmul.f32 %v3408_v31, %v3408_v31  ;;  %2675 = vmatprep.subr.bf16.mxu1 %v3181_v61  ;;  %v3055_v30 = vld [vmem:[#allocation9 + $0x8] sm:$0xff]  }
 0x45b   :  { %v1991_v36 = vpop.f32.mrf.mxu0  ;;  %v2032_v37 = vpop.f32.mrf.mxu1 }
 0x45c   :  { %v2034_v38 = vadd.f32 %v3410_v35, %v3408_v31  ;;  %v2040_v11 = vmul.f32 %v3410_v35, %v3410_v35 }
 0x45d   :  { %2676 = vmatpush3.bf16.msra.mxu1 %v3055_v30 }
 0x45e   :  { %2035 = vadd.xlane.f32.xlu0 %v2034_v38  ;;  %v2041_v12 = vadd.f32 %v2040_v11, %v2039_v39  ;;  %2677 = vmatprep.subr.bf16.mxu1 %v3181_v61  ;;  %v2623_v39 = vld [vmem:[%s3455_s16] ss:$0 sm:$0xff] }
 0x460   :  { %2042 = vadd.xlane.f32.xlu1 %v2041_v12 }
 0x461   :  { %2678 = vmatpush3.bf16.msra.mxu1 %v3056_v1 }
 0x4e7   :  { %v2036_v5 = vpop.xlane.xlu0 %2035 }
 0x4e8   :  { %v2038_v53 = vmul.f32 0.00390625, %v2036_v5 }
 0x4e9   :  { %v2043_v54 = vpop.xlane.xlu1 %2042 }
 0x4ea   :  { %v2044_v6 = vmul.f32 0.00390625, %v2043_v54  ;;  %v2045_v7 = vmul.f32 %v2038_v53, %v2038_v53  ;;  %v2048_v13 = vsub.f32 %v3408_v31, %v2038_v53  ;;  %v2049_v55 = vsub.f32 %v3410_v35, %v2038_v53  ;;  %v2606_v31 = vld [vmem:[%s3453_s14] ss:$0 sm:$0xff] }
 0x4ec   :  { %v2046_v41 = vsub.f32 %v2044_v6, %v2045_v7 }
 0x4ee   :  { %v2047_v9 = vmax.f32 %v2046_v41, 0.0 }
 0x4f0   :  { %v2050_v47 = vadd.f32 1e-05, %v2047_v9 }
 0x4f2   :  { %3061 = vrsqrt.f32 %v2050_v47 }
 0x4ff   :  { %v3062_v17 = vpop.eup %3061 }
 0x500   :  { %v2053_v18 = vmul.f32 %v3062_v17, %v2049_v55  ;;  %v2052_v20 = vmul.f32 %v3062_v17, %v2048_v13 }
 0x502   :  { %v2067_v21 = vmul.f32 %v2063_v16, %v2053_v18  ;;  %v2066_v2 = vmul.f32 %v2059_v14, %v2052_v20 }
 0x504   :  { %v2081_v22 = vadd.f32 %v2077_v19, %v2067_v21  ;;  %v2080_v23 = vadd.f32 %v2073_v8, %v2066_v2 }
 0x506   :  { %v2083_v24 = vmax.f32 %v2081_v22, 0.0  ;;  %v2082_v26 = vmax.f32 %v2080_v23, 0.0 }
 0x508   :  { %v2085_v27 = vpack.c.bf16 %v2083_v24, %v2083_v24  ;;  %v2084_v28 = vpack.c.bf16 %v2082_v26, %v2082_v26 }
 0x50a   :  { %2253 = vmatprep.mubr.bf16.mxu0 %v2085_v27 }
 0x50b   :  { %2254 = vmatmul.mubr.bf16.vlgmr.msra.gmra.mxu0 %v2084_v28 }
 0x5cb   :  { %v2648_v4 = vpop.f32.mrf.mxu0 }
 0x5cd   :  { %v2649_v32 = vpop.f32.mrf.mxu0 }
 0x5ce   :  { %v2650_v33 = vadd.f32 %v2649_v32, %v2648_v4 }
 0x5cf   :  { %v2651_v34 = vpop.f32.mrf.mxu0 }
 0x5d0   :  { %v2256_v35 = vadd.f32 %v2650_v33, %v2606_v31 }
 0x5d1   :  { %v2652_v36 = vpop.f32.mrf.mxu0 }
 0x5d2   :  { %v2261_v37 = vmax.f32 %v2256_v35, 0.0 }
 0x5d4   :  { %v2262_v38 = vpack.c.bf16 %v2261_v37, %v2261_v37 }
 0x5d6   :  { %2680 = vmatmul.mubr.bf16.vlgmr.msra.gmra.mxu1 %v2262_v38 }
 0x696   :  { %v2368_v11 = vpop.f32.mrf.mxu1 }
 0x697   :  { %v2369_v12 = vadd.f32 %v2623_v39, %v2368_v11 }
 0x698   :  { %v2681_v42 = vpop.f32.mrf.mxu1 }
 0x699   :  { %2374 = vst [vmem:[%s3456_s17] sm:$0xff] %v2369_v12 }
 0x69a   :  { %v2371_v15 = vpop.f32.mrf.mxu1 }
 0x69c   :  { %v2682_v43 = vpop.f32.mrf.mxu1 }
 0x69d   :  { %2379 = vsyncpa [#allocation3], 1 }
 0x69e   :  { %2380 = vsyncpa [#allocation5], 1 }
 0x69f   :  { %2381 = vsyncpa [#allocation8], 1 }

</bundles_post_ra>
